<compile_context>
chip_gen: v5e
topology: v5e:2x2
jax: 0.10.0
libtpu: 0.0.40
codegen_flags: <defaults>
</compile_context>

<pallas_src>
import math

import jax
import jax.numpy as jnp
import numpy as np
from jax.experimental import pallas as pl
from jax.experimental.pallas import tpu as pltpu


# --------------------------------------------------------------------------
# Chip-aware tiling helpers
# --------------------------------------------------------------------------
def _tpu_vmem_and_cores():
    """(physical VMEM bytes, #TensorCores per chip) with conservative fallbacks."""
    phys, cores = 64 * 1024 * 1024, 1         # assume the smallest-VMEM chip if unknown
    try:
        info = pltpu.get_tpu_info()
        phys = int(getattr(info, "vmem_capacity_bytes", phys))
        for name in ("num_cores", "core_count", "num_tensorcores",
                     "tensorcores_per_chip"):
            val = getattr(info, name, None)
            if val is not None:
                cores = int(val)
                break
    except Exception:
        pass
    return phys, cores


def _step_vmem_bytes(tl, V, C, H):
    """Rough upper bound on the per-grid-step VMEM working set (f32, bytes)."""
    f, lane, sub = 4, 128, 8
    pad = lambda n, m: -(-n // m) * m
    rows = tl * V
    b = 0
    b += 2 * tl * pad(V, sub) * pad(C, lane) * f        # x block, double-buffered
    b += 2 * tl * pad(C * V, lane) * f                  # out block, double-buffered
    b += 2 * rows * pad(H * (C + 2), lane) * f          # fused projection result (+slack)
    b += 4 * tl * pad(V, sub) * pad(V, lane) * f        # score / exp / A live set
    b += 2 * rows * pad(C + 1, lane) * f                # hn_aug (+ transposed copy)
    b += 2 * tl * pad(C + 1, sub) * pad(V, lane) * f    # hpT + reciprocal temp
    b += tl * pad(C, sub) * pad(V, lane) * f            # head-mean accumulator
    return b


def _row_tile(nt, V, C, H, budget_bytes, cap, num_cores):
    """Largest fused-row tile that is a divisor of nt, (8,128)-legal and fits VMEM.

    On multi-TensorCore chips (v7x) prefer an even number of >=2 grid steps so
    both cores get balanced work under dimension_semantics=("parallel",); on
    single-core chips (v5e / v6e) the grid is a serial loop, so never shrink
    the tile just to create extra steps.
    """
    cands = [d for d in range(1, min(nt, cap) + 1)
             if nt % d == 0 and (d % 8 == 0 or d == nt)]
    if not cands:
        cands = [nt]
    fits = [d for d in cands if _step_vmem_bytes(d, V, C, H) <= budget_bytes]
    if not fits:
        fits = cands[:1]
    tile = fits[-1]
    if num_cores > 1:
        for d in reversed(fits):
            steps = nt // d
            if steps >= 2 and steps % 2 == 0 and 2 * d >= tile:
                return d
    return tile


# --------------------------------------------------------------------------
# Kernel
# --------------------------------------------------------------------------
def _make_kernel(TL, V, C, H, alpha):
    inv_h = 1.0 / H
    P = C + 2   # per-head columns in the fused weight: [ W | W@a1 | W@a2 ]

    def kernel(x_ref, w_ref, f_ref, o_ref):
        # (TL, V, C) slab -> stack TL*V node rows; one MXU call covers every
        # head's node projection AND both attention projections.
        xm = x_ref[...].reshape(TL * V, C)
        big = jnp.dot(xm, w_ref[...],
                      preferred_element_type=jnp.float32)        # (TL*V, H*(C+2))
        factor = f_ref[...]                                      # (V, V), VMEM resident
        ones_col = jnp.ones((TL, V, 1), jnp.float32)             # hoisted out of loops
        acc = jnp.zeros((TL, C, V), jnp.float32)                 # head-mean accumulator

        for h in range(H):                                       # H static -> unrolled
            off = h * P
            hn = big[:, off:off + C].reshape(TL, V, C)           # (t, j, d)
            p_src = big[:, off + C:off + C + 1].reshape(TL, V, 1)    # a1.hn at source i
            p_dst = jnp.swapaxes(
                big[:, off + C + 1:off + P].reshape(TL, V, 1), 1, 2)  # a2.hn at dest j
            score = p_src + p_dst                                # (t, i, j)
            lrelu = jnp.where(score > 0, score, alpha * score)   # LeakyReLU(0.2)
            A = jnp.exp(-lrelu) * factor                         # mask + log(adj) weight

            # Fold rowsum into the spmm: contract A against [hn | 1] in the
            # transposed ('bdj,bij->bdi') form so each per-row matmul pushes
            # only M = C+1 (<= 8) LHS rows and the result lands as (t, d, i).
            hn_aug = jnp.concatenate([hn, ones_col], axis=-1)    # (t, j, d|1)
            hn_augT = jnp.swapaxes(hn_aug, 1, 2)                 # (t, d|1, j)
            hpT = jnp.einsum('bdj,bij->bdi', hn_augT, A,
                             preferred_element_type=jnp.float32)  # (TL, C+1, V)
            rowsum = hpT[:, C:C + 1, :]                          # (TL, 1, V) == e_rowsum
            # Reciprocal-multiply instead of divide (exact, keeps 2e-3 bound).
            acc = acc + hpT[:, :C, :] * pl.reciprocal(rowsum, approx=False)

        avg = acc * inv_h                                        # mean over heads
        # TODO(synk): jnp.expm1 would be marginally more accurate near 0.
        elu = jnp.where(avg > 0, avg, jnp.exp(avg) - 1.0)        # ELU, (TL, C, V)
        # Lane-dense store: pack channels side by side -> trailing dim C*V.
        o_ref[...] = jnp.concatenate([elu[:, d, :] for d in range(C)], axis=-1)

    return kernel


# --------------------------------------------------------------------------
# Wrapper
# --------------------------------------------------------------------------
def sparse_spatio_conv(x, W, a, adj, *, alpha=0.2, row_tile_cap=256):
    """x: (B, C, V, L) f32, W: (H, C, C), a: (H, 2C, 1), adj: (V, V)."""
    B, C, V, L = x.shape
    H = W.shape[0]
    nt = B * L

    # ---- weight prep (plain JAX): one fused (C, H*(C+2)) projection matrix ----
    # (x @ W[h]) @ a1[h] == x @ (W[h] @ a1[h]), so the attention projections are
    # folded into the same matmul as the node projection.
    W = W.astype(jnp.float32)
    a = a.astype(jnp.float32)
    wa1 = jnp.matmul(W, a[:, :C, :])                       # (H, C, 1)
    wa2 = jnp.matmul(W, a[:, C:, :])                       # (H, C, 1)
    wcat = jnp.concatenate([W, wa1, wa2], axis=2)          # (H, C, C+2)
    wbig = jnp.transpose(wcat, (1, 0, 2)).reshape(C, H * (C + 2))

    # factor[i, j] = clamped log(adj[i, j]) at edges, 0 at non-edges.
    mask = adj > 0
    logv = jnp.log(jnp.where(mask, adj, 1.0))
    logv = jnp.maximum(logv, -9e15)                        # torch clamp (dead for finite adj)
    factor = jnp.where(mask, logv, 0.0).astype(jnp.float32)     # (V, V)

    # ---- layout plumbing: fuse batch*time into one row axis ----
    # (B, C, V, L) -> (nt, V, C): nodes on sublanes, channels minor (MXU K dim).
    x_rows = jnp.transpose(x, (0, 3, 2, 1)).reshape(nt, V, C).astype(jnp.float32)

    # ---- chip-aware tile / VMEM budget ----
    phys_vmem, num_cores = _tpu_vmem_and_cores()
    vmem_limit = min(phys_vmem // 2, 64 * 1024 * 1024)
    tl = _row_tile(nt, V, C, H, int(vmem_limit * 0.75), row_tile_cap, num_cores)
    grid = (nt // tl,)

    out = pl.pallas_call(
        _make_kernel(tl, V, C, H, alpha),
        out_shape=jax.ShapeDtypeStruct((nt, C * V), jnp.float32),   # lane-dense out
        grid_spec=pltpu.PrefetchScalarGridSpec(
            num_scalar_prefetch=0,
            grid=grid,
            in_specs=[
                pl.BlockSpec((tl, V, C), lambda i: (i, 0, 0)),          # x slab (pipelined)
                pl.BlockSpec((C, H * (C + 2)), lambda i: (0, 0)),       # fused W (resident)
                pl.BlockSpec((V, V), lambda i: (0, 0)),                 # factor (resident)
            ],
            out_specs=pl.BlockSpec((tl, C * V), lambda i: (i, 0)),
        ),
        compiler_params=pltpu.CompilerParams(
            dimension_semantics=("parallel",),
            vmem_limit_bytes=vmem_limit),
    )(x_rows, wbig, factor)

    # (nt, C*V), column d*V + v  ->  (B, C, V, L)
    return jnp.transpose(out.reshape(B, L, C, V), (0, 2, 3, 1))


# --------------------------------------------------------------------------
# Pure-JAX reference (transliteration of the PyTorch edge/sparse forward)
# --------------------------------------------------------------------------
def reference(x, W, a, adj, *, alpha=0.2):
    B, C, V, L = x.shape
    H = W.shape[0]
    src, dst = jnp.nonzero(adj)
    E = src.shape[0]
    edge_val = adj[src, dst]

    h = jnp.einsum('ncvl,hcd->hndvl', x, W)                               # (H,B,C,V,L)
    edge_h = jnp.concatenate([h[:, :, :, src, :], h[:, :, :, dst, :]], axis=2)
    flat = edge_h.transpose(0, 1, 3, 4, 2).reshape(H, -1, 2 * C)           # (H, B*E*L, 2C)
    scores = jnp.einsum('hnc,hco->hno', flat, a)                           # (H, B*E*L, 1)
    lr = jnp.where(scores > 0, scores, alpha * scores)
    edge_e = jnp.exp(-lr).reshape(H, B, E, L).transpose(0, 1, 3, 2).reshape(-1, E)

    log_adj = jnp.log(edge_val)
    log_adj = jnp.where(log_adj < -9e15, -9e15, log_adj)
    edge_e = edge_e * log_adj[None, :]                                     # (HBL, E)

    HBL = H * B * L
    e_rowsum = jnp.zeros((HBL, V)).at[:, src].add(edge_e)                  # (HBL, V)
    flatten_h = h.transpose(0, 1, 4, 3, 2).reshape(-1, V, C)               # (HBL, V, C)
    gathered = flatten_h[:, dst, :]                                        # (HBL, E, C)
    h_prime = jnp.zeros((HBL, V, C)).at[:, src, :].add(edge_e[:, :, None] * gathered)
    h_prime = h_prime / e_rowsum[:, :, None]
    h_prime = h_prime.reshape(H, B, L, V, C)
    h_avg = jnp.mean(h_prime, axis=0).transpose(0, 3, 2, 1)                # (B, C, V, L)
    return jnp.where(h_avg > 0, h_avg, jnp.expm1(h_avg))


if __name__ == "__main__":
    key = jax.random.PRNGKey(0)
    B, C, V, L, H = 2, 4, 16, 8, 2
    k1, k2, k3, k4, k5 = jax.random.split(key, 5)

    x = jax.random.normal(k1, (B, C, V, L), jnp.float32)

    # xavier_uniform_(gain=1.414), deterministic synthetic init.
    gain = 1.414
    bW = gain * math.sqrt(6.0 / (C * C + H * C))
    W = jax.random.uniform(k2, (H, C, C), jnp.float32, -bW, bW)
    ba = gain * math.sqrt(6.0 / (2 * C + H))
    a = jax.random.uniform(k3, (H, 2 * C, 1), jnp.float32, -ba, ba)

    # Deterministic adjacency: random edges + self loops, values > 1 so
    # log(adj) stays positive and every row has at least one edge (rowsum > 0).
    mask = jax.random.uniform(k4, (V, V)) < 0.4
    mask = mask | jnp.eye(V, dtype=bool)
    vals = jax.random.uniform(k5, (V, V), jnp.float32, 1.5, 3.0)
    adj = jnp.where(mask, vals, 0.0)

    out = sparse_spatio_conv(x, W, a, adj)
    out = jax.block_until_ready(out)

    ref = reference(x, W, a, adj)
    assert out.shape == (B, C, V, L)
    np.testing.assert_allclose(np.asarray(out), np.asarray(ref), rtol=2e-3, atol=2e-3)
    print("KERNEL_OK")
</pallas_src>

<mosaic_0001>
module attributes {stable_mosaic.version = 11 : i64} {
  func.func @kernel(%arg0: i32, %arg1: memref<16x16x4xf32, #tpu.memory_space<vmem>>, %arg2: memref<4x12xf32, #tpu.memory_space<vmem>>, %arg3: memref<16x16xf32, #tpu.memory_space<vmem>>, %arg4: memref<16x64xf32, #tpu.memory_space<vmem>>) attributes {dimension_semantics = [#tpu.dimension_semantics<parallel>], iteration_bounds = array<i64: 1>, scalar_prefetch = 0 : i64, scratch_operands = 0 : i64, tpu.core_type = #tpu.core_type<tc>, window_params = [{transform_indices = @transform_0, window_bounds = array<i64: 16, 16, 4>}, {pipeline_mode = #tpu.pipeline_mode<synchronous>, transform_indices = @transform_1, window_bounds = array<i64: 4, 12>}, {pipeline_mode = #tpu.pipeline_mode<synchronous>, transform_indices = @transform_2, window_bounds = array<i64: 16, 16>}, {transform_indices = @transform_3, window_bounds = array<i64: 16, 64>}]} {
    %c0 = arith.constant 0 : index
    %c0_0 = arith.constant 0 : index
    %c0_1 = arith.constant 0 : index
    %0 = vector.load %arg1[%c0, %c0_0, %c0_1] : memref<16x16x4xf32, #tpu.memory_space<vmem>>, vector<16x16x4xf32>
    %1 = vector.shape_cast %0 : vector<16x16x4xf32> to vector<256x4xf32>
    %c0_2 = arith.constant 0 : index
    %c0_3 = arith.constant 0 : index
    %2 = vector.load %arg2[%c0_2, %c0_3] : memref<4x12xf32, #tpu.memory_space<vmem>>, vector<4x12xf32>
    %cst = arith.constant dense<0.000000e+00> : vector<256x12xf32>
    %3 = tpu.matmul %1, %2, %cst {dimension_numbers = #tpu.dot_dimension_numbers<[1], [0], [0], [1], [0, 0, 1, 1], [], []>} : vector<256x4xf32>, vector<4x12xf32>, vector<256x12xf32> -> vector<256x12xf32>
    %c0_4 = arith.constant 0 : index
    %c0_5 = arith.constant 0 : index
    %4 = vector.load %arg3[%c0_4, %c0_5] : memref<16x16xf32, #tpu.memory_space<vmem>>, vector<16x16xf32>
    %cst_6 = arith.constant 1.000000e+00 : f32
    %5 = vector.broadcast %cst_6 : f32 to vector<16x16x1xf32>
    %cst_7 = arith.constant 0.000000e+00 : f32
    %6 = vector.broadcast %cst_7 : f32 to vector<16x4x16xf32>
    %7 = vector.extract_strided_slice %3 {offsets = [0, 0], sizes = [256, 4], strides = [1, 1]} : vector<256x12xf32> to vector<256x4xf32>
    %8 = vector.shape_cast %7 : vector<256x4xf32> to vector<16x16x4xf32>
    %9 = vector.extract_strided_slice %3 {offsets = [0, 4], sizes = [256, 1], strides = [1, 1]} : vector<256x12xf32> to vector<256x1xf32>
    %10 = vector.shape_cast %9 : vector<256x1xf32> to vector<16x16x1xf32>
    %11 = vector.extract_strided_slice %3 {offsets = [0, 5], sizes = [256, 1], strides = [1, 1]} : vector<256x12xf32> to vector<256x1xf32>
    %12 = vector.shape_cast %11 : vector<256x1xf32> to vector<16x16x1xf32>
    %13 = tpu.transpose %12, [0, 2, 1] : vector<16x16x1xf32> -> vector<16x1x16xf32>
    %14 = vector.broadcast %10 : vector<16x16x1xf32> to vector<16x16x16xf32>
    %15 = vector.broadcast %13 : vector<16x1x16xf32> to vector<16x16x16xf32>
    %16 = arith.addf %14, %15 : vector<16x16x16xf32>
    %cst_8 = arith.constant 0.000000e+00 : f32
    %17 = vector.broadcast %cst_8 : f32 to vector<16x16x16xf32>
    %18 = arith.cmpf ogt, %16, %17 : vector<16x16x16xf32>
    %cst_9 = arith.constant 2.000000e-01 : f32
    %19 = vector.broadcast %cst_9 : f32 to vector<16x16x16xf32>
    %20 = arith.mulf %19, %16 : vector<16x16x16xf32>
    %21 = arith.select %18, %16, %20 : vector<16x16x16xi1>, vector<16x16x16xf32>
    %cst_10 = arith.constant 0.000000e+00 : f32
    %22 = vector.broadcast %cst_10 : f32 to vector<16x16x16xf32>
    %23 = arith.subf %22, %21 : vector<16x16x16xf32>
    %24 = math.exp %23 : vector<16x16x16xf32>
    %25 = vector.shape_cast %4 : vector<16x16xf32> to vector<1x16x16xf32>
    %26 = vector.broadcast %25 : vector<1x16x16xf32> to vector<16x16x16xf32>
    %27 = arith.mulf %24, %26 : vector<16x16x16xf32>
    %28 = tpu.concatenate %8, %5 in 2 : vector<16x16x4xf32>, vector<16x16x1xf32> -> vector<16x16x5xf32>
    %29 = tpu.transpose %28, [0, 2, 1] : vector<16x16x5xf32> -> vector<16x5x16xf32>
    "tpu.trace_start"() <{level = 10 : i32, message = "bdj,bij->bdi"}> : () -> ()
    %cst_11 = arith.constant dense<0.000000e+00> : vector<16x5x16xf32>
    %30 = tpu.matmul %29, %27, %cst_11 {dimension_numbers = #tpu.dot_dimension_numbers<[2], [2], [1], [1], [0, 0, 0, 1, 1, 1], [0], [0]>} : vector<16x5x16xf32>, vector<16x16x16xf32>, vector<16x5x16xf32> -> vector<16x5x16xf32>
    "tpu.trace_stop"() : () -> ()
    %31 = vector.extract_strided_slice %30 {offsets = [0, 4, 0], sizes = [16, 1, 16], strides = [1, 1, 1]} : vector<16x5x16xf32> to vector<16x1x16xf32>
    %32 = vector.extract_strided_slice %30 {offsets = [0, 0, 0], sizes = [16, 4, 16], strides = [1, 1, 1]} : vector<16x5x16xf32> to vector<16x4x16xf32>
    %33 = tpu.reciprocal %31 : vector<16x1x16xf32> -> vector<16x1x16xf32>
    %34 = vector.broadcast %33 : vector<16x1x16xf32> to vector<16x4x16xf32>
    %35 = arith.mulf %32, %34 : vector<16x4x16xf32>
    %36 = arith.addf %6, %35 : vector<16x4x16xf32>
    %37 = vector.extract_strided_slice %3 {offsets = [0, 6], sizes = [256, 4], strides = [1, 1]} : vector<256x12xf32> to vector<256x4xf32>
    %38 = vector.shape_cast %37 : vector<256x4xf32> to vector<16x16x4xf32>
    %39 = vector.extract_strided_slice %3 {offsets = [0, 10], sizes = [256, 1], strides = [1, 1]} : vector<256x12xf32> to vector<256x1xf32>
    %40 = vector.shape_cast %39 : vector<256x1xf32> to vector<16x16x1xf32>
    %41 = vector.extract_strided_slice %3 {offsets = [0, 11], sizes = [256, 1], strides = [1, 1]} : vector<256x12xf32> to vector<256x1xf32>
    %42 = vector.shape_cast %41 : vector<256x1xf32> to vector<16x16x1xf32>
    %43 = tpu.transpose %42, [0, 2, 1] : vector<16x16x1xf32> -> vector<16x1x16xf32>
    %44 = vector.broadcast %40 : vector<16x16x1xf32> to vector<16x16x16xf32>
    %45 = vector.broadcast %43 : vector<16x1x16xf32> to vector<16x16x16xf32>
    %46 = arith.addf %44, %45 : vector<16x16x16xf32>
    %cst_12 = arith.constant 0.000000e+00 : f32
    %47 = vector.broadcast %cst_12 : f32 to vector<16x16x16xf32>
    %48 = arith.cmpf ogt, %46, %47 : vector<16x16x16xf32>
    %cst_13 = arith.constant 2.000000e-01 : f32
    %49 = vector.broadcast %cst_13 : f32 to vector<16x16x16xf32>
    %50 = arith.mulf %49, %46 : vector<16x16x16xf32>
    %51 = arith.select %48, %46, %50 : vector<16x16x16xi1>, vector<16x16x16xf32>
    %cst_14 = arith.constant 0.000000e+00 : f32
    %52 = vector.broadcast %cst_14 : f32 to vector<16x16x16xf32>
    %53 = arith.subf %52, %51 : vector<16x16x16xf32>
    %54 = math.exp %53 : vector<16x16x16xf32>
    %55 = vector.shape_cast %4 : vector<16x16xf32> to vector<1x16x16xf32>
    %56 = vector.broadcast %55 : vector<1x16x16xf32> to vector<16x16x16xf32>
    %57 = arith.mulf %54, %56 : vector<16x16x16xf32>
    %58 = tpu.concatenate %38, %5 in 2 : vector<16x16x4xf32>, vector<16x16x1xf32> -> vector<16x16x5xf32>
    %59 = tpu.transpose %58, [0, 2, 1] : vector<16x16x5xf32> -> vector<16x5x16xf32>
    "tpu.trace_start"() <{level = 10 : i32, message = "bdj,bij->bdi"}> : () -> ()
    %cst_15 = arith.constant dense<0.000000e+00> : vector<16x5x16xf32>
    %60 = tpu.matmul %59, %57, %cst_15 {dimension_numbers = #tpu.dot_dimension_numbers<[2], [2], [1], [1], [0, 0, 0, 1, 1, 1], [0], [0]>} : vector<16x5x16xf32>, vector<16x16x16xf32>, vector<16x5x16xf32> -> vector<16x5x16xf32>
    "tpu.trace_stop"() : () -> ()
    %61 = vector.extract_strided_slice %60 {offsets = [0, 4, 0], sizes = [16, 1, 16], strides = [1, 1, 1]} : vector<16x5x16xf32> to vector<16x1x16xf32>
    %62 = vector.extract_strided_slice %60 {offsets = [0, 0, 0], sizes = [16, 4, 16], strides = [1, 1, 1]} : vector<16x5x16xf32> to vector<16x4x16xf32>
    %63 = tpu.reciprocal %61 : vector<16x1x16xf32> -> vector<16x1x16xf32>
    %64 = vector.broadcast %63 : vector<16x1x16xf32> to vector<16x4x16xf32>
    %65 = arith.mulf %62, %64 : vector<16x4x16xf32>
    %66 = arith.addf %36, %65 : vector<16x4x16xf32>
    %cst_16 = arith.constant 5.000000e-01 : f32
    %67 = vector.broadcast %cst_16 : f32 to vector<16x4x16xf32>
    %68 = arith.mulf %66, %67 : vector<16x4x16xf32>
    %cst_17 = arith.constant 0.000000e+00 : f32
    %69 = vector.broadcast %cst_17 : f32 to vector<16x4x16xf32>
    %70 = arith.cmpf ogt, %68, %69 : vector<16x4x16xf32>
    %71 = math.exp %68 : vector<16x4x16xf32>
    %cst_18 = arith.constant 1.000000e+00 : f32
    %72 = vector.broadcast %cst_18 : f32 to vector<16x4x16xf32>
    %73 = arith.subf %71, %72 : vector<16x4x16xf32>
    %74 = arith.select %70, %68, %73 : vector<16x4x16xi1>, vector<16x4x16xf32>
    %75 = vector.extract_strided_slice %74 {offsets = [0, 0, 0], sizes = [16, 1, 16], strides = [1, 1, 1]} : vector<16x4x16xf32> to vector<16x1x16xf32>
    %76 = vector.shape_cast %75 : vector<16x1x16xf32> to vector<16x16xf32>
    %77 = vector.extract_strided_slice %74 {offsets = [0, 1, 0], sizes = [16, 1, 16], strides = [1, 1, 1]} : vector<16x4x16xf32> to vector<16x1x16xf32>
    %78 = vector.shape_cast %77 : vector<16x1x16xf32> to vector<16x16xf32>
    %79 = vector.extract_strided_slice %74 {offsets = [0, 2, 0], sizes = [16, 1, 16], strides = [1, 1, 1]} : vector<16x4x16xf32> to vector<16x1x16xf32>
    %80 = vector.shape_cast %79 : vector<16x1x16xf32> to vector<16x16xf32>
    %81 = vector.extract_strided_slice %74 {offsets = [0, 3, 0], sizes = [16, 1, 16], strides = [1, 1, 1]} : vector<16x4x16xf32> to vector<16x1x16xf32>
    %82 = vector.shape_cast %81 : vector<16x1x16xf32> to vector<16x16xf32>
    %83 = tpu.concatenate %76, %78, %80, %82 in 1 : vector<16x16xf32>, vector<16x16xf32>, vector<16x16xf32>, vector<16x16xf32> -> vector<16x64xf32>
    %c0_19 = arith.constant 0 : index
    %c0_20 = arith.constant 0 : index
    %84 = vector.load %arg4[%c0_19, %c0_20] : memref<16x64xf32, #tpu.memory_space<vmem>>, vector<16x64xf32>
    tpu.vector_store %arg4[%c0_19, %c0_20], %83 {strides = array<i32>} : memref<16x64xf32, #tpu.memory_space<vmem>>, vector<16x64xf32>,
    return
  }
  func.func @transform_0(%arg0: i32) -> (i32, i32, i32) {
    %c0_i32 = arith.constant 0 : i32
    %c0_i32_0 = arith.constant 0 : i32
    %c0_i32_1 = arith.constant 0 : i32
    return %arg0, %c0_i32, %c0_i32_0 : i32, i32, i32
  }
  func.func @transform_1(%arg0: i32) -> (i32, i32) {
    %c0_i32 = arith.constant 0 : i32
    %c0_i32_0 = arith.constant 0 : i32
    %c0_i32_1 = arith.constant 0 : i32
    return %c0_i32, %c0_i32_0 : i32, i32
  }
  func.func @transform_2(%arg0: i32) -> (i32, i32) {
    %c0_i32 = arith.constant 0 : i32
    %c0_i32_0 = arith.constant 0 : i32
    %c0_i32_1 = arith.constant 0 : i32
    return %c0_i32, %c0_i32_0 : i32, i32
  }
  func.func @transform_3(%arg0: i32) -> (i32, i32) {
    %c0_i32 = arith.constant 0 : i32
    %c0_i32_0 = arith.constant 0 : i32
    return %arg0, %c0_i32 : i32, i32
  }
}

</mosaic_0001>

<bundles_post_ra>
// kernel: tpu_custom_call.1
= control target key start
LH: loop header
LB: loop body
LE: loop exit
PB: predicated region body
PF: predicated region fallthrough
CT: control target
= control target key end

     0   :  { %vm145_vm0 = vcmask 1043456   ;;  %vm48_vm1 = vcmask 31744   ;;  %s8088_s0 = inlined_call_operand.vmem [shape: f32[16,16,4], index: 0, kind: input, shape index: {}]   ;;  %s8089_s1 = inlined_call_operand.vmem [shape: f32[4,12], index: 1, kind: input, shape index: {}]   ;;  %s8090_s2 = inlined_call_operand.vmem [shape: f32[16,16], index: 2, kind: input, shape index: {}]   ;;  %s8091_s3 = inlined_call_operand.hbm [shape: f32[16,64], index: 3, kind: output, shape index: {}]  }
   0x1   :  { %v47_v0 = vld [vmem:[%s8089_s1] sm:$0xf]  ;;  %v41_v3 = vld [vmem:[%s8088_s0 + $0xd0] sm:$0xff]  ;;  %v36_v4 = vld [vmem:[%s8088_s0 + $0xa8] sm:$0xff] }
   0x2   :  { %v15_v1 = vld [vmem:[%s8088_s0] sm:$0xff]  ;;  %5249 = vmatpush.msk.msra.mxu0 %vm145_vm0, %v47_v0  ;;  %5394 = vmatpush.msk.msra.mxu1 %vm145_vm0, %v47_v0 }
   0x3   :  { %v31_v2 = vld [vmem:[%s8088_s0 + $0x80] sm:$0xff]  ;;  %5396 = vmatpush.msk.msra.mxu3 %vm145_vm0, %v47_v0  ;;  %5250 = vmatmul.msk.f32.vlgmr.msra.gmra.mxu0 %vm48_vm1, %v15_v1 }
   0x4   :  { %5266 = vmatmul.msk.f32.vlgmr.msra.gmra.mxu1 %vm48_vm1, %v31_v2  ;;  %5276 = vmatmul.msk.f32.vlgmr.msra.gmra.mxu3 %vm48_vm1, %v41_v3 }
   0x5   :  { %5395 = vmatpush.msk.msra.mxu2 %vm145_vm0, %v47_v0 }
   0x6   :  { %5271 = vmatmul.msk.f32.vlgmr.msra.gmra.mxu2 %vm48_vm1, %v36_v4 }
   0x7   :  { %8 = vsyncpa [#allocation3], 0  ;;  %v16_v5 = vld [vmem:[%s8088_s0 + $0x8] sm:$0xff]  ;;  %v42_v7 = vld [vmem:[%s8088_s0 + $0xd8] sm:$0xff]  ;;  %v5667_v31 = vmov 4   ;;  %s5668_s21 = smov 123  }
   0x8   :  { %v32_v6 = vld [vmem:[%s8088_s0 + $0x88] sm:$0xff]  ;;  %v37_v8 = vld [vmem:[%s8088_s0 + $0xb0] sm:$0xff]  ;;  %v43_v10 = vld [vmem:[%s8088_s0 + $0xe0] sm:$0xff]  ;;  %5409 = vset.pattern.permute.xlu1 %v5667_v31  ;;  %5410 = vset.pattern.permute.xlu2 %v5667_v31  ;;  %s5671_s22 = smov 122   ;;  %vm1848_vm6 = vcmask 130048   ;;  %s5673_s4 = smov 16  }
   0x9   :  { %v17_v9 = vld [vmem:[%s8088_s0 + $0x10] sm:$0xff]  ;;  %v38_v12 = vld [vmem:[%s8088_s0 + $0xb8] sm:$0xff]  ;;  %v44_v14 = vld [vmem:[%s8088_s0 + $0xe8] sm:$0xff]  ;;  %5411 = vset.pattern.permute.xlu0 %v5667_v31  ;;  %s5674_s5 = smov 48   ;;  %s5675_s6 = smov [#allocation2]  }
   0xa   :  { %v33_v11 = vld [vmem:[%s8088_s0 + $0x90] sm:$0xff]  ;;  %v18_v13 = vld [vmem:[%s8088_s0 + $0x18] sm:$0xff]  ;;  %v39_v16 = vld [vmem:[%s8088_s0 + $0xc0] sm:$0xff]  ;;  %s5235_s7 = sshll.u32 %s5675_s6, 4  ;;  %s5237_s10 = sshll.u32 %s8091_s3, 4  ;;  %s5236_s7 = int_to_ptr.vmem [resolvable:$true] %s5235_s7  ;;  %s5238_s10 = int_to_ptr.hbm [resolvable:$true] %s5237_s10 }
   0xb   :  { %5251 = vmatmul.msk.f32.gmra.mxu0 %vm48_vm1, %v16_v5  ;;  %v34_v15 = vld [vmem:[%s8088_s0 + $0x98] sm:$0xff]  ;;  %v19_v17 = vld [vmem:[%s8088_s0 + $0x20] sm:$0xff]  ;;  %v45_v18 = vld [vmem:[%s8088_s0 + $0xf0] sm:$0xff]  ;;  %s5676_s11 = smov 128   ;;  %s5677_s12 = smov 8  }
   0xc   :  { %5267 = vmatmul.msk.f32.gmra.mxu1 %vm48_vm1, %v32_v6  ;;  %5277 = vmatmul.msk.f32.gmra.mxu3 %vm48_vm1, %v42_v7  ;;  %v35_v19 = vld [vmem:[%s8088_s0 + $0xa0] sm:$0xff]  ;;  %v40_v20 = vld [vmem:[%s8088_s0 + $0xc8] sm:$0xff]  ;;  %v46_v22 = vld [vmem:[%s8088_s0 + $0xf8] sm:$0xff] }
   0xd   :  { %v20_v21 = vld [vmem:[%s8088_s0 + $0x28] sm:$0xff]  ;;  %v21_v23 = vld [vmem:[%s8088_s0 + $0x30] sm:$0xff]  ;;  %v22_v24 = vld [vmem:[%s8088_s0 + $0x38] sm:$0xff] }
   0xe   :  { %5272 = vmatmul.msk.f32.gmra.mxu2 %vm48_vm1, %v37_v8  ;;  %v23_v25 = vld [vmem:[%s8088_s0 + $0x40] sm:$0xff]  ;;  %v24_v26 = vld [vmem:[%s8088_s0 + $0x48] sm:$0xff]  ;;  %v25_v27 = vld [vmem:[%s8088_s0 + $0x50] sm:$0xff] }
   0xf   :  { %v26_v28 = vld [vmem:[%s8088_s0 + $0x58] sm:$0xff]  ;;  %v27_v29 = vld [vmem:[%s8088_s0 + $0x60] sm:$0xff]  ;;  %v28_v30 = vld [vmem:[%s8088_s0 + $0x68] sm:$0xff] }
  0x10   :  { %v29_v32 = vld [vmem:[%s8088_s0 + $0x70] sm:$0xff]  ;;  %v30_v33 = vld [vmem:[%s8088_s0 + $0x78] sm:$0xff]  ;;  %s5669_s0 = smov 117  }
  0x13   :  { %5252 = vmatmul.msk.f32.gmra.mxu0 %vm48_vm1, %v17_v9 }
  0x14   :  { %5278 = vmatmul.msk.f32.gmra.mxu3 %vm48_vm1, %v43_v10  ;;  %5268 = vmatmul.msk.f32.gmra.mxu1 %vm48_vm1, %v33_v11 }
  0x16   :  { %5273 = vmatmul.msk.f32.gmra.mxu2 %vm48_vm1, %v38_v12 }
  0x1b   :  { %5253 = vmatmul.msk.f32.gmra.mxu0 %vm48_vm1, %v18_v13 }
  0x1c   :  { %5279 = vmatmul.msk.f32.gmra.mxu3 %vm48_vm1, %v44_v14  ;;  %5269 = vmatmul.msk.f32.gmra.mxu1 %vm48_vm1, %v34_v15 }
  0x1e   :  { %5274 = vmatmul.msk.f32.gmra.mxu2 %vm48_vm1, %v39_v16 }
  0x23   :  { %5254 = vmatmul.msk.f32.gmra.mxu0 %vm48_vm1, %v19_v17 }
  0x24   :  { %5280 = vmatmul.msk.f32.gmra.mxu3 %vm48_vm1, %v45_v18  ;;  %5270 = vmatmul.msk.f32.gmra.mxu1 %vm48_vm1, %v35_v19 }
  0x26   :  { %5275 = vmatmul.msk.f32.gmra.mxu2 %vm48_vm1, %v40_v20 }
  0x2b   :  { %5255 = vmatmul.msk.f32.gmra.mxu0 %vm48_vm1, %v20_v21 }
  0x2c   :  { %5281 = vmatmul.msk.f32.gmra.mxu3 %vm48_vm1, %v46_v22 }
  0x33   :  { %5256 = vmatmul.msk.f32.gmra.mxu0 %vm48_vm1, %v21_v23 }
  0x3b   :  { %5257 = vmatmul.msk.f32.gmra.mxu0 %vm48_vm1, %v22_v24 }
  0x43   :  { %5258 = vmatmul.msk.f32.gmra.mxu0 %vm48_vm1, %v23_v25 }
  0x4b   :  { %5259 = vmatmul.msk.f32.gmra.mxu0 %vm48_vm1, %v24_v26 }
  0x53   :  { %5260 = vmatmul.msk.f32.gmra.mxu0 %vm48_vm1, %v25_v27 }
  0x5b   :  { %5261 = vmatmul.msk.f32.gmra.mxu0 %vm48_vm1, %v26_v28 }
  0x63   :  { %5262 = vmatmul.msk.f32.gmra.mxu0 %vm48_vm1, %v27_v29 }
  0x6b   :  { %5263 = vmatmul.msk.f32.gmra.mxu0 %vm48_vm1, %v28_v30 }
  0x73   :  { %5264 = vmatmul.msk.f32.gmra.mxu0 %vm48_vm1, %v29_v32 }
  0x7b   :  { %5265 = vmatmul.msk.f32.gmra.mxu0 %vm48_vm1, %v30_v33 }
  0x80   :  { %v5829_v34 = vpop.f32.mrf.mxu0 }
  0x81   :  { %v5831_v35 = vpop.f32.mrf.mxu1  ;;  %296 = vrot.lane.b32.xlu0 %v5829_v34, %s5668_s21 }
  0x82   :  { %328 = vrot.lane.b32.xlu1 %v5831_v35, %s5668_s21 }
  0x87   :  { %v5837_v36 = vpop.f32.mrf.mxu3 }
  0x88   :  { %348 = vrot.lane.b32.xlu2 %v5837_v36, %s5668_s21  ;;  %v5841_v37 = vpop.f32.mrf.mxu0 }
  0x89   :  { %v5843_v38 = vpop.f32.mrf.mxu2  ;;  %v5848_v39 = vpop.f32.mrf.mxu1 }
  0x8a   :  { %905 = vperm.xlu1 %5409, %v5829_v34   ;;  %338 = vrot.lane.b32.xlu0 %v5843_v38, %s5668_s21 }
  0x8f   :  { %v5856_v42 = vpop.f32.mrf.mxu3 }
  0x90   :  { %330 = vrot.lane.b32.xlu2 %v5848_v39, %s5668_s21  ;;  %v5852_v40 = vpop.f32.mrf.mxu0 }
  0x91   :  { %v5854_v41 = vpop.f32.mrf.mxu2  ;;  %v5873_v46 = vpop.f32.mrf.mxu1 }
  0x92   :  { %340 = vrot.lane.b32.xlu1 %v5854_v41, %s5668_s21  ;;  %298 = vrot.lane.b32.xlu0 %v5841_v37, %s5668_s21 }
  0x97   :  { %v5869_v44 = vpop.f32.mrf.mxu3 }
  0x98   :  { %909 = vperm.xlu2 %5410, %v5841_v37   ;;  %v5863_v43 = vpop.f32.mrf.mxu0 }
  0x99   :  { %v5871_v45 = vpop.f32.mrf.mxu2  ;;  %v5892_v50 = vpop.f32.mrf.mxu1 }
  0x9a   :  { %350 = vrot.lane.b32.xlu0 %v5856_v42, %s5668_s21  ;;  %300 = vrot.lane.b32.xlu1 %v5852_v40, %s5668_s21  ;;  %8095 = vst [vmem:[#allocation5_spill] sm:$0xff] %v5892_v50 }
  0x9f   :  { %v5883_v48 = vpop.f32.mrf.mxu3 }
  0xa0   :  { %342 = vrot.lane.b32.xlu2 %v5871_v45, %s5668_s21  ;;  %v5877_v47 = vpop.f32.mrf.mxu0 }
  0xa1   :  { %v5894_v51 = vpop.f32.mrf.mxu2  ;;  %v5904_v53 = vpop.f32.mrf.mxu1 }
  0xa2   :  { %332 = vrot.lane.b32.xlu0 %v5873_v46, %s5668_s21  ;;  %352 = vrot.lane.b32.xlu1 %v5869_v44, %s5668_s21  ;;  %8096 = vst [vmem:[#allocation6_spill] sm:$0xff] %v5894_v51 }
  0xa7   :  { %v5906_v54 = vpop.f32.mrf.mxu3 }
  0xa8   :  { %354 = vrot.lane.b32.xlu2 %v5883_v48, %s5668_s21  ;;  %v5887_v49 = vpop.f32.mrf.mxu0  ;;  %8097 = vst [vmem:[#allocation7_spill] sm:$0xff] %v5906_v54 }
  0xa9   :  { %v5922_v57 = vpop.f32.mrf.mxu2 }
  0xaa   :  { %913 = vperm.xlu0 %5411, %v5852_v40   ;;  %302 = vrot.lane.b32.xlu1 %v5863_v43, %s5668_s21 }
  0xaf   :  { %v5937_v60 = vpop.f32.mrf.mxu3 }
  0xb0   :  { %304 = vrot.lane.b32.xlu2 %v5877_v47, %s5668_s21  ;;  %v5898_v52 = vpop.f32.mrf.mxu0 }
  0xb2   :  { %344 = vrot.lane.b32.xlu0 %v5894_v51, %s5668_s21  ;;  %334 = vrot.lane.b32.xlu1 %v5892_v50, %s5668_s21 }
  0xb8   :  { %336 = vrot.lane.b32.xlu2 %v5904_v53, %s5668_s21  ;;  %v5910_v55 = vpop.f32.mrf.mxu0 }
  0xba   :  { %356 = vrot.lane.b32.xlu0 %v5906_v54, %s5668_s21  ;;  %917 = vperm.xlu1 %5409, %v5863_v43  }
  0xc0   :  { %306 = vrot.lane.b32.xlu2 %v5887_v49, %s5668_s21  ;;  %v5917_v56 = vpop.f32.mrf.mxu0 }
  0xc2   :  { %921 = vperm.xlu1 %5409, %v5877_v47   ;;  %308 = vrot.lane.b32.xlu0 %v5898_v52, %s5668_s21 }
  0xc8   :  { %933 = vperm.xlu2 %5410, %v5910_v55   ;;  %v5925_v58 = vpop.f32.mrf.mxu0 }
  0xca   :  { %346 = vrot.lane.b32.xlu1 %v5922_v57, %s5668_s21  ;;  %969 = vperm.xlu0 %5411, %v5831_v35  }
  0xd0   :  { %312 = vrot.lane.b32.xlu2 %v5917_v56, %s5668_s21  ;;  %v5932_v59 = vpop.f32.mrf.mxu0 }
  0xd2   :  { %925 = vperm.xlu1 %5409, %v5887_v49   ;;  %314 = vrot.lane.b32.xlu0 %v5925_v58, %s5668_s21 }
  0xd8   :  { %941 = vperm.xlu2 %5410, %v5925_v58   ;;  %v5940_v61 = vpop.f32.mrf.mxu0 }
  0xda   :  { %358 = vrot.lane.b32.xlu1 %v5937_v60, %s5668_s21  ;;  %945 = vperm.xlu0 %5411, %v5932_v59  }
  0xe0   :  { %318 = vrot.lane.b32.xlu2 %v5940_v61, %s5668_s21  ;;  %v5947_v62 = vpop.f32.mrf.mxu0 }
  0xe2   :  { %v5949_v63 = vpop.permute.xlu2 %348  ;;  %310 = vrot.lane.b32.xlu1 %v5910_v55, %s5668_s21  ;;  %981 = vperm.xlu0 %5411, %v5892_v50  }
  0xe3   :  { %8098 = vst [vmem:[#allocation8_spill] sm:$0xff] %v5949_v63 }
  0xe8   :  { %977 = vperm.xlu2 %5410, %v5873_v46   ;;  %v5960_v1 = vpop.f32.mrf.mxu0 }
  0xea   :  { %v5955_v0 = vpop.permute.xlu2 %330  ;;  %929 = vperm.xlu1 %5409, %v5898_v52   ;;  %320 = vrot.lane.b32.xlu0 %v5947_v62, %s5668_s21 }
  0xf0   :  { %953 = vperm.xlu2 %5410, %v5947_v62   ;;  %v5971_v5 = vpop.f32.mrf.mxu0 }
  0xf2   :  { %v5963_v2 = vpop.permute.xlu2 %909  ;;  %937 = vperm.xlu1 %5409, %v5917_v56   ;;  %957 = vperm.xlu0 %5411, %v5960_v1  }
  0xf3   :  { %8099 = vst [vmem:[#allocation9_spill] sm:$0xff] %v5963_v2  ;;  %v5967_v3 = vpop.permute.xlu0 %296 }
  0xf4   :  { %v5969_v4 = vpop.permute.xlu1 %328 }
  0xf8   :  { %324 = vrot.lane.b32.xlu2 %v5971_v5, %s5668_s21  ;;  %v6002_v15 = vpop.f32.mrf.mxu0 }
  0xfa   :  { %316 = vrot.lane.b32.xlu1 %v5932_v59, %s5668_s21  ;;  %993 = vperm.xlu0 %5411, %v5854_v41   ;;  %v5978_v6 = vpop.permute.xlu2 %342 }
  0xfc   :  { %v5980_v7 = vpop.permute.xlu1 %905  ;;  %v5982_v8 = vpop.permute.xlu0 %338 }
  0xfd   :  { %8100 = vst [vmem:[#allocation10_spill] sm:$0xff] %v5980_v7 }
  0xfe   :  { %8101 = vst [vmem:[#allocation11_spill] sm:$0xff] %v5982_v8 }
 0x100   :  { %989 = vperm.xlu2 %5410, %v5843_v38  }
 0x102   :  { %949 = vperm.xlu1 %5409, %v5940_v61   ;;  %1005 = vperm.xlu0 %5411, %v5922_v57   ;;  %v5991_v11 = vpop.permute.xlu2 %354 }
 0x104   :  { %v5987_v9 = vpop.permute.xlu1 %340  ;;  %v5989_v10 = vpop.permute.xlu0 %298 }
 0x108   :  { %1001 = vperm.xlu2 %5410, %v5894_v51  }
 0x10a   :  { %973 = vperm.xlu1 %5409, %v5848_v39   ;;  %1017 = vperm.xlu0 %5411, %v5869_v44   ;;  %v6000_v14 = vpop.permute.xlu2 %304 }
 0x10c   :  { %v5996_v12 = vpop.permute.xlu0 %350  ;;  %v5998_v13 = vpop.permute.xlu1 %300 }
 0x10d   :  { %8102 = vst [vmem:[#allocation12_spill] sm:$0xff] %v5996_v12 }
 0x110   :  { %1013 = vperm.xlu2 %5410, %v5856_v42  }
 0x112   :  { %322 = vrot.lane.b32.xlu1 %v5960_v1, %s5668_s21  ;;  %326 = vrot.lane.b32.xlu0 %v6002_v15, %s5668_s21  ;;  %v6014_v18 = vpop.permute.xlu2 %336 }
 0x113   :  { %8103 = vst [vmem:[#allocation13_spill] sm:$0xff] %v6014_v18 }
 0x114   :  { %v6009_v16 = vpop.permute.xlu0 %332  ;;  %v6011_v17 = vpop.permute.xlu1 %352 }
 0x118   :  { %965 = vperm.xlu2 %5410, %v6002_v15  }
 0x11a   :  { %961 = vperm.xlu1 %5409, %v5971_v5   ;;  %1029 = vperm.xlu0 %5411, %v5937_v60   ;;  %v6026_v21 = vpop.permute.xlu2 %306 }
 0x11c   :  { %v6018_v19 = vpop.permute.xlu0 %913  ;;  %v6020_v20 = vpop.permute.xlu1 %302 }
 0x11d   :  { %8104 = vst [vmem:[#allocation14_spill] sm:$0xff] %v6018_v19 }
 0x120   :  { %1025 = vperm.xlu2 %5410, %v5906_v54  }
 0x122   :  { %985 = vperm.xlu1 %5409, %v5904_v53   ;;  %2587 = vrot.lane.b32.xlu0 %v5841_v37, %s5669_s0  ;;  %v6041_v26 = vpop.permute.xlu2 %933 }
 0x123   :  { %8106 = vst [vmem:[#allocation16_spill] sm:$0xff] %v6041_v26  ;;  %v5670_v26 = vmov 10  }
 0x124   :  { %v6028_v22 = vpop.permute.xlu0 %344  ;;  %v6030_v23 = vpop.permute.xlu1 %334  ;;  %5413 = vset.pattern.permute.xlu0 %v5670_v26 }
 0x128   :  { %2585 = vrot.lane.b32.xlu2 %v5829_v34, %s5669_s0 }
 0x129   :  { %5414 = vset.pattern.permute.xlu2 %v5670_v26 }
 0x12a   :  { %997 = vperm.xlu1 %5409, %v5871_v45   ;;  %2603 = vrot.lane.b32.xlu0 %v5925_v58, %s5669_s0  ;;  %v6052_v29 = vpop.permute.xlu2 %312 }
 0x12c   :  { %v6037_v24 = vpop.permute.xlu0 %356  ;;  %v6039_v25 = vpop.permute.xlu1 %917 }
 0x12d   :  { %8105 = vst [vmem:[#allocation15_spill] sm:$0xff] %v6039_v25 }
 0x130   :  { %2593 = vrot.lane.b32.xlu2 %v5877_v47, %s5669_s0 }
 0x132   :  { %1009 = vperm.xlu1 %5409, %v5837_v36   ;;  %2609 = vrot.lane.b32.xlu0 %v5947_v62, %s5669_s0  ;;  %v6065_v32 = vpop.permute.xlu2 %941 }
 0x133   :  { %8109 = vst [vmem:[#allocation19_spill] sm:$0xff] %v6065_v32 }
 0x134   :  { %v6048_v27 = vpop.permute.xlu1 %921  ;;  %v6050_v28 = vpop.permute.xlu0 %308 }
 0x135   :  { %8107 = vst [vmem:[#allocation17_spill] sm:$0xff] %v6048_v27 }
 0x138   :  { %2597 = vrot.lane.b32.xlu2 %v5898_v52, %s5669_s0 }
 0x13a   :  { %1021 = vperm.xlu1 %5409, %v5883_v48   ;;  %2615 = vrot.lane.b32.xlu0 %v6002_v15, %s5669_s0 }
 0x13c   :  { %v6059_v30 = vpop.permute.xlu1 %346  ;;  %v6061_v31 = vpop.permute.xlu0 %969 }
 0x13d   :  { %8108 = vst [vmem:[#allocation18_spill] sm:$0xff] %v6061_v31  ;;  %v6081_v31 = vpop.permute.xlu2 %318 }
 0x140   :  { %2601 = vrot.lane.b32.xlu2 %v5917_v56, %s5669_s0 }
 0x142   :  { %2589 = vrot.lane.b32.xlu1 %v5852_v40, %s5669_s0  ;;  %2621 = vrot.lane.b32.xlu0 %v5873_v46, %s5669_s0 }
 0x143   :  { %5412 = vset.pattern.permute.xlu1 %v5670_v26 }
 0x144   :  { %v6071_v33 = vpop.permute.xlu1 %925  ;;  %v6073_v27 = vpop.permute.xlu0 %314 }
 0x145   :  { %8110 = vst [vmem:[#allocation20_spill] sm:$0xff] %v6071_v33  ;;  %v6093_v25 = vpop.permute.xlu2 %977 }
 0x146   :  { %8112 = vst [vmem:[#allocation22_spill] sm:$0xff] %v6093_v25 }
 0x148   :  { %2607 = vrot.lane.b32.xlu2 %v5940_v61, %s5669_s0 }
 0x14a   :  { %2591 = vrot.lane.b32.xlu1 %v5863_v43, %s5669_s0  ;;  %2627 = vrot.lane.b32.xlu0 %v5843_v38, %s5669_s0 }
 0x14c   :  { %v6083_v32 = vpop.permute.xlu1 %358  ;;  %v6085_v33 = vpop.permute.xlu0 %945 }
 0x14d   :  { %8111 = vst [vmem:[#allocation21_spill] sm:$0xff] %v6085_v33  ;;  %v6105_v26 = vpop.permute.xlu2 %953 }
 0x14e   :  { %8114 = vst [vmem:[#allocation24_spill] sm:$0xff] %v6105_v26 }
 0x150   :  { %2613 = vrot.lane.b32.xlu2 %v5971_v5, %s5669_s0 }
 0x152   :  { %2595 = vrot.lane.b32.xlu1 %v5887_v49, %s5669_s0  ;;  %2633 = vrot.lane.b32.xlu0 %v5894_v51, %s5669_s0 }
 0x154   :  { %v6095_v19 = vpop.permute.xlu1 %310  ;;  %v6097_v2 = vpop.permute.xlu0 %981 }
 0x155   :  { %8113 = vst [vmem:[#allocation23_spill] sm:$0xff] %v6097_v2  ;;  %v6119_v25 = vpop.permute.xlu2 %324 }
 0x156   :  { %8116 = vst [vmem:[#allocation26_spill] sm:$0xff] %v6119_v25 }
 0x158   :  { %2619 = vrot.lane.b32.xlu2 %v5848_v39, %s5669_s0 }
 0x15a   :  { %2599 = vrot.lane.b32.xlu1 %v5910_v55, %s5669_s0  ;;  %2639 = vrot.lane.b32.xlu0 %v5856_v42, %s5669_s0 }
 0x15c   :  { %v6107_v33 = vpop.permute.xlu1 %929  ;;  %v6109_v7 = vpop.permute.xlu0 %320 }
 0x15d   :  { %8115 = vst [vmem:[#allocation25_spill] sm:$0xff] %v6107_v33  ;;  %v6133_v33 = vpop.permute.xlu2 %989 }
 0x15e   :  { %8119 = vst [vmem:[#allocation29_spill] sm:$0xff] %v6133_v33 }
 0x160   :  { %2625 = vrot.lane.b32.xlu2 %v5904_v53, %s5669_s0 }
 0x162   :  { %2605 = vrot.lane.b32.xlu1 %v5932_v59, %s5669_s0  ;;  %2645 = vrot.lane.b32.xlu0 %v5906_v54, %s5669_s0 }
 0x164   :  { %v6121_v2 = vpop.permute.xlu1 %937  ;;  %v6123_v26 = vpop.permute.xlu0 %957 }
 0x165   :  { %8117 = vst [vmem:[#allocation27_spill] sm:$0xff] %v6121_v2 }
 0x166   :  { %8118 = vst [vmem:[#allocation28_spill] sm:$0xff] %v6123_v26  ;;  %v6144_v26 = vpop.permute.xlu2 %1001 }
 0x167   :  { %8121 = vst [vmem:[#allocation31_spill] sm:$0xff] %v6144_v26 }
 0x168   :  { %2631 = vrot.lane.b32.xlu2 %v5871_v45, %s5669_s0 }
 0x16a   :  { %2611 = vrot.lane.b32.xlu1 %v5960_v1, %s5669_s0  ;;  %3198 = vperm.xlu0 %5413, %v5841_v37  }
 0x16c   :  { %v6135_v12 = vpop.permute.xlu1 %316  ;;  %v6137_v2 = vpop.permute.xlu0 %993 }
 0x16d   :  { %8120 = vst [vmem:[#allocation30_spill] sm:$0xff] %v6137_v2 }
 0x16e   :  { %v6154_v33 = vpop.permute.xlu2 %1013 }
 0x16f   :  { %8124 = vst [vmem:[#allocation34_spill] sm:$0xff] %v6154_v33 }
 0x170   :  { %2637 = vrot.lane.b32.xlu2 %v5837_v36, %s5669_s0 }
 0x172   :  { %2617 = vrot.lane.b32.xlu1 %v5831_v35, %s5669_s0  ;;  %3226 = vperm.xlu0 %5413, %v5917_v56  }
 0x174   :  { %v6146_v63 = vpop.permute.xlu1 %949  ;;  %v6148_v8 = vpop.permute.xlu0 %1005 }
 0x175   :  { %8122 = vst [vmem:[#allocation32_spill] sm:$0xff] %v6146_v63 }
 0x176   :  { %8123 = vst [vmem:[#allocation33_spill] sm:$0xff] %v6148_v8  ;;  %v6165_v26 = vpop.permute.xlu2 %965 }
 0x177   :  { %8127 = vst [vmem:[#allocation37_spill] sm:$0xff] %v6165_v26 }
 0x178   :  { %2643 = vrot.lane.b32.xlu2 %v5883_v48, %s5669_s0 }
 0x17a   :  { %2623 = vrot.lane.b32.xlu1 %v5892_v50, %s5669_s0  ;;  %3238 = vperm.xlu0 %5413, %v5940_v61  }
 0x17c   :  { %v6156_v2 = vpop.permute.xlu1 %973  ;;  %v6158_v18 = vpop.permute.xlu0 %1017 }
 0x17d   :  { %8125 = vst [vmem:[#allocation35_spill] sm:$0xff] %v6156_v2 }
 0x17e   :  { %8126 = vst [vmem:[#allocation36_spill] sm:$0xff] %v6158_v18  ;;  %v6179_v33 = vpop.permute.xlu2 %1025 }
 0x17f   :  { %8129 = vst [vmem:[#allocation39_spill] sm:$0xff] %v6179_v33 }
 0x180   :  { %3202 = vperm.xlu2 %5414, %v5852_v40  }
 0x182   :  { %2629 = vrot.lane.b32.xlu1 %v5854_v41, %s5669_s0  ;;  %3250 = vperm.xlu0 %5413, %v5971_v5  }
 0x184   :  { %v6167_v8 = vpop.permute.xlu1 %322  ;;  %v6169_v63 = vpop.permute.xlu0 %326 }
 0x185   :  { %8128 = vst [vmem:[#allocation38_spill] sm:$0xff] %v6169_v63 }
 0x186   :  { %v6189_v2 = vpop.permute.xlu2 %2585 }
 0x187   :  { %8132 = vst [vmem:[#allocation42_spill] sm:$0xff] %v6189_v2 }
 0x188   :  { %3222 = vperm.xlu2 %5414, %v5910_v55  }
 0x18a   :  { %2635 = vrot.lane.b32.xlu1 %v5922_v57, %s5669_s0  ;;  %3262 = vperm.xlu0 %5413, %v5848_v39  }
 0x18c   :  { %v6181_v18 = vpop.permute.xlu1 %961  ;;  %v6183_v26 = vpop.permute.xlu0 %1029 }
 0x18d   :  { %8130 = vst [vmem:[#allocation40_spill] sm:$0xff] %v6181_v18 }
 0x18e   :  { %8131 = vst [vmem:[#allocation41_spill] sm:$0xff] %v6183_v26  ;;  %v6199_v33 = vpop.permute.xlu2 %2593 }
 0x18f   :  { %8135 = vst [vmem:[#allocation45_spill] sm:$0xff] %v6199_v33 }
 0x190   :  { %3234 = vperm.xlu2 %5414, %v5932_v59  }
 0x192   :  { %2641 = vrot.lane.b32.xlu1 %v5869_v44, %s5669_s0  ;;  %3274 = vperm.xlu0 %5413, %v5904_v53  }
 0x194   :  { %v6191_v63 = vpop.permute.xlu1 %985  ;;  %v6193_v25 = vpop.permute.xlu0 %2587 }
 0x195   :  { %8133 = vst [vmem:[#allocation43_spill] sm:$0xff] %v6191_v63 }
 0x196   :  { %8134 = vst [vmem:[#allocation44_spill] sm:$0xff] %v6193_v25  ;;  %v6212_v63 = vpop.permute.xlu2 %2597 }
 0x197   :  { %8138 = vst [vmem:[#allocation48_spill] sm:$0xff] %v6212_v63 }
 0x198   :  { %3246 = vperm.xlu2 %5414, %v5960_v1  }
 0x19a   :  { %2647 = vrot.lane.b32.xlu1 %v5937_v60, %s5669_s0  ;;  %3595 = vrot.lane.b32.xlu0 %v5841_v37, %s5671_s22 }
 0x19c   :  { %v6201_v26 = vpop.permute.xlu1 %997  ;;  %v6203_v18 = vpop.permute.xlu0 %2603 }
 0x19d   :  { %8136 = vst [vmem:[#allocation46_spill] sm:$0xff] %v6201_v26 }
 0x19e   :  { %8137 = vst [vmem:[#allocation47_spill] sm:$0xff] %v6203_v18  ;;  %v6226_v26 = vpop.permute.xlu2 %2601 }
 0x19f   :  { %8141 = vst [vmem:[#allocation51_spill] sm:$0xff] %v6226_v26 }
 0x1a0   :  { %3258 = vperm.xlu2 %5414, %v5831_v35  }
 0x1a2   :  { %3194 = vperm.xlu1 %5412, %v5829_v34   ;;  %3599 = vrot.lane.b32.xlu0 %v5863_v43, %s5671_s22 }
 0x1a4   :  { %v6214_v25 = vpop.permute.xlu1 %1009  ;;  %v6216_v33 = vpop.permute.xlu0 %2609 }
 0x1a5   :  { %8139 = vst [vmem:[#allocation49_spill] sm:$0xff] %v6214_v25 }
 0x1a6   :  { %8140 = vst [vmem:[#allocation50_spill] sm:$0xff] %v6216_v33  ;;  %v6237_v33 = vpop.permute.xlu2 %2607 }
 0x1a7   :  { %8144 = vst [vmem:[#allocation54_spill] sm:$0xff] %v6237_v33 }
 0x1a8   :  { %3270 = vperm.xlu2 %5414, %v5892_v50  }
 0x1aa   :  { %3206 = vperm.xlu1 %5412, %v5863_v43   ;;  %3609 = vrot.lane.b32.xlu0 %v5917_v56, %s5671_s22 }
 0x1ac   :  { %v6228_v18 = vpop.permute.xlu1 %1021  ;;  %v6230_v25 = vpop.permute.xlu0 %2615 }
 0x1ad   :  { %8142 = vst [vmem:[#allocation52_spill] sm:$0xff] %v6228_v18 }
 0x1ae   :  { %8143 = vst [vmem:[#allocation53_spill] sm:$0xff] %v6230_v25  ;;  %v6247_v18 = vpop.permute.xlu2 %2613 }
 0x1af   :  { %8147 = vst [vmem:[#allocation57_spill] sm:$0xff] %v6247_v18 }
 0x1b0   :  { %3593 = vrot.lane.b32.xlu2 %v5829_v34, %s5671_s22 }
 0x1b2   :  { %3210 = vperm.xlu1 %5412, %v5877_v47   ;;  %3611 = vrot.lane.b32.xlu0 %v5925_v58, %s5671_s22 }
 0x1b4   :  { %v6239_v63 = vpop.permute.xlu1 %2589  ;;  %v6241_v2 = vpop.permute.xlu0 %2621 }
 0x1b5   :  { %8145 = vst [vmem:[#allocation55_spill] sm:$0xff] %v6239_v63 }
 0x1b6   :  { %8146 = vst [vmem:[#allocation56_spill] sm:$0xff] %v6241_v2  ;;  %v6259_v2 = vpop.permute.xlu2 %2619 }
 0x1b7   :  { %8149 = vst [vmem:[#allocation59_spill] sm:$0xff] %v6259_v2 }
 0x1b8   :  { %3605 = vrot.lane.b32.xlu2 %v5898_v52, %s5671_s22 }
 0x1ba   :  { %3214 = vperm.xlu1 %5412, %v5887_v49   ;;  %3621 = vrot.lane.b32.xlu0 %v5971_v5, %s5671_s22 }
 0x1bc   :  { %v6249_v25 = vpop.permute.xlu1 %2591  ;;  %v6251_v26 = vpop.permute.xlu0 %2627 }
 0x1bd   :  { %8148 = vst [vmem:[#allocation58_spill] sm:$0xff] %v6251_v26 }
 0x1be   :  { %v6272_v26 = vpop.permute.xlu2 %2625 }
 0x1bf   :  { %8152 = vst [vmem:[#allocation62_spill] sm:$0xff] %v6272_v26 }
 0x1c0   :  { %3601 = vrot.lane.b32.xlu2 %v5877_v47, %s5671_s22 }
 0x1c2   :  { %3218 = vperm.xlu1 %5412, %v5898_v52   ;;  %3623 = vrot.lane.b32.xlu0 %v6002_v15, %s5671_s22 }
 0x1c4   :  { %v6261_v33 = vpop.permute.xlu1 %2595  ;;  %v6263_v63 = vpop.permute.xlu0 %2633 }
 0x1c5   :  { %8150 = vst [vmem:[#allocation60_spill] sm:$0xff] %v6261_v33 }
 0x1c6   :  { %8151 = vst [vmem:[#allocation61_spill] sm:$0xff] %v6263_v63  ;;  %v6283_v33 = vpop.permute.xlu2 %2631 }
 0x1c7   :  { %8155 = vst [vmem:[#allocation65_spill] sm:$0xff] %v6283_v33 }
 0x1c8   :  { %3617 = vrot.lane.b32.xlu2 %v5947_v62, %s5671_s22 }
 0x1ca   :  { %3230 = vperm.xlu1 %5412, %v5925_v58   ;;  %3625 = vrot.lane.b32.xlu0 %v5831_v35, %s5671_s22 }
 0x1cc   :  { %v6274_v18 = vpop.permute.xlu1 %2599  ;;  %v6276_v2 = vpop.permute.xlu0 %2639 }
 0x1cd   :  { %8153 = vst [vmem:[#allocation63_spill] sm:$0xff] %v6274_v18 }
 0x1ce   :  { %8154 = vst [vmem:[#allocation64_spill] sm:$0xff] %v6276_v2  ;;  %v6294_v2 = vpop.permute.xlu2 %2637 }
 0x1cf   :  { %8158 = vst [vmem:[#allocation68_spill] sm:$0xff] %v6294_v2 }
 0x1d0   :  { %3613 = vrot.lane.b32.xlu2 %v5932_v59, %s5671_s22 }
 0x1d2   :  { %3242 = vperm.xlu1 %5412, %v5947_v62   ;;  %3286 = vperm.xlu0 %5413, %v5871_v45  }
 0x1d4   :  { %v6285_v63 = vpop.permute.xlu1 %2605 }
 0x1d5   :  { %8156 = vst [vmem:[#allocation66_spill] sm:$0xff] %v6285_v63 }
 0x1d8   :  { %3629 = vrot.lane.b32.xlu2 %v5873_v46, %s5671_s22 }
 0x1da   :  { %3254 = vperm.xlu1 %5412, %v6002_v15   ;;  %3302 = vperm.xlu0 %5413, %v5856_v42  }
 0x1dc   :  { %v6296_v26 = vpop.permute.xlu1 %2611 }
 0x1dd   :  { %8159 = vst [vmem:[#allocation69_spill] sm:$0xff] %v6296_v26 }
 0x1e0   :  { %3631 = vrot.lane.b32.xlu2 %v5892_v50, %s5671_s22  ;;  %v6287_v50 = vpop.permute.xlu0 %2645 }
 0x1e1   :  { %8157 = vst [vmem:[#allocation67_spill] sm:$0xff] %v6287_v50  ;;  %v6305_v50 = vpop.permute.xlu2 %2643 }
 0x1e2   :  { %3266 = vperm.xlu1 %5412, %v5873_v46   ;;  %3643 = vrot.lane.b32.xlu0 %v5922_v57, %s5671_s22  ;;  %8161 = vst [vmem:[#allocation71_spill] sm:$0xff] %v6305_v50 }
 0x1e4   :  { %v6307_v33 = vpop.permute.xlu1 %2617 }
 0x1e5   :  { %8162 = vst [vmem:[#allocation72_spill] sm:$0xff] %v6307_v33 }
 0x1e8   :  { %3290 = vperm.xlu2 %5414, %v5894_v51   ;;  %v6298_v18 = vpop.permute.xlu0 %3198 }
 0x1e9   :  { %8160 = vst [vmem:[#allocation70_spill] sm:$0xff] %v6298_v18  ;;  %v6319_v18 = vpop.permute.xlu2 %3202 }
 0x1ea   :  { %3278 = vperm.xlu1 %5412, %v5843_v38   ;;  %3637 = vrot.lane.b32.xlu0 %v5854_v41, %s5671_s22  ;;  %8164 = vst [vmem:[#allocation74_spill] sm:$0xff] %v6319_v18 }
 0x1ec   :  { %v6321_v2 = vpop.permute.xlu1 %2623 }
 0x1f0   :  { %3641 = vrot.lane.b32.xlu2 %v5894_v51, %s5671_s22  ;;  %v6309_v63 = vpop.permute.xlu0 %3226 }
 0x1f1   :  { %8163 = vst [vmem:[#allocation73_spill] sm:$0xff] %v6309_v63  ;;  %v6326_v63 = vpop.permute.xlu2 %3222 }
 0x1f2   :  { %3597 = vrot.lane.b32.xlu1 %v5852_v40, %s5671_s22  ;;  %3310 = vperm.xlu0 %5413, %v5883_v48   ;;  %8166 = vst [vmem:[#allocation76_spill] sm:$0xff] %v6326_v63 }
 0x1f4   :  { %v6328_v33 = vpop.permute.xlu1 %2629 }
 0x1f5   :  { %8167 = vst [vmem:[#allocation77_spill] sm:$0xff] %v6328_v33 }
 0x1f8   :  { %3318 = vperm.xlu2 %5414, %v5937_v60   ;;  %v6323_v50 = vpop.permute.xlu0 %3238 }
 0x1f9   :  { %8165 = vst [vmem:[#allocation75_spill] sm:$0xff] %v6323_v50 }
 0x1fa   :  { %3607 = vrot.lane.b32.xlu1 %v5910_v55, %s5671_s22  ;;  %3647 = vrot.lane.b32.xlu0 %v5856_v42, %s5671_s22 }
 0x1fc   :  { %v6336_v51 = vpop.permute.xlu1 %2635 }
 0x200   :  { %3298 = vperm.xlu2 %5414, %v5837_v36   ;;  %v6330_v26 = vpop.permute.xlu0 %3250 }
 0x201   :  { %8168 = vst [vmem:[#allocation78_spill] sm:$0xff] %v6330_v26 }
 0x202   :  { %3603 = vrot.lane.b32.xlu1 %v5887_v49, %s5671_s22  ;;  %3306 = vperm.xlu0 %5413, %v5869_v44  }
 0x204   :  { %v6345_v63 = vpop.permute.xlu1 %2641 }
 0x208   :  { %3314 = vperm.xlu2 %5414, %v5906_v54   ;;  %v6338_v18 = vpop.permute.xlu0 %3262 }
 0x209   :  { %8170 = vst [vmem:[#allocation80_spill] sm:$0xff] %v6338_v18 }
 0x20a   :  { %3619 = vrot.lane.b32.xlu1 %v5960_v1, %s5671_s22  ;;  %3651 = vrot.lane.b32.xlu0 %v5883_v48, %s5671_s22 }
 0x20c   :  { %v6356_v18 = vpop.permute.xlu1 %2647 }
 0x210   :  { %3653 = vrot.lane.b32.xlu2 %v5906_v54, %s5671_s22  ;;  %v6334_v54 = vpop.permute.xlu2 %3234  ;;  %v6347_v33 = vpop.permute.xlu0 %3274 }
 0x211   :  { %8169 = vst [vmem:[#allocation79_spill] sm:$0xff] %v6334_v54 }
 0x212   :  { %3615 = vrot.lane.b32.xlu1 %v5940_v61, %s5671_s22  ;;  %8172 = vst [vmem:[#allocation82_spill] sm:$0xff] %v6347_v33 }
 0x218   :  { %v6343_v50 = vpop.permute.xlu2 %3246 }
 0x219   :  { %8171 = vst [vmem:[#allocation81_spill] sm:$0xff] %v6343_v50 }
 0x21a   :  { %3294 = vperm.xlu1 %5412, %v5922_v57  }
 0x220   :  { %v6354_v26 = vpop.permute.xlu2 %3258 }
 0x221   :  { %8173 = vst [vmem:[#allocation83_spill] sm:$0xff] %v6354_v26 }
 0x222   :  { %3633 = vrot.lane.b32.xlu1 %v5904_v53, %s5671_s22 }
 0x22a   :  { %3627 = vrot.lane.b32.xlu1 %v5848_v39, %s5671_s22 }
 0x22c   :  { %424 = vxpose.xlu0.b32.start [1/2] (short) (narrow) %v5998_v13, 8  ;;  %v6358_v13 = vpop.permute.xlu0 %3595 }
 0x232   :  { %3635 = vrot.lane.b32.xlu1 %v5843_v38, %s5671_s22 }
 0x234   :  { %425 = vxpose.xlu0.b32.end [2/2] (short) (narrow) %v6020_v20, 8  ;;  %v6365_v20 = vpop.permute.xlu2 %3270  ;;  %v6369_v33 = vpop.permute.xlu0 %3599 }
 0x235   :  { %8174 = vst [vmem:[#allocation84_spill] sm:$0xff] %v6365_v20 }
 0x236   :  { %392 = vxpose.xlu2.b32.start [1/2] (short) (narrow) %v5967_v3, 8  ;;  %v6367_v3 = vpop.permute.xlu1 %3194 }
 0x23a   :  { %3282 = vperm.xlu1 %5412, %v5854_v41  }
 0x23c   :  { %520 = vxpose.xlu0.b32.start [1/2] (short) (narrow) %v6052_v29, 8 }
 0x23e   :  { %393 = vxpose.xlu2.b32.end [2/2] (short) (narrow) %v5989_v10, 8  ;;  %v6376_v10 = vpop.permute.xlu2 %3593  ;;  %v6378_v29 = vpop.permute.xlu1 %3206 }
 0x23f   :  { %8175 = vst [vmem:[#allocation85_spill] sm:$0xff] %v6378_v29 }
 0x242   :  { %3645 = vrot.lane.b32.xlu1 %v5837_v36, %s5671_s22 }
 0x244   :  { %521 = vxpose.xlu0.b32.end [2/2] (short) (narrow) %v6073_v27, 8  ;;  %v6380_v27 = vpop.permute.xlu0 %3609 }
 0x246   :  { %488 = vxpose.xlu2.b32.start [1/2] (short) (narrow) %v6050_v28, 8  ;;  %v6386_v28 = vpop.permute.xlu2 %3605  ;;  %v6388_v26 = vpop.permute.xlu1 %3210 }
 0x247   :  { %8176 = vst [vmem:[#allocation86_spill] sm:$0xff] %v6388_v26 }
 0x24a   :  { %3639 = vrot.lane.b32.xlu1 %v5871_v45, %s5671_s22 }
 0x24c   :  { %584 = vxpose.xlu0.b32.start [1/2] (short) (narrow) %v6109_v7, 8  ;;  %v6390_v7 = vpop.permute.xlu0 %3611 }
 0x24e   :  { %489 = vxpose.xlu2.b32.end [2/2] (short) (narrow) %v6095_v19, 8  ;;  %v6396_v19 = vpop.permute.xlu2 %3601  ;;  %v6398_v20 = vpop.permute.xlu1 %3214 }
 0x24f   :  { %8177 = vst [vmem:[#allocation87_spill] sm:$0xff] %v6398_v20 }
 0x252   :  { %3655 = vrot.lane.b32.xlu1 %v5937_v60, %s5671_s22 }
 0x254   :  { %585 = vxpose.xlu0.b32.end [2/2] (short) (narrow) %v6167_v8, 8  ;;  %v6400_v8 = vpop.permute.xlu0 %3621 }
 0x256   :  { %552 = vxpose.xlu2.b32.start [1/2] (short) (narrow) %v6135_v12, 8  ;;  %v6405_v12 = vpop.permute.xlu2 %3617  ;;  %v6407_v54 = vpop.permute.xlu1 %3218 }
 0x257   :  { %8178 = vst [vmem:[#allocation88_spill] sm:$0xff] %v6407_v54 }
 0x25a   :  { %3649 = vrot.lane.b32.xlu1 %v5869_v44, %s5671_s22 }
 0x25c   :  { %680 = vxpose.xlu0.b32.start [1/2] (short) (narrow) %v6009_v16, 8  ;;  %v6409_v26 = vpop.permute.xlu0 %3623 }
 0x25e   :  { %553 = vxpose.xlu2.b32.end [2/2] (short) (narrow) %v6081_v31, 8  ;;  %v6414_v16 = vpop.permute.xlu2 %3613  ;;  %v6416_v31 = vpop.permute.xlu1 %3230 }
 0x264   :  { %681 = vxpose.xlu0.b32.end [2/2] (short) (narrow) %v6030_v23, 8  ;;  %v6418_v23 = vpop.permute.xlu0 %3625 }
 0x266   :  { %648 = vxpose.xlu2.b32.start [1/2] (short) (narrow) %v5969_v4, 8  ;;  %v6422_v4 = vpop.permute.xlu2 %3629 }
 0x26c   :  { %776 = vxpose.xlu0.b32.start [1/2] (short) (narrow) %v6028_v22, 8  ;;  %v6424_v22 = vpop.permute.xlu1 %3242  ;;  %v6426_v20 = vpop.permute.xlu0 %3286 }
 0x26d   :  { %8179 = vst [vmem:[#allocation89_spill] sm:$0xff] %v6424_v22 }
 0x26e   :  { %649 = vxpose.xlu2.b32.end [2/2] (short) (narrow) %v5955_v0, 8  ;;  %8180 = vst [vmem:[#allocation90_spill] sm:$0xff] %v6426_v20  ;;  %v6430_v0 = vpop.permute.xlu2 %3631  ;;  %v1306_v20 = vsel %vm48_vm1, %v5852_v40, 1.0 }
 0x274   :  { %777 = vxpose.xlu0.b32.end [2/2] (short) (narrow) %v6059_v30, 8  ;;  %v1308_v30 = vsel %vm48_vm1, %v5877_v47, 1.0  ;;  %v1310_v47 = vsel %vm48_vm1, %v5898_v52, 1.0  ;;  %v1312_v52 = vsel %vm48_vm1, %v5917_v56, 1.0 }
 0x276   :  { %744 = vxpose.xlu2.b32.start [1/2] (short) (narrow) %v5987_v9, 8  ;;  %v6432_v9 = vpop.permute.xlu1 %3254 }
 0x277   :  { %8181 = vst [vmem:[#allocation91_spill] sm:$0xff] %v6432_v9 }
 0x27c   :  { %872 = vxpose.xlu0.b32.start [1/2] (short) (narrow) %v6037_v24, 8  ;;  %v6436_v24 = vpop.permute.xlu0 %3302 }
 0x27d   :  { %8182 = vst [vmem:[#allocation92_spill] sm:$0xff] %v6436_v24 }
 0x27e   :  { %745 = vxpose.xlu2.b32.end [2/2] (short) (narrow) %v5978_v6, 8  ;;  %v1309_v6 = vsel %vm48_vm1, %v5887_v49, 1.0  ;;  %v1307_v49 = vsel %vm48_vm1, %v5863_v43, 1.0 }
 0x284   :  { %873 = vxpose.xlu0.b32.end [2/2] (short) (narrow) %v6083_v32, 8  ;;  %v6442_v32 = vpop.permute.xlu2 %3290  ;;  %v6448_v9 = vpop.permute.xlu0 %3643 }
 0x285   :  { %8183 = vst [vmem:[#allocation93_spill] sm:$0xff] %v6442_v32 }
 0x286   :  { %840 = vxpose.xlu2.b32.start [1/2] (short) (narrow) %v6011_v17, 8  ;;  %v6444_v17 = vpop.permute.xlu1 %3266 }
 0x287   :  { %8184 = vst [vmem:[#allocation94_spill] sm:$0xff] %v6444_v17 }
 0x28c   :  { %1400 = vxpose.xlu0.b32.start [1/2] (short) (narrow) %v1308_v30, 8  ;;  %v8186_v30 = vld [vmem:[#allocation26_spill] sm:$0xff]  ;;  %v6460_v40 = vpop.permute.xlu0 %3637 }
 0x28e   :  { %841 = vxpose.xlu2.b32.end [2/2] (short) (narrow) %v5991_v11, 8  ;;  %v6455_v11 = vpop.permute.xlu2 %3641 }
 0x28f   :  { %456 = vxpose.xlu1.b32.start [1/2] (short) (narrow) %v6000_v14, 8  ;;  %v6457_v14 = vpop.permute.xlu1 %3278 }
 0x290   :  { %8185 = vst [vmem:[#allocation95_spill] sm:$0xff] %v6457_v14  ;;  %v8203_v14 = vld [vmem:[#allocation15_spill] sm:$0xff] }
 0x294   :  { %1401 = vxpose.xlu0.b32.end [2/2] (short) (narrow) %v1309_v6, 8 }
 0x296   :  { %1368 = vxpose.xlu2.b32.start [1/2] (short) (narrow) %v1306_v20, 8  ;;  %v1311_v20 = vsel %vm48_vm1, %v5910_v55, 1.0  ;;  %v6467_v43 = vpop.permute.xlu2 %3318  ;;  %v1313_v55 = vsel %vm48_vm1, %v5925_v58, 1.0  ;;  %v1320_v58 = vsel %vm48_vm1, %v5831_v35, 1.0  ;;  %v1324_v35 = vsel %vm48_vm1, %v5904_v53, 1.0 }
 0x297   :  { %457 = vxpose.xlu1.b32.end [2/2] (short) (narrow) %v6026_v21, 8  ;;  %v8187_v21 = vld [vmem:[#allocation38_spill] sm:$0xff]  ;;  %8188 = vst [vmem:[#allocation26_spill] sm:$0xff] %v6467_v43  ;;  %v6469_v6 = vpop.permute.xlu1 %3597  ;;  %v1304_v53 = vsel %vm48_vm1, %v5829_v34, 1.0  ;;  %v1330_v34 = vsel %vm48_vm1, %v5837_v36, 1.0 }
 0x29c   :  { %1432 = vxpose.xlu0.b32.start [1/2] (short) (narrow) %v1310_v47, 8  ;;  %v6471_v47 = vpop.permute.xlu0 %3310 }
 0x29d   :  { %8189 = vst [vmem:[#allocation38_spill] sm:$0xff] %v6471_v47 }
 0x29e   :  { %1369 = vxpose.xlu2.b32.end [2/2] (short) (narrow) %v1307_v49, 8  ;;  %v1314_v49 = vsel %vm48_vm1, %v5932_v59, 1.0  ;;  %v6478_v56 = vpop.permute.xlu2 %3298  ;;  %v1318_v59 = vsel %vm48_vm1, %v5971_v5, 1.0  ;;  %v1321_v5 = vsel %vm48_vm1, %v5848_v39, 1.0  ;;  %v1325_v39 = vsel %vm48_vm1, %v5843_v38, 1.0 }
 0x29f   :  { %616 = vxpose.xlu1.b32.start [1/2] (short) (narrow) %v8186_v30, 8  ;;  %v8190_v30 = vld [vmem:[#allocation13_spill] sm:$0xff]  ;;  %v1327_v38 = vsel %vm48_vm1, %v5871_v45, 1.0 }
 0x2a0   :  { %8191 = vst [vmem:[#allocation13_spill] sm:$0xff] %v6478_v56  ;;  %v8200_v56 = vld [vmem:[#allocation10_spill] sm:$0xff] }
 0x2a4   :  { %1433 = vxpose.xlu0.b32.end [2/2] (short) (narrow) %v1311_v20, 8  ;;  %v6480_v20 = vpop.permute.xlu1 %3607 }
 0x2a6   :  { %1464 = vxpose.xlu2.b32.start [1/2] (short) (narrow) %v1312_v52, 8  ;;  %v1315_v52 = vsel %vm48_vm1, %v5940_v61, 1.0  ;;  %v1319_v61 = vsel %vm48_vm1, %v6002_v15, 1.0 }
 0x2a7   :  { %617 = vxpose.xlu1.b32.end [2/2] (short) (narrow) %v8187_v21, 8  ;;  %v6484_v21 = vpop.permute.xlu0 %3647 }
 0x2a8   :  { %8192 = vst [vmem:[#allocation96_spill] sm:$0xff] %v6484_v21 }
 0x2ac   :  { %1496 = vxpose.xlu0.b32.start [1/2] (short) (narrow) %v1314_v49, 8  ;;  %v8193_v49 = vld [vmem:[#allocation11_spill] sm:$0xff] }
 0x2ae   :  { %1465 = vxpose.xlu2.b32.end [2/2] (short) (narrow) %v1313_v55, 8  ;;  %v6491_v55 = vpop.permute.xlu2 %3314 }
 0x2af   :  { %712 = vxpose.xlu1.b32.start [1/2] (short) (narrow) %v8190_v30, 8  ;;  %8194 = vst [vmem:[#allocation11_spill] sm:$0xff] %v6491_v55  ;;  %v6493_v30 = vpop.permute.xlu1 %3603  ;;  %v6497_v47 = vpop.permute.xlu0 %3306  ;;  %v8201_v55 = vld [vmem:[#allocation9_spill] sm:$0xff] }
 0x2b0   :  { %8195 = vst [vmem:[#allocation97_spill] sm:$0xff] %v6497_v47 }
 0x2b4   :  { %1497 = vxpose.xlu0.b32.end [2/2] (short) (narrow) %v1315_v52, 8  ;;  %v8196_v52 = vld [vmem:[#allocation8_spill] sm:$0xff] }
 0x2b6   :  { %1560 = vxpose.xlu2.b32.start [1/2] (short) (narrow) %v1318_v59, 8  ;;  %v6504_v59 = vpop.permute.xlu2 %3653 }
 0x2b7   :  { %713 = vxpose.xlu1.b32.end [2/2] (short) (narrow) %v8193_v49, 8  ;;  %8197 = vst [vmem:[#allocation8_spill] sm:$0xff] %v6504_v59  ;;  %v6506_v49 = vpop.permute.xlu1 %3619  ;;  %v6509_v15 = vpop.permute.xlu0 %3651 }
 0x2bc   :  { %1592 = vxpose.xlu0.b32.start [1/2] (short) (narrow) %v1320_v58, 8  ;;  %v8198_v58 = vld [vmem:[#allocation12_spill] sm:$0xff] }
 0x2bd   :  { %8199 = vst [vmem:[#allocation12_spill] sm:$0xff] %v6509_v15 }
 0x2be   :  { %1561 = vxpose.xlu2.b32.end [2/2] (short) (narrow) %v1319_v61, 8  ;;  %v1326_v61 = vsel %vm48_vm1, %v5854_v41, 1.0  ;;  %v8202_v41 = vld [vmem:[#allocation14_spill] sm:$0xff] }
 0x2bf   :  { %808 = vxpose.xlu1.b32.start [1/2] (short) (narrow) %v8196_v52, 8  ;;  %v6517_v47 = vpop.permute.xlu1 %3615 }
 0x2c4   :  { %1593 = vxpose.xlu0.b32.end [2/2] (short) (narrow) %v1321_v5, 8 }
 0x2c6   :  { %1656 = vxpose.xlu2.b32.start [1/2] (short) (narrow) %v1324_v35, 8 }
 0x2c7   :  { %809 = vxpose.xlu1.b32.end [2/2] (short) (narrow) %v8198_v58, 8  ;;  %v6529_v15 = vpop.permute.xlu1 %3294 }
 0x2c8   :  { %8204 = vst [vmem:[#allocation10_spill] sm:$0xff] %v6529_v15 }
 0x2cc   :  { %1688 = vxpose.xlu0.b32.start [1/2] (short) (narrow) %v1326_v61, 8 }
 0x2ce   :  { %1657 = vxpose.xlu2.b32.end [2/2] (short) (narrow) %v1325_v39, 8 }
 0x2cf   :  { %v408_v52 = vpop.trf.xlu2  ;;  %1336 = vxpose.xlu1.b32.start [1/2] (short) (narrow) %v1304_v53, 8 }
 0x2d0   :  { %v1032_v5 = vperm.slane %v408_v52, 0  ;;  %v440_v35 = vpop.trf.xlu0 }
 0x2d1   :  { %v1033_v58 = vperm.slane %v440_v35, 0 }
 0x2d2   :  { %v1048_v24 = vadd.f32 %v1032_v5, %v8200_v56  ;;  %v1049_v43 = vadd.f32 %v1032_v5, %v8201_v55 }
 0x2d3   :  { %v1050_v61 = vadd.f32 %v1033_v58, %v8202_v41  ;;  %v1051_v32 = vadd.f32 %v1033_v58, %v8203_v14  ;;  %v1305_v14 = vsel %vm48_vm1, %v5841_v37, 1.0  ;;  %v1331_v37 = vsel %vm48_vm1, %v5856_v42, 1.0 }
 0x2d4   :  { %vm1080_vm2 = vcmp.gt.f32.partialorder %v1048_v24, 0.0  ;;  %vm1081_vm3 = vcmp.gt.f32.partialorder %v1049_v43, 0.0  ;;  %v1112_v39 = vmul.f32 0.2, %v1048_v24  ;;  %v1113_v53 = vmul.f32 0.2, %v1049_v43 }
 0x2d5   :  { %vm1082_vm4 = vcmp.gt.f32.partialorder %v1050_v61, 0.0  ;;  %vm1083_vm5 = vcmp.gt.f32.partialorder %v1051_v32, 0.0  ;;  %v1114_v52 = vmul.f32 0.2, %v1050_v61  ;;  %v1115_v56 = vmul.f32 0.2, %v1051_v32 }
 0x2d6   :  { %v1144_v35 = vsel %vm1080_vm2, %v1048_v24, %v1112_v39  ;;  %v1145_v55 = vsel %vm1081_vm3, %v1049_v43, %v1113_v53  ;;  %1689 = vxpose.xlu0.b32.end [2/2] (short) (narrow) %v1327_v38, 8  ;;  %1752 = vxpose.xlu2.b32.start [1/2] (short) (narrow) %v1330_v34, 8  ;;  %v1332_v43 = vsel %vm48_vm1, %v5869_v44, 1.0  ;;  %v6545_v44 = vld [vmem:[%s8090_s2] sm:$0xff]  ;;  %v8206_v39 = vld [vmem:[#allocation16_spill] sm:$0xff] }
 0x2d7   :  { %v1176_v5 = vsub.f32 0.0, %v1144_v35  ;;  %v1177_v45 = vsub.f32 0.0, %v1145_v55  ;;  %v1146_v58 = vsel %vm1082_vm4, %v1050_v61, %v1114_v52  ;;  %v1147_v41 = vsel %vm1083_vm5, %v1051_v32, %v1115_v56  ;;  %1337 = vxpose.xlu1.b32.end [2/2] (short) (narrow) %v1305_v14, 8  ;;  %v8207_v56 = vld [vmem:[#allocation27_spill] sm:$0xff] }
 0x2d8   :  { %v1179_v36 = vsub.f32 0.0, %v1147_v41  ;;  %v1178_v50 = vsub.f32 0.0, %v1146_v58  ;;  %v1316_v32 = vsel %vm48_vm1, %v5947_v62, 1.0  ;;  %v1333_v52 = vsel %vm48_vm1, %v5883_v48, 1.0  ;;  %v8208_v55 = vld [vmem:[#allocation19_spill] sm:$0xff] }
 0x2d9   :  { %v1208_v17 = vmul.f32 1.442695, %v1176_v5  ;;  %v1210_v22 = vmul.f32 1.442695, %v1177_v45 }
 0x2da   :  { %v1214_v54 = vmul.f32 1.442695, %v1179_v36  ;;  %v1212_v24 = vmul.f32 1.442695, %v1178_v50  ;;  %v6540_v50 = vld [vmem:[%s8090_s2 + $0x8] sm:$0xff] }
 0x2db   :  { %5415 = vpow2.f32 %v1208_v17  ;;  %v8205_v17 = vld [vmem:[#allocation25_spill] sm:$0xff] }
 0x2dc   :  { %5417 = vpow2.f32 %v1210_v22 }
 0x2dd   :  { %5419 = vpow2.f32 %v1214_v54 }
 0x2de   :  { %1784 = vxpose.xlu0.b32.start [1/2] (short) (narrow) %v1332_v43, 8  ;;  %1753 = vxpose.xlu2.b32.end [2/2] (short) (narrow) %v1331_v37, 8  ;;  %5421 = vpow2.f32 %v1212_v24  ;;  %v6555_v24 = vpop.permute.xlu1 %3633 }
 0x2df   :  { %v504_v61 = vpop.trf.xlu2  ;;  %1528 = vxpose.xlu1.b32.start [1/2] (short) (narrow) %v1316_v32, 8 }
 0x2e0   :  { %v1035_v38 = vperm.slane %v504_v61, 0  ;;  %v536_v34 = vpop.trf.xlu0 }
 0x2e1   :  { %v5416_v42 = vpop.eup %5415  ;;  %v1036_v54 = vperm.slane %v536_v34, 0  ;;  %v1317_v34 = vsel %vm48_vm1, %v5960_v1, 1.0 }
 0x2e2   :  { %v5418_v22 = vpop.eup %5417  ;;  %v1054_v62 = vadd.f32 %v1035_v38, %v8205_v17  ;;  %v1055_v53 = vadd.f32 %v1035_v38, %v8206_v39  ;;  %v1272_v45 = vmul.f32 %v5416_v42, %v6545_v44  ;;  %v8209_v38 = vld [vmem:[#allocation42_spill] sm:$0xff] }
 0x2e3   :  { %v1056_v35 = vadd.f32 %v1036_v54, %v8207_v56  ;;  %v1057_v14 = vadd.f32 %v1036_v54, %v8208_v55  ;;  %v1273_v5 = vmul.f32 %v5418_v22, %v6540_v50  ;;  %v5420_v58 = vpop.eup %5419 }
 0x2e4   :  { %vm1086_vm7 = vcmp.gt.f32.partialorder %v1054_v62, 0.0  ;;  %vm1087_vm8 = vcmp.gt.f32.partialorder %v1055_v53, 0.0  ;;  %v1118_v41 = vmul.f32 0.2, %v1054_v62  ;;  %v1119_v36 = vmul.f32 0.2, %v1055_v53  ;;  %v5422_v42 = vpop.eup %5421 }
 0x2e5   :  { %vm1088_vm9 = vcmp.gt.f32.partialorder %v1056_v35, 0.0  ;;  %vm1089_vm10 = vcmp.gt.f32.partialorder %v1057_v14, 0.0  ;;  %v1120_v43 = vmul.f32 0.2, %v1056_v35  ;;  %v1121_v37 = vmul.f32 0.2, %v1057_v14  ;;  %5282 = vmatpush.xpose.msk.msrb.mxu1 %vm1848_vm6, %v1273_v5 }
 0x2e6   :  { %v1150_v48 = vsel %vm1086_vm7, %v1054_v62, %v1118_v41  ;;  %v1151_v32 = vsel %vm1087_vm8, %v1055_v53, %v1119_v36  ;;  %1785 = vxpose.xlu0.b32.end [2/2] (short) (narrow) %v1333_v52, 8  ;;  %v1275_v61 = vmul.f32 %v5420_v58, %v6540_v50  ;;  %2681 = vxpose.xlu2.b32.start [1/2] (short) (narrow) %v8209_v38, 8  ;;  %v1322_v58 = vsel %vm48_vm1, %v5873_v46, 1.0  ;;  %v6570_v41 = vpop.permute.xlu1 %3627 }
 0x2e7   :  { %v1182_v54 = vsub.f32 0.0, %v1150_v48  ;;  %v1183_v22 = vsub.f32 0.0, %v1151_v32  ;;  %v1152_v17 = vsel %vm1088_vm9, %v1056_v35, %v1120_v43  ;;  %v1153_v39 = vsel %vm1089_vm10, %v1057_v14, %v1121_v37  ;;  %1529 = vxpose.xlu1.b32.end [2/2] (short) (narrow) %v1317_v34, 8  ;;  %v8210_v35 = vld [vmem:[#allocation55_spill] sm:$0xff]  ;;  %v8211_v14 = vld [vmem:[#allocation44_spill] sm:$0xff] }
 0x2e8   :  { %v1185_v56 = vsub.f32 0.0, %v1153_v39  ;;  %5285 = vmatpush.xpose.msk.msrb.mxu2 %vm1848_vm6, %v1275_v61  ;;  %v1184_v53 = vsub.f32 0.0, %v1152_v17  ;;  %v1274_v5 = vmul.f32 %v5422_v42, %v6545_v44  ;;  %v8212_v32 = vld [vmem:[#allocation51_spill] sm:$0xff]  ;;  %v8213_v61 = vld [vmem:[#allocation5_spill] sm:$0xff]  ;;  %v8216_v17 = vld [vmem:[#allocation6_spill] sm:$0xff] }
 0x2e9   :  { %v1220_v55 = vmul.f32 1.442695, %v1182_v54  ;;  %v1222_v62 = vmul.f32 1.442695, %v1183_v22  ;;  %5283 = vmatpush.xpose.msk.msrb.mxu1 %vm1848_vm6, %v1272_v45  ;;  %v1323_v46 = vsel %vm48_vm1, %v8213_v61, 1.0  ;;  %v8215_v22 = vld [vmem:[#allocation47_spill] sm:$0xff] }
 0x2ea   :  { %v1226_v52 = vmul.f32 1.442695, %v1185_v56  ;;  %v1224_v1 = vmul.f32 1.442695, %v1184_v53  ;;  %v1328_v39 = vsel %vm48_vm1, %v8216_v17, 1.0  ;;  %v1329_v53 = vsel %vm48_vm1, %v5922_v57, 1.0 }
 0x2eb   :  { %5423 = vpow2.f32 %v1222_v62  ;;  %v8219_v62 = vld [vmem:[#allocation50_spill] sm:$0xff] }
 0x2ec   :  { %5286 = vmatpush.xpose.msk.msrb.mxu2 %vm1848_vm6, %v1274_v5  ;;  %5425 = vpow2.f32 %v1220_v55  ;;  %v8218_v55 = vld [vmem:[#allocation63_spill] sm:$0xff]  ;;  %v8220_v5 = vld [vmem:[#allocation66_spill] sm:$0xff] }
 0x2ed   :  { %5427 = vpow2.f32 %v1226_v52 }
 0x2ee   :  { %2713 = vxpose.xlu0.b32.start [1/2] (short) (narrow) %v8210_v35, 8  ;;  %2682 = vxpose.xlu2.b32.end [2/2] (short) (narrow) %v8211_v14, 8  ;;  %5429 = vpow2.f32 %v1224_v1  ;;  %v6581_v42 = vpop.permute.xlu1 %3635  ;;  %v8221_v1 = vld [vmem:[#allocation69_spill] sm:$0xff]  ;;  %v8222_v35 = vld [vmem:[#allocation7_spill] sm:$0xff] }
 0x2ef   :  { %1624 = vxpose.xlu1.b32.start [1/2] (short) (narrow) %v1322_v58, 8  ;;  %v1334_v14 = vsel %vm48_vm1, %v8222_v35, 1.0  ;;  %v8223_v58 = vld [vmem:[#allocation54_spill] sm:$0xff]  ;;  %v568_v57 = vpop.trf.xlu2 }
 0x2f0   :  { %v6613_v61 = vpop.trf.xlu0 }
 0x2f1   :  { %v5424_v45 = vpop.eup %5423 }
 0x2f2   :  { %v5426_v36 = vpop.eup %5425  ;;  %v1279_v43 = vmul.f32 %v5424_v45, %v6540_v50  ;;  %v8224_v45 = vld [vmem:[#allocation56_spill] sm:$0xff] }
 0x2f3   :  { %v5428_v37 = vpop.eup %5427  ;;  %v1278_v34 = vmul.f32 %v5426_v36, %v6545_v44  ;;  %v1335_v36 = vsel %vm48_vm1, %v5937_v60, 1.0  ;;  %v8230_v60 = vld [vmem:[#allocation60_spill] sm:$0xff] }
 0x2f4   :  { %5291 = vmatpush.xpose.msk.msra.mxu1 %vm1848_vm6, %v1279_v43  ;;  %v1281_v48 = vmul.f32 %v5428_v37, %v6540_v50  ;;  %v5430_v38 = vpop.eup %5429  ;;  %v8225_v37 = vld [vmem:[#allocation72_spill] sm:$0xff] }
 0x2f5   :  { %v1280_v54 = vmul.f32 %v5430_v38, %v6545_v44  ;;  %v8228_v38 = vld [vmem:[#allocation59_spill] sm:$0xff] }
 0x2f6   :  { %2714 = vxpose.xlu0.b32.end [2/2] (short) (narrow) %v6249_v25, 8  ;;  %2809 = vxpose.xlu2.b32.start [1/2] (short) (narrow) %v8212_v32, 8  ;;  %v8214_v25 = vld [vmem:[#allocation48_spill] sm:$0xff]  ;;  %v6590_v56 = vpop.permute.xlu1 %3282 }
 0x2f7   :  { %1625 = vxpose.xlu1.b32.end [2/2] (short) (narrow) %v1323_v46, 8  ;;  %5294 = vmatpush.xpose.msk.msra.mxu2 %vm1848_vm6, %v1281_v48  ;;  %8217 = vst [vmem:[#allocation9_spill] sm:$0xff] %v6590_v56  ;;  %v8226_v48 = vld [vmem:[#allocation45_spill] sm:$0xff] }
 0x2f8   :  { %5292 = vmatpush.xpose.msk.msra.mxu1 %vm1848_vm6, %v1278_v34  ;;  %v8229_v34 = vld [vmem:[#allocation61_spill] sm:$0xff] }
 0x2f9   :  { %v8242_v56 = vld [vmem:[#allocation53_spill] sm:$0xff] }
 0x2fb   :  { %5295 = vmatpush.xpose.msk.msra.mxu2 %vm1848_vm6, %v1280_v54  ;;  %v1037_v54 = vperm.slane %v568_v57, 0 }
 0x2fe   :  { %2777 = vxpose.xlu0.b32.start [1/2] (short) (narrow) %v8214_v25, 8  ;;  %2810 = vxpose.xlu2.b32.end [2/2] (short) (narrow) %v8215_v22, 8  ;;  %v6596_v52 = vpop.permute.xlu1 %3645 }
 0x2ff   :  { %1720 = vxpose.xlu1.b32.start [1/2] (short) (narrow) %v1328_v39, 8  ;;  %v664_v46 = vpop.trf.xlu2 }
 0x300   :  { %v6618_v25 = vpop.trf.xlu0 }
 0x306   :  { %2778 = vxpose.xlu0.b32.end [2/2] (short) (narrow) %v8218_v55, 8  ;;  %2873 = vxpose.xlu2.b32.start [1/2] (short) (narrow) %v8219_v62, 8  ;;  %v6606_v43 = vpop.permute.xlu1 %3639  ;;  %v8233_v55 = vld [vmem:[#allocation77_spill] sm:$0xff]  ;;  %v1040_v62 = vperm.slane %v664_v46, 0 }
 0x307   :  { %1721 = vxpose.xlu1.b32.end [2/2] (short) (narrow) %v1329_v53, 8  ;;  %v8234_v53 = vld [vmem:[#allocation57_spill] sm:$0xff] }
 0x308   :  { %v8238_v46 = vld [vmem:[#allocation17_spill] sm:$0xff] }
 0x30e   :  { %2841 = vxpose.xlu0.b32.start [1/2] (short) (narrow) %v8220_v5, 8  ;;  %2874 = vxpose.xlu2.b32.end [2/2] (short) (narrow) %v8221_v1, 8  ;;  %v6611_v32 = vpop.permute.xlu1 %3655  ;;  %v8235_v5 = vld [vmem:[#allocation21_spill] sm:$0xff] }
 0x30f   :  { %1816 = vxpose.xlu1.b32.start [1/2] (short) (narrow) %v1334_v14, 8  ;;  %8227 = vst [vmem:[#allocation14_spill] sm:$0xff] %v6611_v32  ;;  %v760_v17 = vpop.trf.xlu2  ;;  %v1058_v1 = vadd.f32 %v1037_v54, %v8235_v5 }
 0x310   :  { %v6627_v14 = vpop.trf.xlu0 }
 0x311   :  { %vm1090_vm12 = vcmp.gt.f32.partialorder %v1058_v1, 0.0 }
 0x316   :  { %2842 = vxpose.xlu0.b32.end [2/2] (short) (narrow) %v8223_v58, 8  ;;  %2969 = vxpose.xlu2.b32.start [1/2] (short) (narrow) %v8224_v45, 8  ;;  %v6620_v22 = vpop.permute.xlu1 %3649  ;;  %v8236_v58 = vld [vmem:[#allocation35_spill] sm:$0xff] }
 0x317   :  { %1817 = vxpose.xlu1.b32.end [2/2] (short) (narrow) %v1335_v36, 8  ;;  %8231 = vst [vmem:[#allocation15_spill] sm:$0xff] %v6620_v22  ;;  %v1065_v45 = vadd.f32 %v1040_v62, %v8236_v58  ;;  %v1043_v58 = vperm.slane %v760_v17, 0 }
 0x319   :  { %vm1097_vm13 = vcmp.gt.f32.partialorder %v1065_v45, 0.0  ;;  %v1129_v5 = vmul.f32 0.2, %v1065_v45 }
 0x31e   :  { %2937 = vxpose.xlu0.b32.start [1/2] (short) (narrow) %v8225_v37, 8  ;;  %2970 = vxpose.xlu2.b32.end [2/2] (short) (narrow) %v6321_v2, 8  ;;  %v8232_v2 = vld [vmem:[#allocation32_spill] sm:$0xff] }
 0x31f   :  { %2745 = vxpose.xlu1.b32.start [1/2] (short) (narrow) %v8226_v48, 8  ;;  %v1059_v39 = vadd.f32 %v1037_v54, %v8232_v2  ;;  %v6630_v57 = vpop.trf.xlu2  ;;  %v1122_v48 = vmul.f32 0.2, %v1058_v1  ;;  %v8239_v2 = vld [vmem:[#allocation20_spill] sm:$0xff]  ;;  %v8240_v54 = vld [vmem:[#allocation65_spill] sm:$0xff] }
 0x321   :  { %v1123_v35 = vmul.f32 0.2, %v1059_v39  ;;  %vm1091_vm11 = vcmp.gt.f32.partialorder %v1059_v39, 0.0 }
 0x326   :  { %2938 = vxpose.xlu0.b32.end [2/2] (short) (narrow) %v8228_v38, 8  ;;  %3065 = vxpose.xlu2.b32.start [1/2] (short) (narrow) %v8229_v34, 8  ;;  %v1155_v38 = vsel %vm1091_vm11, %v1059_v39, %v1123_v35  ;;  %v8237_v34 = vld [vmem:[#allocation18_spill] sm:$0xff]  ;;  %v1154_v35 = vsel %vm1090_vm12, %v1058_v1, %v1122_v48 }
 0x327   :  { %2746 = vxpose.xlu1.b32.end [2/2] (short) (narrow) %v8230_v60, 8  ;;  %v1187_v15 = vsub.f32 0.0, %v1155_v38  ;;  %v1186_v21 = vsub.f32 0.0, %v1154_v35  ;;  %v8244_v38 = vld [vmem:[#allocation30_spill] sm:$0xff] }
 0x329   :  { %v1230_v48 = vmul.f32 1.442695, %v1187_v15 }
 0x32e   :  { %3033 = vxpose.xlu0.b32.start [1/2] (short) (narrow) %v8233_v55, 8  ;;  %3066 = vxpose.xlu2.b32.end [2/2] (short) (narrow) %v6336_v51, 8  ;;  %v1064_v51 = vadd.f32 %v1040_v62, %v8237_v34  ;;  %v6638_v62 = vpop.trf.xlu0 }
 0x32f   :  { %2905 = vxpose.xlu1.b32.start [1/2] (short) (narrow) %v8234_v53, 8  ;;  %v8241_v53 = vld [vmem:[#allocation67_spill] sm:$0xff]  ;;  %v1384_v17 = vpop.trf.xlu2 }
 0x330   :  { %vm1096_vm0 = vcmp.gt.f32.partialorder %v1064_v51, 0.0  ;;  %v1128_v34 = vmul.f32 0.2, %v1064_v51  ;;  %5287 = vmatmul.msk.f32.vlgmr.msrb.gmra.mxu2 %vm1848_vm6, %v1384_v17 }
 0x332   :  { %v1160_v59 = vsel %vm1096_vm0, %v1064_v51, %v1128_v34 }
 0x333   :  { %v472_v36 = vpop.trf.xlu1 }
 0x334   :  { %v1034_v37 = vperm.slane %v472_v36, 0 }
 0x336   :  { %v1052_v60 = vadd.f32 %v1034_v37, %v8238_v46  ;;  %v1053_v55 = vadd.f32 %v1034_v37, %v8239_v2  ;;  %3034 = vxpose.xlu0.b32.end [2/2] (short) (narrow) %v8240_v54, 8  ;;  %3161 = vxpose.xlu2.b32.start [1/2] (short) (narrow) %v8241_v53, 8  ;;  %v1161_v2 = vsel %vm1097_vm13, %v1065_v45, %v1129_v5  ;;  %v8243_v54 = vld [vmem:[#allocation46_spill] sm:$0xff] }
 0x337   :  { %2906 = vxpose.xlu1.b32.end [2/2] (short) (narrow) %v8242_v56, 8  ;;  %v1071_v53 = vadd.f32 %v1043_v58, %v8243_v54  ;;  %v1193_v29 = vsub.f32 0.0, %v1161_v2  ;;  %v8245_v5 = vld [vmem:[#allocation62_spill] sm:$0xff]  ;;  %v8248_v2 = vld [vmem:[#allocation37_spill] sm:$0xff] }
 0x338   :  { %vm1084_vm14 = vcmp.gt.f32.partialorder %v1052_v60, 0.0  ;;  %vm1085_vm15 = vcmp.gt.f32.partialorder %v1053_v55, 0.0  ;;  %v1116_v36 = vmul.f32 0.2, %v1052_v60  ;;  %v1117_v39 = vmul.f32 0.2, %v1053_v55 }
 0x339   :  { %v1135_v45 = vmul.f32 0.2, %v1071_v53  ;;  %vm1103_vm2 = vcmp.gt.f32.partialorder %v1071_v53, 0.0  ;;  %v1242_v51 = vmul.f32 1.442695, %v1193_v29 }
 0x33a   :  { %v1148_v37 = vsel %vm1084_vm14, %v1052_v60, %v1116_v36  ;;  %v1149_v46 = vsel %vm1085_vm15, %v1053_v55, %v1117_v39  ;;  %v1070_v60 = vadd.f32 %v1043_v58, %v8244_v38  ;;  %v1046_v55 = vperm.slane %v6630_v57, 0  ;;  %v6647_v39 = vpop.trf.xlu0  ;;  %v8251_v38 = vld [vmem:[#allocation58_spill] sm:$0xff] }
 0x33b   :  { %v1180_v32 = vsub.f32 0.0, %v1148_v37  ;;  %v1181_v22 = vsub.f32 0.0, %v1149_v46  ;;  %v1192_v36 = vsub.f32 0.0, %v1160_v59  ;;  %v3689_v57 = vsel %vm48_vm1, %v6376_v10, 1.0  ;;  %v8247_v59 = vld [vmem:[#allocation40_spill] sm:$0xff] }
 0x33c   :  { %vm1102_vm3 = vcmp.gt.f32.partialorder %v1070_v60, 0.0 }
 0x33d   :  { %v1218_v56 = vmul.f32 1.442695, %v1181_v22  ;;  %v1216_v1 = vmul.f32 1.442695, %v1180_v32  ;;  %v1228_v22 = vmul.f32 1.442695, %v1186_v21  ;;  %v1167_v32 = vsel %vm1103_vm2, %v1071_v53, %v1135_v45 }
 0x33e   :  { %3129 = vxpose.xlu0.b32.start [1/2] (short) (narrow) %v6345_v63, 8  ;;  %3162 = vxpose.xlu2.b32.end [2/2] (short) (narrow) %v6356_v18, 8  ;;  %v1134_v63 = vmul.f32 0.2, %v1070_v60  ;;  %v8246_v18 = vld [vmem:[#allocation52_spill] sm:$0xff]  ;;  %v1199_v29 = vsub.f32 0.0, %v1167_v32 }
 0x33f   :  { %3001 = vxpose.xlu1.b32.start [1/2] (short) (narrow) %v8245_v5, 8  ;;  %5431 = vpow2.f32 %v1218_v56  ;;  %v1077_v15 = vadd.f32 %v1046_v55, %v8246_v18  ;;  %v1480_v34 = vpop.trf.xlu2  ;;  %v1240_v37 = vmul.f32 1.442695, %v1192_v36  ;;  %v8249_v53 = vld [vmem:[#allocation71_spill] sm:$0xff]  ;;  %v8250_v56 = vld [vmem:[#allocation36_spill] sm:$0xff] }
 0x340   :  { %5433 = vpow2.f32 %v1216_v1  ;;  %5296 = vmatmul.msk.f32.vlgmr.msra.gmra.mxu2 %vm1848_vm6, %v1480_v34  ;;  %v1166_v17 = vsel %vm1102_vm3, %v1070_v60, %v1134_v63  ;;  %v1076_v1 = vadd.f32 %v1046_v55, %v8250_v56  ;;  %v1254_v32 = vmul.f32 1.442695, %v1199_v29 }
 0x341   :  { %5435 = vpow2.f32 %v1230_v48  ;;  %v1141_v48 = vmul.f32 0.2, %v1077_v15  ;;  %vm1109_vm7 = vcmp.gt.f32.partialorder %v1077_v15, 0.0 }
 0x342   :  { %5437 = vpow2.f32 %v1228_v22  ;;  %v6661_v34 = vpop.trf.xlu0  ;;  %vm1108_vm8 = vcmp.gt.f32.partialorder %v1076_v1, 0.0 }
 0x343   :  { %v632_v35 = vpop.trf.xlu1  ;;  %5439 = vpow2.f32 %v1242_v51  ;;  %v1198_v51 = vsub.f32 0.0, %v1166_v17 }
 0x344   :  { %v1039_v58 = vperm.slane %v632_v35, 0  ;;  %5441 = vpow2.f32 %v1240_v37 }
 0x345   :  { %v5432_v21 = vpop.eup %5431  ;;  %5443 = vpow2.f32 %v1254_v32 }
 0x346   :  { %v1062_v46 = vadd.f32 %v1039_v58, %v8247_v59  ;;  %v1063_v54 = vadd.f32 %v1039_v58, %v8248_v2  ;;  %3130 = vxpose.xlu0.b32.end [2/2] (short) (narrow) %v8249_v53, 8  ;;  %3721 = vxpose.xlu2.b32.start [1/2] (short) (narrow) %v3689_v57, 8  ;;  %v1277_v10 = vmul.f32 %v5432_v21, %v6540_v50  ;;  %v5434_v45 = vpop.eup %5433  ;;  %v1140_v21 = vmul.f32 0.2, %v1076_v1 }
 0x347   :  { %3002 = vxpose.xlu1.b32.end [2/2] (short) (narrow) %v8251_v38, 8  ;;  %v5436_v36 = vpop.eup %5435  ;;  %v1276_v58 = vmul.f32 %v5434_v45, %v6545_v44  ;;  %v1173_v59 = vsel %vm1109_vm7, %v1077_v15, %v1141_v48  ;;  %v3695_v53 = vsel %vm48_vm1, %v6386_v28, 1.0  ;;  %v8252_v15 = vld [vmem:[#allocation68_spill] sm:$0xff]  ;;  %v1038_v48 = vperm.slane %v6613_v61, 0 }
 0x348   :  { %vm1094_vm4 = vcmp.gt.f32.partialorder %v1062_v46, 0.0  ;;  %vm1095_vm5 = vcmp.gt.f32.partialorder %v1063_v54, 0.0  ;;  %v1126_v5 = vmul.f32 0.2, %v1062_v46  ;;  %v1127_v22 = vmul.f32 0.2, %v1063_v54  ;;  %5288 = vmatpush.xpose.msk.msrb.mxu3 %vm1848_vm6, %v1277_v10  ;;  %v5438_v63 = vpop.eup %5437 }
 0x349   :  { %v5440_v57 = vpop.eup %5439  ;;  %v1283_v2 = vmul.f32 %v5436_v36, %v6540_v50  ;;  %v1205_v37 = vsub.f32 0.0, %v1173_v59  ;;  %v1172_v56 = vsel %vm1108_vm8, %v1076_v1, %v1140_v21  ;;  %v1282_v28 = vmul.f32 %v5438_v63, %v6545_v44  ;;  %v8253_v36 = vld [vmem:[#allocation28_spill] sm:$0xff]  ;;  %v8254_v63 = vld [vmem:[#allocation43_spill] sm:$0xff] }
 0x34a   :  { %v1158_v18 = vsel %vm1094_vm4, %v1062_v46, %v1126_v5  ;;  %v1159_v60 = vsel %vm1095_vm5, %v1063_v54, %v1127_v22  ;;  %v3690_v46 = vsel %vm48_vm1, %v6358_v13, 1.0  ;;  %v1252_v54 = vmul.f32 1.442695, %v1198_v51  ;;  %v5442_v38 = vpop.eup %5441 }
 0x34b   :  { %v1190_v55 = vsub.f32 0.0, %v1158_v18  ;;  %v1191_v35 = vsub.f32 0.0, %v1159_v60  ;;  %v1289_v13 = vmul.f32 %v5440_v57, %v6540_v50  ;;  %v1204_v10 = vsub.f32 0.0, %v1172_v56  ;;  %v5444_v5 = vpop.eup %5443 }
 0x34c   :  { %5289 = vmatpush.xpose.msk.msrb.mxu3 %vm1848_vm6, %v1276_v58  ;;  %v1266_v45 = vmul.f32 1.442695, %v1205_v37  ;;  %v1061_v51 = vadd.f32 %v1038_v48, %v8253_v36  ;;  %v1288_v61 = vmul.f32 %v5442_v38, %v6545_v44  ;;  %v3693_v60 = vsel %vm48_vm1, %v6396_v19, 1.0  ;;  %v8258_v36 = vld [vmem:[#allocation23_spill] sm:$0xff] }
 0x34d   :  { %v1238_v29 = vmul.f32 1.442695, %v1191_v35  ;;  %v1236_v17 = vmul.f32 1.442695, %v1190_v55  ;;  %v8255_v35 = vld [vmem:[#allocation29_spill] sm:$0xff] }
 0x34e   :  { %3817 = vxpose.xlu0.b32.start [1/2] (short) (narrow) %v3695_v53, 8  ;;  %3722 = vxpose.xlu2.b32.end [2/2] (short) (narrow) %v3690_v46, 8  ;;  %v1264_v57 = vmul.f32 1.442695, %v1204_v10  ;;  %vm1093_vm11 = vcmp.gt.f32.partialorder %v1061_v51, 0.0 }
 0x34f   :  { %3097 = vxpose.xlu1.b32.start [1/2] (short) (narrow) %v8252_v15, 8  ;;  %5445 = vpow2.f32 %v1238_v29  ;;  %5290 = vmatmul.msk.f32.vlgmr.msrb.gmra.mxu3 %vm1848_vm6, %v6647_v39  ;;  %v3696_v39 = vsel %vm48_vm1, %v6480_v20, 1.0  ;;  %v1295_v20 = vmul.f32 %v5444_v5, %v6540_v50  ;;  %v8256_v29 = vld [vmem:[#allocation24_spill] sm:$0xff]  ;;  %v1125_v37 = vmul.f32 0.2, %v1061_v51 }
 0x350   :  { %5297 = vmatpush.xpose.msk.msra.mxu3 %vm1848_vm6, %v1283_v2  ;;  %5447 = vpow2.f32 %v1252_v54  ;;  %v1512_v32 = vpop.trf.xlu0  ;;  %v1060_v46 = vadd.f32 %v1038_v48, %v8256_v29  ;;  %v8257_v54 = vld [vmem:[#allocation64_spill] sm:$0xff] }
 0x351   :  { %5449 = vpow2.f32 %v1236_v17  ;;  %v1041_v17 = vperm.slane %v6618_v25, 0  ;;  %v3694_v25 = vsel %vm48_vm1, %v6493_v30, 1.0 }
 0x352   :  { %5451 = vpow2.f32 %v1266_v45  ;;  %v3697_v45 = vsel %vm48_vm1, %v6380_v27, 1.0  ;;  %v1124_v5 = vmul.f32 0.2, %v1060_v46  ;;  %vm1092_vm12 = vcmp.gt.f32.partialorder %v1060_v46, 0.0 }
 0x353   :  { %v728_v1 = vpop.trf.xlu1  ;;  %5453 = vpow2.f32 %v1264_v57  ;;  %v3691_v27 = vsel %vm48_vm1, %v6469_v6, 1.0  ;;  %v1044_v6 = vperm.slane %v6627_v14, 0 }
 0x354   :  { %5298 = vmatpush.xpose.msk.msra.mxu3 %vm1848_vm6, %v1282_v28  ;;  %v1042_v22 = vperm.slane %v728_v1, 0 }
 0x355   :  { %v5446_v18 = vpop.eup %5445 }
 0x356   :  { %v1068_v55 = vadd.f32 %v1042_v22, %v8254_v63  ;;  %v1069_v58 = vadd.f32 %v1042_v22, %v8255_v35  ;;  %3818 = vxpose.xlu0.b32.end [2/2] (short) (narrow) %v3696_v39, 8  ;;  %3785 = vxpose.xlu2.b32.start [1/2] (short) (narrow) %v3693_v60, 8  ;;  %v1287_v21 = vmul.f32 %v5446_v18, %v6540_v50  ;;  %v5448_v59 = vpop.eup %5447  ;;  %v8259_v63 = vld [vmem:[#allocation22_spill] sm:$0xff] }
 0x357   :  { %5299 = vmatmul.msk.f32.vlgmr.msra.gmra.mxu3 %vm1848_vm6, %v1512_v32  ;;  %v5450_v19 = vpop.eup %5449  ;;  %3098 = vxpose.xlu1.b32.end [2/2] (short) (narrow) %v8257_v54, 8  ;;  %v1294_v38 = vmul.f32 %v5448_v59, %v6545_v44  ;;  %v1157_v22 = vsel %vm1093_vm11, %v1061_v51, %v1125_v37  ;;  %v1576_v51 = vpop.trf.xlu2  ;;  %v1156_v35 = vsel %vm1092_vm12, %v1060_v46, %v1124_v5  ;;  %v3698_v59 = vsel %vm48_vm1, %v6390_v7, 1.0  ;;  %v8260_v54 = vld [vmem:[#allocation49_spill] sm:$0xff] }
 0x358   :  { %5306 = vmatpush.xpose.msk.msrb.mxu3 %vm1848_vm6, %v1289_v13  ;;  %vm1100_vm9 = vcmp.gt.f32.partialorder %v1068_v55, 0.0  ;;  %vm1101_vm10 = vcmp.gt.f32.partialorder %v1069_v58, 0.0  ;;  %v1132_v2 = vmul.f32 0.2, %v1068_v55  ;;  %v1133_v53 = vmul.f32 0.2, %v1069_v58  ;;  %5303 = vmatpush.xpose.msk.msrb.mxu2 %vm1848_vm6, %v1287_v21  ;;  %v5452_v48 = vpop.eup %5451 }
 0x359   :  { %v1286_v10 = vmul.f32 %v5450_v19, %v6545_v44  ;;  %v1301_v18 = vmul.f32 %v5452_v48, %v6540_v50  ;;  %v5454_v60 = vpop.eup %5453  ;;  %v1189_v30 = vsub.f32 0.0, %v1157_v22  ;;  %v3701_v46 = vsel %vm48_vm1, %v6405_v12, 1.0  ;;  %v8262_v7 = vld [vmem:[#allocation33_spill] sm:$0xff] }
 0x35a   :  { %v1164_v15 = vsel %vm1100_vm9, %v1068_v55, %v1132_v2  ;;  %v1165_v56 = vsel %vm1101_vm10, %v1069_v58, %v1133_v53  ;;  %v1066_v55 = vadd.f32 %v1041_v17, %v8259_v63  ;;  %v1300_v21 = vmul.f32 %v5454_v60, %v6545_v44 }
 0x35b   :  { %v1196_v28 = vsub.f32 0.0, %v1164_v15  ;;  %v1197_v13 = vsub.f32 0.0, %v1165_v56  ;;  %v1188_v2 = vsub.f32 0.0, %v1156_v35  ;;  %v1234_v53 = vmul.f32 1.442695, %v1189_v30 }
 0x35c   :  { %5307 = vmatpush.xpose.msk.msrb.mxu3 %vm1848_vm6, %v1288_v61  ;;  %5304 = vmatpush.xpose.msk.msrb.mxu2 %vm1848_vm6, %v1286_v10  ;;  %v1067_v61 = vadd.f32 %v1041_v17, %v8258_v36  ;;  %v1130_v19 = vmul.f32 0.2, %v1066_v55  ;;  %vm1098_vm14 = vcmp.gt.f32.partialorder %v1066_v55, 0.0  ;;  %v8261_v17 = vld [vmem:[#allocation34_spill] sm:$0xff]  ;;  %v3692_v15 = vsel %vm48_vm1, %v6369_v33, 1.0  ;;  %v8263_v33 = vld [vmem:[#allocation31_spill] sm:$0xff] }
 0x35d   :  { %v1250_v1 = vmul.f32 1.442695, %v1197_v13  ;;  %v1248_v39 = vmul.f32 1.442695, %v1196_v28  ;;  %v1073_v28 = vadd.f32 %v1044_v6, %v8262_v7  ;;  %v1232_v48 = vmul.f32 1.442695, %v1188_v2 }
 0x35e   :  { %3849 = vxpose.xlu0.b32.start [1/2] (short) (narrow) %v3697_v45, 8  ;;  %3786 = vxpose.xlu2.b32.end [2/2] (short) (narrow) %v3694_v25, 8  ;;  %v1131_v58 = vmul.f32 0.2, %v1067_v61  ;;  %vm1099_vm13 = vcmp.gt.f32.partialorder %v1067_v61, 0.0  ;;  %v1162_v45 = vsel %vm1098_vm14, %v1066_v55, %v1130_v19  ;;  %v1072_v25 = vadd.f32 %v1044_v6, %v8263_v33 }
 0x35f   :  { %5455 = vpow2.f32 %v1250_v1  ;;  %3753 = vxpose.xlu1.b32.start [1/2] (short) (narrow) %v3691_v27, 8  ;;  %5305 = vmatmul.msk.f32.vlgmr.msrb.gmra.mxu2 %vm1848_vm6, %v1576_v51  ;;  %vm1105_vm2 = vcmp.gt.f32.partialorder %v1073_v28, 0.0  ;;  %v3702_v30 = vsel %vm48_vm1, %v6506_v49, 1.0  ;;  %v1194_v63 = vsub.f32 0.0, %v1162_v45 }
 0x360   :  { %5315 = vmatpush.xpose.msk.msra.mxu3 %vm1848_vm6, %v1295_v20  ;;  %v1608_v32 = vpop.trf.xlu0  ;;  %5457 = vpow2.f32 %v1248_v39  ;;  %v1163_v56 = vsel %vm1099_vm13, %v1067_v61, %v1131_v58  ;;  %v1137_v39 = vmul.f32 0.2, %v1073_v28  ;;  %v1136_v35 = vmul.f32 0.2, %v1072_v25 }
 0x361   :  { %5308 = vmatmul.msk.f32.vlgmr.msrb.gmra.mxu3 %vm1848_vm6, %v1608_v32  ;;  %5459 = vpow2.f32 %v1234_v53  ;;  %v1195_v1 = vsub.f32 0.0, %v1163_v56  ;;  %v1672_v32 = vpop.trf.xlu2  ;;  %vm1104_vm3 = vcmp.gt.f32.partialorder %v1072_v25, 0.0  ;;  %v3705_v45 = vsel %vm48_vm1, %v6418_v23, 1.0 }
 0x362   :  { %5461 = vpow2.f32 %v1232_v48  ;;  %v1169_v58 = vsel %vm1105_vm2, %v1073_v28, %v1137_v39  ;;  %v3709_v39 = vsel %vm48_vm1, %v6555_v24, 1.0 }
 0x363   :  { %v824_v57 = vpop.trf.xlu1  ;;  %v1246_v55 = vmul.f32 1.442695, %v1195_v1  ;;  %v1201_v49 = vsub.f32 0.0, %v1169_v58  ;;  %v3708_v1 = vsel %vm48_vm1, %v6430_v0, 1.0 }
 0x364   :  { %5316 = vmatpush.xpose.msk.msra.mxu3 %vm1848_vm6, %v1294_v38  ;;  %v1045_v20 = vperm.slane %v824_v57, 0  ;;  %v3703_v57 = vsel %vm48_vm1, %v6400_v8, 1.0  ;;  %v3700_v8 = vsel %vm48_vm1, %v6517_v47, 1.0  ;;  %v3704_v47 = vsel %vm48_vm1, %v6409_v26, 1.0 }
 0x365   :  { %v5456_v29 = vpop.eup %5455 }
 0x366   :  { %v1074_v37 = vadd.f32 %v1045_v20, %v8260_v54  ;;  %v1075_v14 = vadd.f32 %v1045_v20, %v8261_v17  ;;  %3850 = vxpose.xlu0.b32.end [2/2] (short) (narrow) %v3698_v59, 8  ;;  %3913 = vxpose.xlu2.b32.start [1/2] (short) (narrow) %v3701_v46, 8  ;;  %v1293_v13 = vmul.f32 %v5456_v29, %v6540_v50  ;;  %v5458_v38 = vpop.eup %5457  ;;  %v1047_v59 = vperm.slane %v6638_v62, 0  ;;  %v8264_v17 = vld [vmem:[#allocation41_spill] sm:$0xff] }
 0x367   :  { %3754 = vxpose.xlu1.b32.end [2/2] (short) (narrow) %v3692_v15, 8  ;;  %v1292_v27 = vmul.f32 %v5458_v38, %v6545_v44  ;;  %v5460_v51 = vpop.eup %5459  ;;  %v3707_v54 = vsel %vm48_vm1, %v6422_v4, 1.0 }
 0x368   :  { %5324 = vmatpush.xpose.msk.msrb.mxu3 %vm1848_vm6, %v1301_v18  ;;  %vm1106_vm15 = vcmp.gt.f32.partialorder %v1074_v37, 0.0  ;;  %vm1107_vm0 = vcmp.gt.f32.partialorder %v1075_v14, 0.0  ;;  %v1138_v12 = vmul.f32 0.2, %v1074_v37  ;;  %v1139_v10 = vmul.f32 0.2, %v1075_v14  ;;  %5312 = vmatpush.xpose.msk.msra.mxu2 %vm1848_vm6, %v1293_v13  ;;  %v5462_v19 = vpop.eup %5461 }
 0x369   :  { %v3699_v18 = vsel %vm48_vm1, %v6414_v16, 1.0  ;;  %v1244_v16 = vmul.f32 1.442695, %v1194_v63  ;;  %v1285_v53 = vmul.f32 %v5460_v51, %v6540_v50  ;;  %v1284_v15 = vmul.f32 %v5462_v19, %v6545_v44  ;;  %v8265_v13 = vld [vmem:[#allocation39_spill] sm:$0xff] }
 0x36a   :  { %v1170_v5 = vsel %vm1106_vm15, %v1074_v37, %v1138_v12  ;;  %v1171_v22 = vsel %vm1107_vm0, %v1075_v14, %v1139_v10  ;;  %v1258_v37 = vmul.f32 1.442695, %v1201_v49  ;;  %v1079_v14 = vadd.f32 %v1047_v59, %v8264_v17 }
 0x36b   :  { %v1202_v36 = vsub.f32 0.0, %v1170_v5  ;;  %v1203_v61 = vsub.f32 0.0, %v1171_v22  ;;  %v1078_v38 = vadd.f32 %v1047_v59, %v8265_v13  ;;  %v3706_v51 = vsel %vm48_vm1, %v6570_v41, 1.0 }
 0x36c   :  { %5325 = vmatpush.xpose.msk.msrb.mxu3 %vm1848_vm6, %v1300_v21  ;;  %5313 = vmatpush.xpose.msk.msra.mxu2 %vm1848_vm6, %v1292_v27  ;;  %v1168_v21 = vsel %vm1104_vm3, %v1072_v25, %v1136_v35  ;;  %v1143_v12 = vmul.f32 0.2, %v1079_v14  ;;  %vm1111_vm4 = vcmp.gt.f32.partialorder %v1079_v14, 0.0 }
 0x36d   :  { %v1262_v60 = vmul.f32 1.442695, %v1203_v61  ;;  %v1260_v6 = vmul.f32 1.442695, %v1202_v36  ;;  %v1200_v62 = vsub.f32 0.0, %v1168_v21  ;;  %vm1110_vm5 = vcmp.gt.f32.partialorder %v1078_v38, 0.0 }
 0x36e   :  { %3881 = vxpose.xlu0.b32.start [1/2] (short) (narrow) %v3699_v18, 8  ;;  %3914 = vxpose.xlu2.b32.end [2/2] (short) (narrow) %v3702_v30, 8  ;;  %v1142_v33 = vmul.f32 0.2, %v1078_v38  ;;  %v1175_v25 = vsel %vm1111_vm4, %v1079_v14, %v1143_v12  ;;  %v8266_v61 = vld [vmem:[#allocation70_spill] sm:$0xff]  ;;  %v3710_v21 = vsel %vm48_vm1, %v6581_v42, 1.0 }
 0x36f   :  { %5463 = vpow2.f32 %v1262_v60  ;;  %5314 = vmatmul.msk.f32.vlgmr.msra.gmra.mxu2 %vm1848_vm6, %v1672_v32  ;;  %3945 = vxpose.xlu1.b32.start [1/2] (short) (narrow) %v3703_v57, 8  ;;  %v1768_v29 = vpop.trf.xlu2  ;;  %v1256_v4 = vmul.f32 1.442695, %v1200_v62  ;;  %v1207_v0 = vsub.f32 0.0, %v1175_v25  ;;  %v8271_v12 = vld [vmem:[#allocation96_spill] sm:$0xff] }
 0x370   :  { %5465 = vpow2.f32 %v1246_v55  ;;  %v1174_v18 = vsel %vm1110_vm5, %v1078_v38, %v1142_v33  ;;  %v8270_v38 = vld [vmem:[#allocation8_spill] sm:$0xff] }
 0x371   :  { %5467 = vpow2.f32 %v1260_v6  ;;  %v1206_v35 = vsub.f32 0.0, %v1174_v18  ;;  %v1270_v58 = vmul.f32 1.442695, %v1207_v0 }
 0x372   :  { %v1704_v20 = vpop.trf.xlu0  ;;  %5469 = vpow2.f32 %v1244_v16 }
 0x373   :  { %v1352_v2 = vpop.trf.xlu1  ;;  %5317 = vmatmul.msk.f32.vlgmr.msra.gmra.mxu3 %vm1848_vm6, %v1704_v20  ;;  %5471 = vpow2.f32 %v1258_v37 }
 0x374   :  { %5284 = vmatmul.msk.f32.vlgmr.msrb.gmra.mxu1 %vm1848_vm6, %v1352_v2  ;;  %5473 = vpow2.f32 %v1256_v4  ;;  %v3711_v2 = vsel %vm48_vm1, %v6460_v40, 1.0 }
 0x375   :  { %5300 = vmatpush.xpose.msk.msrb.mxu1 %vm1848_vm6, %v1285_v53  ;;  %v5464_v46 = vpop.eup %5463  ;;  %5475 = vpow2.f32 %v1270_v58  ;;  %v3714_v53 = vsel %vm48_vm1, %v6448_v9, 1.0 }
 0x376   :  { %3882 = vxpose.xlu0.b32.end [2/2] (short) (narrow) %v3700_v8, 8  ;;  %4009 = vxpose.xlu2.b32.start [1/2] (short) (narrow) %v3707_v54, 8  ;;  %v1299_v56 = vmul.f32 %v5464_v46, %v6540_v50  ;;  %v5466_v7 = vpop.eup %5465  ;;  %v3715_v8 = vsel %vm48_vm1, %v6596_v52, 1.0  ;;  %v8267_v52 = vld [vmem:[#allocation73_spill] sm:$0xff] }
 0x377   :  { %v5468_v28 = vpop.eup %5467  ;;  %3946 = vxpose.xlu1.b32.end [2/2] (short) (narrow) %v3704_v47, 8  ;;  %v1291_v10 = vmul.f32 %v5466_v7, %v6540_v50 }
 0x378   :  { %5321 = vmatpush.xpose.msk.msrb.mxu2 %vm1848_vm6, %v1299_v56  ;;  %v5470_v48 = vpop.eup %5469  ;;  %v1298_v26 = vmul.f32 %v5468_v28, %v6545_v44  ;;  %v8268_v28 = vld [vmem:[#allocation74_spill] sm:$0xff] }
 0x379   :  { %5301 = vmatpush.xpose.msk.msrb.mxu1 %vm1848_vm6, %v1284_v15  ;;  %v5472_v22 = vpop.eup %5471  ;;  %v3712_v15 = vsel %vm48_vm1, %v6606_v43, 1.0 }
 0x37a   :  { %v1297_v30 = vmul.f32 %v5472_v22, %v6540_v50  ;;  %v5474_v24 = vpop.eup %5473 }
 0x37b   :  { %v1296_v20 = vmul.f32 %v5474_v24, %v6545_v44  ;;  %v5476_v42 = vpop.eup %5475 }
 0x37c   :  { %5293 = vmatmul.msk.f32.vlgmr.msra.gmra.mxu1 %vm1848_vm6, %v6661_v34  ;;  %5322 = vmatpush.xpose.msk.msrb.mxu2 %vm1848_vm6, %v1298_v26  ;;  %v1290_v34 = vmul.f32 %v5470_v48, %v6545_v44  ;;  %v1303_v17 = vmul.f32 %v5476_v42, %v6540_v50 }
 0x37d   :  { %5309 = vmatpush.xpose.msk.msra.mxu1 %vm1848_vm6, %v1291_v10  ;;  %v3716_v10 = vsel %vm48_vm1, %v8271_v12, 1.0 }
 0x37e   :  { %3977 = vxpose.xlu0.b32.start [1/2] (short) (narrow) %v3705_v45, 8  ;;  %4010 = vxpose.xlu2.b32.end [2/2] (short) (narrow) %v3708_v1, 8 }
 0x37f   :  { %v2697_v5 = vpop.trf.xlu2  ;;  %4041 = vxpose.xlu1.b32.start [1/2] (short) (narrow) %v3709_v39, 8  ;;  %5323 = vmatmul.msk.f32.vlgmr.msrb.gmra.mxu2 %vm1848_vm6, %v1768_v29 }
 0x380   :  { %v3321_v23 = vperm.slane %v2697_v5, 0 }
 0x381   :  { %5310 = vmatpush.xpose.msk.msra.mxu1 %vm1848_vm6, %v1290_v34 }
 0x382   :  { %v3337_v36 = vadd.f32 %v3321_v23, %v6367_v3  ;;  %v3338_v27 = vadd.f32 %v3321_v23, %v8266_v61  ;;  %v1800_v32 = vpop.trf.xlu0  ;;  %v3713_v3 = vsel %vm48_vm1, %v6455_v11, 1.0  ;;  %v1268_v11 = vmul.f32 1.442695, %v1206_v35  ;;  %v8272_v23 = vld [vmem:[#allocation15_spill] sm:$0xff]  ;;  %v8275_v35 = vld [vmem:[#allocation88_spill] sm:$0xff] }
 0x383   :  { %v1544_v60 = vpop.trf.xlu1  ;;  %5326 = vmatmul.msk.f32.vlgmr.msrb.gmra.mxu3 %vm1848_vm6, %v1800_v32  ;;  %v3717_v0 = vsel %vm48_vm1, %v8272_v23, 1.0 }
 0x384   :  { %vm3369_vm7 = vcmp.gt.f32.partialorder %v3337_v36, 0.0  ;;  %vm3370_vm8 = vcmp.gt.f32.partialorder %v3338_v27, 0.0  ;;  %v3401_v63 = vmul.f32 0.2, %v3337_v36  ;;  %v3402_v55 = vmul.f32 0.2, %v3338_v27  ;;  %5302 = vmatmul.msk.f32.vlgmr.msrb.gmra.mxu1 %vm1848_vm6, %v1544_v60 }
 0x385   :  { %5318 = vmatpush.xpose.msk.msrb.mxu1 %vm1848_vm6, %v1297_v30 }
 0x386   :  { %v3433_v6 = vsel %vm3369_vm7, %v3337_v36, %v3401_v63  ;;  %v3434_v57 = vsel %vm3370_vm8, %v3338_v27, %v3402_v55  ;;  %3978 = vxpose.xlu0.b32.end [2/2] (short) (narrow) %v3706_v51, 8  ;;  %4105 = vxpose.xlu2.b32.start [1/2] (short) (narrow) %v3713_v3, 8  ;;  %v8273_v27 = vld [vmem:[#allocation14_spill] sm:$0xff]  ;;  %v8274_v3 = vld [vmem:[#allocation12_spill] sm:$0xff] }
 0x387   :  { %v3465_v16 = vsub.f32 0.0, %v3433_v6  ;;  %v3466_v49 = vsub.f32 0.0, %v3434_v57  ;;  %4042 = vxpose.xlu1.b32.end [2/2] (short) (narrow) %v3710_v21, 8  ;;  %v3718_v51 = vsel %vm48_vm1, %v8274_v3, 1.0  ;;  %v8276_v6 = vld [vmem:[#allocation76_spill] sm:$0xff] }
 0x388   :  { %v6820_v21 = vld [vmem:[%s8090_s2 + $0x8] sm:$0xff] }
 0x389   :  { %v3499_v59 = vmul.f32 1.442695, %v3466_v49  ;;  %5319 = vmatpush.xpose.msk.msrb.mxu1 %vm1848_vm6, %v1296_v20  ;;  %v3497_v41 = vmul.f32 1.442695, %v3465_v16 }
 0x38b   :  { %5477 = vpow2.f32 %v3499_v59 }
 0x38c   :  { %5479 = vpow2.f32 %v1268_v11 }
 0x38d   :  { %5481 = vpow2.f32 %v3497_v41 }
 0x38e   :  { %4073 = vxpose.xlu0.b32.start [1/2] (short) (narrow) %v3711_v2, 8  ;;  %4106 = vxpose.xlu2.b32.end [2/2] (short) (narrow) %v3714_v53, 8 }
 0x38f   :  { %v2825_v19 = vpop.trf.xlu2  ;;  %4137 = vxpose.xlu1.b32.start [1/2] (short) (narrow) %v3715_v8, 8  ;;  %v6827_v8 = vld [vmem:[%s8090_s2] sm:$0xff]  ;;  %s5672_s2 = smov 32  }
 0x390   :  { %v3325_v29 = vperm.slane %v2825_v19, 0 }
 0x391   :  { %v5478_v46 = vpop.eup %5477 }
 0x392   :  { %v3346_v54 = vadd.f32 %v3325_v29, %v6416_v31  ;;  %v2729_v62 = vpop.trf.xlu0  ;;  %v3562_v9 = vmul.f32 %v5478_v46, %v6540_v50  ;;  %v5480_v14 = vpop.eup %5479  ;;  %v3345_v7 = vadd.f32 %v3325_v29, %v8267_v52  ;;  %v8269_v31 = vld [vmem:[#allocation85_spill] sm:$0xff]  ;;  %v3719_v50 = vsel %vm48_vm1, %v8270_v38, 1.0  ;;  %v8278_v38 = vld [vmem:[#allocation75_spill] sm:$0xff] }
 0x393   :  { %v3322_v37 = vperm.slane %v2729_v62, 0  ;;  %v1640_v40 = vpop.trf.xlu1  ;;  %v5482_v56 = vpop.eup %5481  ;;  %v1302_v43 = vmul.f32 %v5480_v14, %v6545_v44 }
 0x394   :  { %5311 = vmatmul.msk.f32.vlgmr.msra.gmra.mxu1 %vm1848_vm6, %v1640_v40  ;;  %v3410_v47 = vmul.f32 0.2, %v3346_v54  ;;  %5330 = vmatpush.xpose.msk.msra.mxu2 %vm1848_vm6, %v3562_v9  ;;  %vm3378_vm9 = vcmp.gt.f32.partialorder %v3346_v54, 0.0  ;;  %v3561_v45 = vmul.f32 %v5482_v56, %v6545_v44  ;;  %v3409_v1 = vmul.f32 0.2, %v3345_v7 }
 0x395   :  { %v3339_v4 = vadd.f32 %v3322_v37, %v8268_v28  ;;  %v3340_v13 = vadd.f32 %v3322_v37, %v8269_v31  ;;  %5327 = vmatpush.xpose.msk.msra.mxu1 %vm1848_vm6, %v1303_v17  ;;  %vm3377_vm12 = vcmp.gt.f32.partialorder %v3345_v7, 0.0  ;;  %v3720_v44 = vsel %vm48_vm1, %v8273_v27, 1.0 }
 0x396   :  { %4074 = vxpose.xlu0.b32.end [2/2] (short) (narrow) %v3712_v15, 8  ;;  %4201 = vxpose.xlu2.b32.start [1/2] (short) (narrow) %v3719_v50, 8  ;;  %v3442_v33 = vsel %vm3378_vm9, %v3346_v54, %v3410_v47  ;;  %v3441_v36 = vsel %vm3377_vm12, %v3345_v7, %v3409_v1 }
 0x397   :  { %vm3371_vm10 = vcmp.gt.f32.partialorder %v3339_v4, 0.0  ;;  %vm3372_vm11 = vcmp.gt.f32.partialorder %v3340_v13, 0.0  ;;  %v3403_v48 = vmul.f32 0.2, %v3339_v4  ;;  %v3404_v26 = vmul.f32 0.2, %v3340_v13 }
 0x398   :  { %4138 = vxpose.xlu1.b32.end [2/2] (short) (narrow) %v3716_v10, 8  ;;  %5331 = vmatpush.xpose.msk.msra.mxu2 %vm1848_vm6, %v3561_v45  ;;  %v3474_v39 = vsub.f32 0.0, %v3442_v33  ;;  %v3473_v18 = vsub.f32 0.0, %v3441_v36  ;;  %v8279_v10 = vld [vmem:[#allocation89_spill] sm:$0xff]  ;;  %v8280_v45 = vld [vmem:[#allocation86_spill] sm:$0xff]  ;;  %v8281_v33 = vld [vmem:[#allocation87_spill] sm:$0xff] }
 0x399   :  { %5328 = vmatpush.xpose.msk.msra.mxu1 %vm1848_vm6, %v1302_v43  ;;  %v3435_v25 = vsel %vm3371_vm10, %v3339_v4, %v3403_v48  ;;  %v3436_v5 = vsel %vm3372_vm11, %v3340_v13, %v3404_v26  ;;  %v8277_v4 = vld [vmem:[#allocation81_spill] sm:$0xff] }
 0x39a   :  { %v3467_v34 = vsub.f32 0.0, %v3435_v25  ;;  %v3468_v22 = vsub.f32 0.0, %v3436_v5  ;;  %v3515_v60 = vmul.f32 1.442695, %v3474_v39  ;;  %v3513_v55 = vmul.f32 1.442695, %v3473_v18 }
 0x39b   :  { %v8282_v5 = vld [vmem:[#allocation79_spill] sm:$0xff] }
 0x39c   :  { %v3503_v61 = vmul.f32 1.442695, %v3468_v22  ;;  %v3501_v32 = vmul.f32 1.442695, %v3467_v34 }
 0x39e   :  { %4169 = vxpose.xlu0.b32.start [1/2] (short) (narrow) %v3717_v0, 8  ;;  %4202 = vxpose.xlu2.b32.end [2/2] (short) (narrow) %v3720_v44, 8  ;;  %5483 = vpow2.f32 %v3503_v61 }
 0x39f   :  { %5485 = vpow2.f32 %v3501_v32  ;;  %v2889_v56 = vpop.trf.xlu2 }
 0x3a0   :  { %5487 = vpow2.f32 %v3515_v60  ;;  %v3327_v47 = vperm.slane %v2889_v56, 0 }
 0x3a1   :  { %5489 = vpow2.f32 %v3513_v55 }
 0x3a2   :  { %v2793_v30 = vpop.trf.xlu0  ;;  %v3350_v31 = vadd.f32 %v3327_v47, %v8277_v4  ;;  %v3349_v48 = vadd.f32 %v3327_v47, %v8279_v10 }
 0x3a3   :  { %v3324_v24 = vperm.slane %v2793_v30, 0  ;;  %v1736_v63 = vpop.trf.xlu1 }
 0x3a4   :  { %5320 = vmatmul.msk.f32.vlgmr.msrb.gmra.mxu1 %vm1848_vm6, %v1736_v63  ;;  %v5484_v16 = vpop.eup %5483  ;;  %v3414_v12 = vmul.f32 0.2, %v3350_v31  ;;  %vm3382_vm1 = vcmp.gt.f32.partialorder %v3350_v31, 0.0  ;;  %v3413_v0 = vmul.f32 0.2, %v3349_v48  ;;  %vm3381_vm3 = vcmp.gt.f32.partialorder %v3349_v48, 0.0 }
 0x3a5   :  { %v3343_v58 = vadd.f32 %v3324_v24, %v8275_v35  ;;  %v3344_v57 = vadd.f32 %v3324_v24, %v8276_v6  ;;  %v3564_v59 = vmul.f32 %v6820_v21, %v5484_v16  ;;  %v5486_v11 = vpop.eup %5485 }
 0x3a6   :  { %4170 = vxpose.xlu0.b32.end [2/2] (short) (narrow) %v3718_v51, 8  ;;  %v5488_v41 = vpop.eup %5487  ;;  %v3563_v29 = vmul.f32 %v6827_v8, %v5486_v11  ;;  %v3446_v39 = vsel %vm3382_vm1, %v3350_v31, %v3414_v12  ;;  %v3445_v63 = vsel %vm3381_vm3, %v3349_v48, %v3413_v0  ;;  %v8283_v11 = vld [vmem:[#allocation80_spill] sm:$0xff] }
 0x3a7   :  { %vm3375_vm13 = vcmp.gt.f32.partialorder %v3343_v58, 0.0  ;;  %vm3376_vm14 = vcmp.gt.f32.partialorder %v3344_v57, 0.0  ;;  %v3407_v49 = vmul.f32 0.2, %v3343_v58  ;;  %v3408_v20 = vmul.f32 0.2, %v3344_v57  ;;  %5333 = vmatpush.xpose.msk.msra.mxu3 %vm1848_vm6, %v3564_v59  ;;  %v5490_v62 = vpop.eup %5489 }
 0x3a8   :  { %v3570_v54 = vmul.f32 %v6820_v21, %v5488_v41  ;;  %v3569_v40 = vmul.f32 %v6827_v8, %v5490_v62  ;;  %v3478_v18 = vsub.f32 0.0, %v3446_v39  ;;  %v3477_v16 = vsub.f32 0.0, %v3445_v63 }
 0x3a9   :  { %v3439_v2 = vsel %vm3375_vm13, %v3343_v58, %v3407_v49  ;;  %v3440_v53 = vsel %vm3376_vm14, %v3344_v57, %v3408_v20 }
 0x3aa   :  { %v3471_v19 = vsub.f32 0.0, %v3439_v2  ;;  %v3472_v42 = vsub.f32 0.0, %v3440_v53  ;;  %v3523_v6 = vmul.f32 1.442695, %v3478_v18  ;;  %v8284_v2 = vld [vmem:[#allocation84_spill] sm:$0xff] }
 0x3ab   :  { %5334 = vmatpush.xpose.msk.msra.mxu3 %vm1848_vm6, %v3563_v29  ;;  %v8285_v29 = vld [vmem:[#allocation83_spill] sm:$0xff] }
 0x3ac   :  { %v3511_v46 = vmul.f32 1.442695, %v3472_v42  ;;  %v3509_v37 = vmul.f32 1.442695, %v3471_v19  ;;  %v3521_v19 = vmul.f32 1.442695, %v3477_v16 }
 0x3ae   :  { %5491 = vpow2.f32 %v3511_v46 }
 0x3af   :  { %5342 = vmatpush.xpose.msk.msrb.mxu3 %vm1848_vm6, %v3570_v54  ;;  %5493 = vpow2.f32 %v3509_v37  ;;  %v2985_v26 = vpop.trf.xlu2 }
 0x3b0   :  { %v3330_v57 = vperm.slane %v2985_v26, 0 }
 0x3b2   :  { %v2857_v7 = vpop.trf.xlu0  ;;  %v3356_v53 = vadd.f32 %v3330_v57, %v8284_v2 }
 0x3b3   :  { %5343 = vmatpush.xpose.msk.msrb.mxu3 %vm1848_vm6, %v3569_v40  ;;  %v1832_v17 = vpop.trf.xlu1  ;;  %v3326_v28 = vperm.slane %v2857_v7, 0  ;;  %v8286_v40 = vld [vmem:[#allocation94_spill] sm:$0xff] }
 0x3b4   :  { %5329 = vmatmul.msk.f32.vlgmr.msra.gmra.mxu1 %vm1848_vm6, %v1832_v17  ;;  %v5492_v9 = vpop.eup %5491  ;;  %v3355_v17 = vadd.f32 %v3330_v57, %v8286_v40  ;;  %vm3388_vm7 = vcmp.gt.f32.partialorder %v3356_v53, 0.0 }
 0x3b5   :  { %v3568_v14 = vmul.f32 %v6820_v21, %v5492_v9  ;;  %v5494_v15 = vpop.eup %5493  ;;  %v3348_v50 = vadd.f32 %v3326_v28, %v8278_v38  ;;  %v3347_v34 = vadd.f32 %v3326_v28, %v8282_v5  ;;  %v3420_v9 = vmul.f32 0.2, %v3356_v53  ;;  %v8287_v5 = vld [vmem:[#allocation10_spill] sm:$0xff] }
 0x3b6   :  { %v3567_v52 = vmul.f32 %v6827_v8, %v5494_v15  ;;  %v3419_v47 = vmul.f32 0.2, %v3355_v17  ;;  %vm3387_vm9 = vcmp.gt.f32.partialorder %v3355_v17, 0.0 }
 0x3b7   :  { %5339 = vmatpush.xpose.msk.msrb.mxu2 %vm1848_vm6, %v3568_v14  ;;  %v3412_v22 = vmul.f32 0.2, %v3348_v50  ;;  %vm3380_vm15 = vcmp.gt.f32.partialorder %v3348_v50, 0.0  ;;  %v3411_v61 = vmul.f32 0.2, %v3347_v34  ;;  %vm3379_vm4 = vcmp.gt.f32.partialorder %v3347_v34, 0.0 }
 0x3b8   :  { %v3452_v4 = vsel %vm3388_vm7, %v3356_v53, %v3420_v9  ;;  %v3451_v48 = vsel %vm3387_vm9, %v3355_v17, %v3419_v47 }
 0x3b9   :  { %v3444_v27 = vsel %vm3380_vm15, %v3348_v50, %v3412_v22  ;;  %v3443_v35 = vsel %vm3379_vm4, %v3347_v34, %v3411_v61  ;;  %v3484_v26 = vsub.f32 0.0, %v3452_v4 }
 0x3ba   :  { %v3476_v55 = vsub.f32 0.0, %v3444_v27  ;;  %v3475_v20 = vsub.f32 0.0, %v3443_v35 }
 0x3bb   :  { %5340 = vmatpush.xpose.msk.msrb.mxu2 %vm1848_vm6, %v3567_v52 }
 0x3bc   :  { %v3519_v59 = vmul.f32 1.442695, %v3476_v55  ;;  %v3517_v42 = vmul.f32 1.442695, %v3475_v20 }
 0x3bf   :  { %v6846_v3 = vpop.trf.xlu2 }
 0x3c0   :  { %v3333_v31 = vperm.slane %v6846_v3, 0 }
 0x3c2   :  { %v2953_v44 = vpop.trf.xlu0  ;;  %v3362_v34 = vadd.f32 %v3333_v31, %v8287_v5 }
 0x3c3   :  { %v2761_v13 = vpop.trf.xlu1  ;;  %v3329_v51 = vperm.slane %v2953_v44, 0 }
 0x3c4   :  { %v3323_v43 = vperm.slane %v2761_v13, 0  ;;  %v3426_v44 = vmul.f32 0.2, %v3362_v34  ;;  %vm3394_vm10 = vcmp.gt.f32.partialorder %v3362_v34, 0.0 }
 0x3c5   :  { %v3354_v41 = vadd.f32 %v3329_v51, %v8283_v11  ;;  %v3353_v46 = vadd.f32 %v3329_v51, %v8285_v29 }
 0x3c6   :  { %v3341_v1 = vadd.f32 %v3323_v43, %v8280_v45  ;;  %v3342_v25 = vadd.f32 %v3323_v43, %v8281_v33  ;;  %v3458_v51 = vsel %vm3394_vm10, %v3362_v34, %v3426_v44  ;;  %v8296_v34 = vld [vmem:[#allocation92_spill] sm:$0xff] }
 0x3c7   :  { %v3418_v54 = vmul.f32 0.2, %v3354_v41  ;;  %vm3386_vm5 = vcmp.gt.f32.partialorder %v3354_v41, 0.0  ;;  %v3417_v15 = vmul.f32 0.2, %v3353_v46  ;;  %vm3385_vm8 = vcmp.gt.f32.partialorder %v3353_v46, 0.0 }
 0x3c8   :  { %vm3373_vm0 = vcmp.gt.f32.partialorder %v3341_v1, 0.0  ;;  %vm3374_vm2 = vcmp.gt.f32.partialorder %v3342_v25, 0.0  ;;  %v3405_v23 = vmul.f32 0.2, %v3341_v1  ;;  %v3406_v36 = vmul.f32 0.2, %v3342_v25 }
 0x3c9   :  { %v3450_v56 = vsel %vm3386_vm5, %v3354_v41, %v3418_v54  ;;  %v3449_v38 = vsel %vm3385_vm8, %v3353_v46, %v3417_v15  ;;  %v3490_v20 = vsub.f32 0.0, %v3458_v51  ;;  %v8291_v46 = vld [vmem:[#allocation95_spill] sm:$0xff]  ;;  %v8292_v15 = vld [vmem:[#allocation26_spill] sm:$0xff] }
 0x3ca   :  { %v3437_v32 = vsel %vm3373_vm0, %v3341_v1, %v3405_v23  ;;  %v3438_v60 = vsel %vm3374_vm2, %v3342_v25, %v3406_v36  ;;  %v3482_v13 = vsub.f32 0.0, %v3450_v56  ;;  %v3481_v22 = vsub.f32 0.0, %v3449_v38 }
 0x3cb   :  { %v3469_v30 = vsub.f32 0.0, %v3437_v32  ;;  %v3470_v24 = vsub.f32 0.0, %v3438_v60  ;;  %v3483_v23 = vsub.f32 0.0, %v3451_v48  ;;  %v3535_v36 = vmul.f32 1.442695, %v3484_v26  ;;  %v8288_v60 = vld [vmem:[#allocation93_spill] sm:$0xff] }
 0x3cc   :  { %v3531_v39 = vmul.f32 1.442695, %v3482_v13  ;;  %v3529_v32 = vmul.f32 1.442695, %v3481_v22  ;;  %v3547_v40 = vmul.f32 1.442695, %v3490_v20 }
 0x3cd   :  { %v3507_v58 = vmul.f32 1.442695, %v3470_v24  ;;  %v3505_v49 = vmul.f32 1.442695, %v3469_v30  ;;  %v3533_v18 = vmul.f32 1.442695, %v3483_v23  ;;  %v3361_v30 = vadd.f32 %v3333_v31, %v8288_v60 }
 0x3ce   :  { %v8289_v24 = vld [vmem:[#allocation91_spill] sm:$0xff]  ;;  %v8298_v60 = vld [vmem:[#allocation13_spill] sm:$0xff] }
 0x3cf   :  { %5495 = vpow2.f32 %v3507_v58  ;;  %v6851_v62 = vpop.trf.xlu2  ;;  %v3425_v35 = vmul.f32 0.2, %v3361_v30  ;;  %vm3393_vm11 = vcmp.gt.f32.partialorder %v3361_v30, 0.0  ;;  %v8295_v48 = vld [vmem:[#allocation11_spill] sm:$0xff] }
 0x3d0   :  { %5497 = vpow2.f32 %v3523_v6  ;;  %v8290_v6 = vld [vmem:[#allocation78_spill] sm:$0xff]  ;;  %v3336_v41 = vperm.slane %v6851_v62, 0 }
 0x3d1   :  { %5499 = vpow2.f32 %v3505_v49  ;;  %v3457_v11 = vsel %vm3393_vm11, %v3361_v30, %v3425_v35 }
 0x3d2   :  { %5501 = vpow2.f32 %v3519_v59  ;;  %v6861_v33 = vpop.trf.xlu0  ;;  %v3368_v56 = vadd.f32 %v3336_v41, %v8292_v15  ;;  %v3367_v26 = vadd.f32 %v3336_v41, %v8295_v48  ;;  %v8299_v15 = vld [vmem:[#allocation38_spill] sm:$0xff] }
 0x3d3   :  { %5503 = vpow2.f32 %v3521_v19  ;;  %v2921_v25 = vpop.trf.xlu1  ;;  %v3332_v17 = vperm.slane %v6861_v33, 0 }
 0x3d4   :  { %5505 = vpow2.f32 %v3517_v42  ;;  %v3328_v61 = vperm.slane %v2921_v25, 0  ;;  %vm3400_vm1 = vcmp.gt.f32.partialorder %v3368_v56, 0.0  ;;  %vm3399_vm2 = vcmp.gt.f32.partialorder %v3367_v26, 0.0 }
 0x3d5   :  { %v5496_v37 = vpop.eup %5495  ;;  %5507 = vpow2.f32 %v3531_v39  ;;  %v8297_v39 = vld [vmem:[#allocation9_spill] sm:$0xff] }
 0x3d6   :  { %v5498_v14 = vpop.eup %5497  ;;  %v3566_v52 = vmul.f32 %v6820_v21, %v5496_v37  ;;  %5509 = vpow2.f32 %v3535_v36  ;;  %v3352_v63 = vadd.f32 %v3328_v61, %v8289_v24  ;;  %v3351_v57 = vadd.f32 %v3328_v61, %v8290_v6 }
 0x3d7   :  { %v5500_v7 = vpop.eup %5499  ;;  %v3574_v12 = vmul.f32 %v6820_v21, %v5498_v14  ;;  %5511 = vpow2.f32 %v3529_v32  ;;  %v3489_v14 = vsub.f32 0.0, %v3457_v11  ;;  %v3359_v23 = vadd.f32 %v3332_v17, %v8297_v39 }
 0x3d8   :  { %v5502_v28 = vpop.eup %5501  ;;  %5336 = vmatpush.xpose.msk.msrb.mxu1 %vm1848_vm6, %v3566_v52  ;;  %v3565_v50 = vmul.f32 %v6827_v8, %v5500_v7  ;;  %5513 = vpow2.f32 %v3533_v18  ;;  %v3416_v16 = vmul.f32 0.2, %v3352_v63  ;;  %vm3384_vm12 = vcmp.gt.f32.partialorder %v3352_v63, 0.0 }
 0x3d9   :  { %v5504_v10 = vpop.eup %5503  ;;  %v3572_v45 = vmul.f32 %v6820_v21, %v5502_v28  ;;  %v3415_v42 = vmul.f32 0.2, %v3351_v57  ;;  %vm3383_vm13 = vcmp.gt.f32.partialorder %v3351_v57, 0.0  ;;  %v8293_v28 = vld [vmem:[#allocation82_spill] sm:$0xff]  ;;  %5515 = vpow2.f32 %v3547_v40 }
 0x3da   :  { %v5506_v1 = vpop.eup %5505  ;;  %v3573_v0 = vmul.f32 %v6827_v8, %v5504_v10  ;;  %v3448_v29 = vsel %vm3384_vm12, %v3352_v63, %v3416_v16  ;;  %v3545_v10 = vmul.f32 1.442695, %v3489_v14  ;;  %v3431_v36 = vmul.f32 0.2, %v3367_v26 }
 0x3db   :  { %v3571_v27 = vmul.f32 %v6827_v8, %v5506_v1  ;;  %v5508_v58 = vpop.eup %5507  ;;  %v3480_v52 = vsub.f32 0.0, %v3448_v29  ;;  %v3447_v47 = vsel %vm3383_vm13, %v3351_v57, %v3415_v42  ;;  %v3423_v63 = vmul.f32 0.2, %v3359_v23 }
 0x3dc   :  { %5337 = vmatpush.xpose.msk.msrb.mxu1 %vm1848_vm6, %v3565_v50  ;;  %v5510_v59 = vpop.eup %5509  ;;  %v3578_v53 = vmul.f32 %v6820_v21, %v5508_v58  ;;  %v8294_v50 = vld [vmem:[#allocation90_spill] sm:$0xff]  ;;  %v3479_v1 = vsub.f32 0.0, %v3447_v47  ;;  %5517 = vpow2.f32 %v3545_v10  ;;  %vm3391_vm4 = vcmp.gt.f32.partialorder %v3359_v23, 0.0 }
 0x3dd   :  { %v5512_v19 = vpop.eup %5511  ;;  %v3580_v62 = vmul.f32 %v6820_v21, %v5510_v59  ;;  %v3527_v33 = vmul.f32 1.442695, %v3480_v52  ;;  %v3463_v58 = vsel %vm3399_vm2, %v3367_v26, %v3431_v36 }
 0x3de   :  { %v5514_v37 = vpop.eup %5513  ;;  %v3577_v7 = vmul.f32 %v6827_v8, %v5512_v19  ;;  %v3525_v44 = vmul.f32 1.442695, %v3479_v1  ;;  %v3495_v19 = vsub.f32 0.0, %v3463_v58 }
 0x3df   :  { %v3737_v43 = vpop.trf.xlu2  ;;  %v3579_v38 = vmul.f32 %v6827_v8, %v5514_v37  ;;  %v5516_v61 = vpop.eup %5515  ;;  %5519 = vpow2.f32 %v3527_v33 }
 0x3e0   :  { %5332 = vmatmul.msk.f32.vlgmr.msra.gmra.mxu2 %vm1848_vm6, %v3737_v43  ;;  %5345 = vmatpush.xpose.msk.msra.mxu1 %vm1848_vm6, %v3572_v45  ;;  %v3360_v43 = vadd.f32 %v3332_v17, %v8294_v50  ;;  %v3432_v45 = vmul.f32 0.2, %v3368_v56  ;;  %v3586_v35 = vmul.f32 %v6820_v21, %v5516_v61  ;;  %5521 = vpow2.f32 %v3525_v44 }
 0x3e1   :  { %5348 = vmatpush.xpose.msk.msra.mxu2 %vm1848_vm6, %v3574_v12 }
 0x3e2   :  { %v6873_v55 = vpop.trf.xlu0  ;;  %vm3392_vm0 = vcmp.gt.f32.partialorder %v3360_v43, 0.0 }
 0x3e3   :  { %v3017_v3 = vpop.trf.xlu1 }
 0x3e4   :  { %5346 = vmatpush.xpose.msk.msra.mxu1 %vm1848_vm6, %v3571_v27  ;;  %v3331_v49 = vperm.slane %v3017_v3, 0  ;;  %v3464_v27 = vsel %vm3400_vm1, %v3368_v56, %v3432_v45 }
 0x3e5   :  { %5349 = vmatpush.xpose.msk.msra.mxu2 %vm1848_vm6, %v3573_v0  ;;  %v3424_v0 = vmul.f32 0.2, %v3360_v43  ;;  %v3496_v51 = vsub.f32 0.0, %v3464_v27 }
 0x3e6   :  { %v3358_v54 = vadd.f32 %v3331_v49, %v8291_v46  ;;  %v3357_v4 = vadd.f32 %v3331_v49, %v8293_v28  ;;  %v5518_v49 = vpop.eup %5517 }
 0x3e7   :  { %v3456_v3 = vsel %vm3392_vm0, %v3360_v43, %v3424_v0  ;;  %v5520_v41 = vpop.eup %5519  ;;  %v3559_v42 = vmul.f32 1.442695, %v3496_v51 }
 0x3e8   :  { %v3422_v31 = vmul.f32 0.2, %v3358_v54  ;;  %vm3390_vm14 = vcmp.gt.f32.partialorder %v3358_v54, 0.0  ;;  %v3421_v25 = vmul.f32 0.2, %v3357_v4  ;;  %vm3389_vm15 = vcmp.gt.f32.partialorder %v3357_v4, 0.0  ;;  %v5522_v14 = vpop.eup %5521 }
 0x3e9   :  { %v3488_v20 = vsub.f32 0.0, %v3456_v3 }
 0x3ea   :  { %v3454_v5 = vsel %vm3390_vm14, %v3358_v54, %v3422_v31  ;;  %v3453_v18 = vsel %vm3389_vm15, %v3357_v4, %v3421_v25  ;;  %v3585_v54 = vmul.f32 %v6827_v8, %v5518_v49  ;;  %v3575_v4 = vmul.f32 %v6827_v8, %v5522_v14 }
 0x3eb   :  { %v3486_v32 = vsub.f32 0.0, %v3454_v5  ;;  %v3485_v6 = vsub.f32 0.0, %v3453_v18  ;;  %v3543_v40 = vmul.f32 1.442695, %v3488_v20 }
 0x3ed   :  { %v3539_v57 = vmul.f32 1.442695, %v3486_v32  ;;  %v3537_v29 = vmul.f32 1.442695, %v3485_v6 }
 0x3ef   :  { %v3801_v2 = vpop.trf.xlu2  ;;  %5523 = vpow2.f32 %v3539_v57 }
 0x3f0   :  { %5338 = vmatmul.msk.f32.vlgmr.msrb.gmra.mxu1 %vm1848_vm6, %v3801_v2  ;;  %v3455_v2 = vsel %vm3391_vm4, %v3359_v23, %v3423_v63  ;;  %5525 = vpow2.f32 %v3559_v42 }
 0x3f1   :  { %5354 = vmatpush.xpose.msk.msrb.mxu1 %vm1848_vm6, %v3578_v53  ;;  %v3335_v53 = vperm.slane %v6873_v55, 0  ;;  %v3487_v37 = vsub.f32 0.0, %v3455_v2  ;;  %v3557_v55 = vmul.f32 1.442695, %v3495_v19  ;;  %5527 = vpow2.f32 %v3537_v29 }
 0x3f2   :  { %v3833_v9 = vpop.trf.xlu0  ;;  %5529 = vpow2.f32 %v3543_v40 }
 0x3f3   :  { %5341 = vmatmul.msk.f32.vlgmr.msrb.gmra.mxu2 %vm1848_vm6, %v3833_v9  ;;  %v3113_v13 = vpop.trf.xlu1  ;;  %v3366_v56 = vadd.f32 %v3335_v53, %v8299_v15  ;;  %v3541_v28 = vmul.f32 1.442695, %v3487_v37  ;;  %5531 = vpow2.f32 %v3557_v55 }
 0x3f4   :  { %5357 = vmatpush.xpose.msk.msrb.mxu2 %vm1848_vm6, %v3580_v62  ;;  %v3334_v12 = vperm.slane %v3113_v13, 0  ;;  %v3576_v62 = vmul.f32 %v6820_v21, %v5520_v41  ;;  %v8300_v13 = vld [vmem:[#allocation97_spill] sm:$0xff]  ;;  %v6942_v41 = vpop.f32.mrf.mxu3 }
 0x3f5   :  { %5355 = vmatpush.xpose.msk.msrb.mxu1 %vm1848_vm6, %v3577_v7  ;;  %v5524_v31 = vpop.eup %5523  ;;  %v3430_v50 = vmul.f32 0.2, %v3366_v56  ;;  %vm3398_vm7 = vcmp.gt.f32.partialorder %v3366_v56, 0.0  ;;  %vm2346_vm11 = vweird.f32 %v6942_v41 }
 0x3f6   :  { %v3364_v22 = vadd.f32 %v3334_v12, %v8296_v34  ;;  %v3363_v30 = vadd.f32 %v3334_v12, %v8298_v60  ;;  %v5526_v12 = vpop.eup %5525  ;;  %v3582_v10 = vmul.f32 %v6820_v21, %v5524_v31 }
 0x3f7   :  { %v5528_v48 = vpop.eup %5527  ;;  %v3462_v45 = vsel %vm3398_vm7, %v3366_v56, %v3430_v50  ;;  %v3592_v25 = vmul.f32 %v6820_v21, %v5526_v12  ;;  %v2350_v50 = vand.u32 2147483647, %v6942_v41 }
 0x3f8   :  { %5358 = vmatpush.xpose.msk.msrb.mxu2 %vm1848_vm6, %v3579_v38  ;;  %v3428_v24 = vmul.f32 0.2, %v3364_v22  ;;  %vm3396_vm3 = vcmp.gt.f32.partialorder %v3364_v22, 0.0  ;;  %v3427_v59 = vmul.f32 0.2, %v3363_v30  ;;  %vm3395_vm5 = vcmp.gt.f32.partialorder %v3363_v30, 0.0  ;;  %v5530_v1 = vpop.eup %5529 }
 0x3f9   :  { %v3365_v38 = vadd.f32 %v3335_v53, %v8300_v13  ;;  %v5532_v5 = vpop.eup %5531  ;;  %v3494_v34 = vsub.f32 0.0, %v3462_v45  ;;  %v3584_v36 = vmul.f32 %v6820_v21, %v5530_v1  ;;  %vm7021_vm2 = vcmp.eq.f32.partialorder %v2350_v50, 8.507059e+37 }
 0x3fa   :  { %v3460_v11 = vsel %vm3396_vm3, %v3364_v22, %v3428_v24  ;;  %v3459_v17 = vsel %vm3395_vm5, %v3363_v30, %v3427_v59  ;;  %v3581_v22 = vmul.f32 %v6827_v8, %v5528_v48  ;;  %v3591_v27 = vmul.f32 %v6827_v8, %v5532_v5  ;;  %v6936_v59 = vpop.f32.mrf.mxu1 }
 0x3fb   :  { %v3492_v46 = vsub.f32 0.0, %v3460_v11  ;;  %v3491_v52 = vsub.f32 0.0, %v3459_v17  ;;  %v3429_v26 = vmul.f32 0.2, %v3365_v38  ;;  %vm3397_vm8 = vcmp.gt.f32.partialorder %v3365_v38, 0.0 }
 0x3fc   :  { %v3555_v32 = vmul.f32 1.442695, %v3494_v34  ;;  %v6965_v40 = vpop.f32.mrf.mxu3  ;;  %vm2318_vm9 = vweird.f32 %v6936_v59  ;;  %v2324_v31 = vand.u32 2147483648, %v6936_v59 }
 0x3fd   :  { %v3551_v7 = vmul.f32 1.442695, %v3492_v46  ;;  %v3549_v43 = vmul.f32 1.442695, %v3491_v52  ;;  %v3461_v23 = vsel %vm3397_vm8, %v3365_v38, %v3429_v26 }
 0x3fe   :  { %v3493_v44 = vsub.f32 0.0, %v3461_v23 }
 0x3ff   :  { %v3929_v16 = vpop.trf.xlu2  ;;  %5533 = vpow2.f32 %v3551_v7 }
 0x400   :  { %5350 = vmatmul.msk.f32.vlgmr.msra.gmra.mxu2 %vm1848_vm6, %v3929_v16  ;;  %5535 = vpow2.f32 %v3541_v28  ;;  %v3553_v63 = vmul.f32 1.442695, %v3493_v44 }
 0x401   :  { %5366 = vmatpush.xpose.msk.msra.mxu2 %vm1848_vm6, %v3586_v35  ;;  %5537 = vpow2.f32 %v3549_v43  ;;  %v2352_v43 = vand.u32 2147483648, %v6942_v41 }
 0x402   :  { %v3865_v47 = vpop.trf.xlu0  ;;  %5539 = vpow2.f32 %v3555_v32 }
 0x403   :  { %v3769_v9 = vpop.trf.xlu1  ;;  %5541 = vpow2.f32 %v3553_v63 }
 0x404   :  { %5335 = vmatmul.msk.f32.vlgmr.msra.gmra.mxu3 %vm1848_vm6, %v3769_v9  ;;  %5543 = vrcp.f32 %v6936_v59 }
 0x405   :  { %5367 = vmatpush.xpose.msk.msra.mxu2 %vm1848_vm6, %v3585_v54  ;;  %5351 = vmatpush.xpose.msk.msra.mxu3 %vm1848_vm6, %v3576_v62  ;;  %v5534_v39 = vpop.eup %5533  ;;  %5545 = vrcp.f32 %v6942_v41 }
 0x406   :  { %v5536_v61 = vpop.eup %5535  ;;  %v3588_v60 = vmul.f32 %v6820_v21, %v5534_v39  ;;  %v2325_v39 = vor.u32 1.1754944e-38, %v2324_v31 }
 0x407   :  { %v5538_v30 = vpop.eup %5537  ;;  %v3583_v24 = vmul.f32 %v6827_v8, %v5536_v61 }
 0x408   :  { %v3587_v3 = vmul.f32 %v6827_v8, %v5538_v30  ;;  %v5540_v51 = vpop.eup %5539 }
 0x409   :  { %5352 = vmatpush.xpose.msk.msra.mxu3 %vm1848_vm6, %v3575_v4  ;;  %v3590_v6 = vmul.f32 %v6820_v21, %v5540_v51  ;;  %v5542_v57 = vpop.eup %5541  ;;  %v6940_v21 = vpop.f32.mrf.mxu2 }
 0x40a   :  { %v3589_v49 = vmul.f32 %v6827_v8, %v5542_v57  ;;  %5547 = vrcp.f32 %v6940_v21  ;;  %v6948_v8 = vpop.f32.mrf.mxu1  ;;  %v6950_v53 = vpop.eup %5543  ;;  %vm2332_vm13 = vweird.f32 %v6940_v21  ;;  %v2338_v45 = vand.u32 2147483648, %v6940_v21 }
 0x40b   :  { %v6952_v19 = vpop.eup %5545  ;;  %5549 = vrcp.f32 %v6948_v8  ;;  %v2314_v46 = vmul.f32 %v6950_v53, %v6936_v59  ;;  %vm2319_vm10 = vweird.f32 %v6950_v53  ;;  %v2336_v34 = vand.u32 2147483647, %v6940_v21 }
 0x40c   :  { %5344 = vmatmul.msk.f32.vlgmr.msrb.gmra.mxu3 %vm1848_vm6, %v3865_v47  ;;  %v2342_v54 = vmul.f32 %v6952_v19, %v6942_v41  ;;  %v2322_v47 = vand.u32 2147483647, %v6936_v59  ;;  %vm2347_vm12 = vweird.f32 %v6952_v19  ;;  %vm6999_vm1 = vmor %vm2318_vm9, %vm2319_vm10  ;;  %vm2360_vm4 = vweird.f32 %v6948_v8 }
 0x40d   :  { %5360 = vmatpush.xpose.msk.msrb.mxu3 %vm1848_vm6, %v3582_v10  ;;  %v2315_v62 = vsub.f32 1.0, %v2314_v46  ;;  %vm7013_vm0 = vmor %vm2346_vm11, %vm2347_vm12  ;;  %v2364_v32 = vand.u32 2147483647, %v6948_v8  ;;  %v2339_v30 = vor.u32 1.1754944e-38, %v2338_v45  ;;  %vm2337_vm7 = vcmp.eq.f32.partialorder %v2336_v34, 8.507059e+37 }
 0x40e   :  { %v2343_v14 = vsub.f32 1.0, %v2342_v54  ;;  %vm7007_vm15 = vcmp.eq.f32.partialorder %v2322_v47, 8.507059e+37  ;;  %vm2388_vm12 = vweird.f32 %v6965_v40  ;;  %v2394_v47 = vand.u32 2147483648, %v6965_v40 }
 0x40f   :  { %v4025_v33 = vpop.trf.xlu2  ;;  %v2316_v55 = vmul.f32 %v6950_v53, %v2315_v62  ;;  %vm7068_vm9 = vcmp.eq.f32.partialorder %v2364_v32, 8.507059e+37 }
 0x410   :  { %5359 = vmatmul.msk.f32.vlgmr.msrb.gmra.mxu2 %vm1848_vm6, %v4025_v33  ;;  %v6957_v29 = vpop.eup %5547  ;;  %v2344_v28 = vmul.f32 %v6952_v19, %v2343_v14 }
 0x411   :  { %5375 = vmatpush.xpose.msk.msrb.mxu2 %vm1848_vm6, %v3592_v25  ;;  %5361 = vmatpush.xpose.msk.msrb.mxu3 %vm1848_vm6, %v3581_v22  ;;  %v6955_v42 = vpop.f32.mrf.mxu2  ;;  %v2328_v37 = vmul.f32 %v6957_v29, %v6940_v21  ;;  %v6968_v9 = vpop.eup %5549  ;;  %v2317_v10 = vadd.f32 %v6950_v53, %v2316_v55  ;;  %vm2333_vm14 = vweird.f32 %v6957_v29 }
 0x412   :  { %v3897_v0 = vpop.trf.xlu0  ;;  %5551 = vrcp.f32 %v6955_v42  ;;  %v2356_v56 = vmul.f32 %v6968_v9, %v6948_v8  ;;  %v6977_v7 = vpop.f32.mrf.mxu1  ;;  %v2345_v26 = vadd.f32 %v6952_v19, %v2344_v28  ;;  %vm7030_vm3 = vmor %vm2332_vm13, %vm2333_vm14  ;;  %vm2361_vm5 = vweird.f32 %v6968_v9 }
 0x413   :  { %5347 = vmatmul.msk.f32.vlgmr.msra.gmra.mxu1 %vm1848_vm6, %v3897_v0  ;;  %v3961_v18 = vpop.trf.xlu1  ;;  %5553 = vrcp.f32 %v6965_v40  ;;  %v2329_v15 = vsub.f32 1.0, %v2328_v37  ;;  %v2353_v0 = vor.u32 1.1754944e-38, %v2352_v43  ;;  %v2321_v44 = vsel %vm6999_vm1, %v6950_v53, %v2317_v10  ;;  %vm7064_vm8 = vmor %vm2360_vm4, %vm2361_vm5 }
 0x414   :  { %5363 = vmatpush.xpose.msk.msra.mxu1 %vm1848_vm6, %v3584_v36  ;;  %5353 = vmatmul.msk.f32.vlgmr.msra.gmra.mxu3 %vm1848_vm6, %v3961_v18  ;;  %v2357_v12 = vsub.f32 1.0, %v2356_v56  ;;  %v2366_v18 = vand.u32 2147483648, %v6948_v8  ;;  %vm2374_vm10 = vweird.f32 %v6955_v42  ;;  %v2378_v46 = vand.u32 2147483647, %v6955_v42 }
 0x415   :  { %5376 = vmatpush.xpose.msk.msrb.mxu2 %vm1848_vm6, %v3591_v27  ;;  %5369 = vmatpush.xpose.msk.msra.mxu3 %vm1848_vm6, %v3588_v60  ;;  %v2330_v13 = vmul.f32 %v6957_v29, %v2329_v15  ;;  %v7034_v27 = vpop.f32.mrf.mxu3  ;;  %v2349_v60 = vsel %vm7013_vm0, %v6952_v19, %v2345_v26  ;;  %v2380_v62 = vand.u32 2147483648, %v6955_v42  ;;  %v2392_v43 = vand.u32 2147483647, %v6965_v40 }
 0x416   :  { %v2358_v36 = vmul.f32 %v6968_v9, %v2357_v12  ;;  %vm7110_vm1 = vcmp.eq.f32.partialorder %v2378_v46, 8.507059e+37  ;;  %v2436_v61 = vand.u32 2147483648, %v7034_v27 }
 0x417   :  { %v2331_v5 = vadd.f32 %v6957_v29, %v2330_v13  ;;  %v2381_v26 = vor.u32 1.1754944e-38, %v2380_v62  ;;  %vm2393_vm0 = vcmp.eq.f32.partialorder %v2392_v43, 8.507059e+37 }
 0x418   :  { %5364 = vmatpush.xpose.msk.msra.mxu1 %vm1848_vm6, %v3583_v24  ;;  %v6982_v4 = vpop.eup %5551  ;;  %v2359_v57 = vadd.f32 %v6968_v9, %v2358_v36 }
 0x419   :  { %5370 = vmatpush.xpose.msk.msra.mxu3 %vm1848_vm6, %v3587_v3  ;;  %v6975_v52 = vpop.f32.mrf.mxu2  ;;  %v6988_v38 = vpop.eup %5553  ;;  %v2370_v1 = vmul.f32 %v6982_v4, %v6955_v42  ;;  %v2335_v3 = vsel %vm7030_vm3, %v6957_v29, %v2331_v5  ;;  %vm2375_vm11 = vweird.f32 %v6982_v4 }
 0x41a   :  { %5555 = vrcp.f32 %v6975_v52  ;;  %v2384_v22 = vmul.f32 %v6988_v38, %v6965_v40  ;;  %vm2389_vm13 = vweird.f32 %v6988_v38  ;;  %vm7098_vm14 = vmor %vm2374_vm10, %vm2375_vm11  ;;  %v2422_v36 = vand.u32 2147483648, %v6975_v52 }
 0x41b   :  { %v2371_v24 = vsub.f32 1.0, %v2370_v1  ;;  %5557 = vrcp.f32 %v7034_v27 }
 0x41c   :  { %v2385_v51 = vsub.f32 1.0, %v2384_v22  ;;  %5559 = vrcp.f32 %v6977_v7  ;;  %v2395_v22 = vor.u32 1.1754944e-38, %v2394_v47 }
 0x41d   :  { %v2372_v53 = vmul.f32 %v6982_v4, %v2371_v24  ;;  %v7092_v28 = vpop.f32.mrf.mxu3 }
 0x41e   :  { %v2386_v54 = vmul.f32 %v6988_v38, %v2385_v51 }
 0x41f   :  { %v4121_v35 = vpop.trf.xlu2  ;;  %v2373_v55 = vadd.f32 %v6982_v4, %v2372_v53 }
 0x420   :  { %5368 = vmatmul.msk.f32.vlgmr.msra.gmra.mxu2 %vm1848_vm6, %v4121_v35  ;;  %v7046_v63 = vpop.eup %5555  ;;  %v2387_v50 = vadd.f32 %v6988_v38, %v2386_v54 }
 0x421   :  { %v7052_v35 = vpop.f32.mrf.mxu2  ;;  %v2412_v19 = vmul.f32 %v7046_v63, %v6975_v52  ;;  %v7083_v14 = vpop.eup %5557  ;;  %v2377_v34 = vsel %vm7098_vm14, %v6982_v4, %v2373_v55  ;;  %vm2417_vm3 = vweird.f32 %v7046_v63  ;;  %v2434_v4 = vand.u32 2147483647, %v7034_v27 }
 0x422   :  { %v3993_v58 = vpop.trf.xlu0  ;;  %5561 = vrcp.f32 %v7052_v35  ;;  %v7088_v56 = vpop.eup %5559  ;;  %v2464_v55 = vand.u32 2147483648, %v7052_v35 }
 0x423   :  { %5356 = vmatmul.msk.f32.vlgmr.msrb.gmra.mxu1 %vm1848_vm6, %v3993_v58  ;;  %v4057_v16 = vpop.trf.xlu1  ;;  %v7054_v58 = vpop.f32.mrf.mxu1  ;;  %5563 = vrcp.f32 %v7092_v28  ;;  %vm7174_vm10 = vcmp.eq.f32.partialorder %v2434_v4, 8.507059e+37  ;;  %vm2403_vm11 = vweird.f32 %v7088_v56 }
 0x424   :  { %5372 = vmatpush.xpose.msk.msrb.mxu1 %vm1848_vm6, %v3590_v6  ;;  %5362 = vmatmul.msk.f32.vlgmr.msrb.gmra.mxu3 %vm1848_vm6, %v4057_v16  ;;  %v2326_v6 = vsel %vm7007_vm15, %v2325_v39, %v2321_v44  ;;  %v2354_v16 = vsel %vm7021_vm2, %v2353_v0, %v2349_v60  ;;  %vm7118_vm15 = vmor %vm2388_vm12, %vm2389_vm13  ;;  %v2420_v0 = vand.u32 2147483647, %v6975_v52  ;;  %vm2416_vm2 = vweird.f32 %v6975_v52 }
 0x425   :  { %v2537_v29 = vperm.slane %v2326_v6, 4  ;;  %v2539_v37 = vperm.slane %v2354_v16, 4  ;;  %v2391_v23 = vsel %vm7118_vm15, %v6988_v38, %v2387_v50  ;;  %v2382_v44 = vsel %vm7110_vm1, %v2381_v26, %v2377_v34  ;;  %vm7160_vm4 = vmor %vm2416_vm2, %vm2417_vm3  ;;  %v7218_v48 = vpop.f32.mrf.mxu3 }
 0x426   :  { %5565 = vrcp.f32 %v7054_v58  ;;  %v2396_v60 = vsel %vm2393_vm0, %v2395_v22, %v2391_v23  ;;  %vm7164_vm5 = vcmp.eq.f32.partialorder %v2420_v0, 8.507059e+37  ;;  %v2541_v16 = vperm.slane %v2382_v44, 4 }
 0x427   :  { %v7105_v12 = vmul.f32 %v2537_v29, %v6936_v59  ;;  %v7108_v10 = vmul.f32 %v2539_v37, %v6942_v41  ;;  %v2426_v59 = vmul.f32 %v7083_v14, %v7034_v27  ;;  %v2398_v41 = vmul.f32 %v7088_v56, %v6977_v7 }
 0x428   :  { %5373 = vmatpush.xpose.msk.msrb.mxu1 %vm1848_vm6, %v3589_v49  ;;  %v7138_v39 = vpop.eup %5561  ;;  %v2437_v49 = vor.u32 1.1754944e-38, %v2436_v61  ;;  %vm2458_vm13 = vweird.f32 %v7052_v35  ;;  %vm2472_vm0 = vweird.f32 %v7092_v28  ;;  %v2476_v22 = vand.u32 2147483647, %v7092_v28 }
 0x429   :  { %v7130_v33 = vpop.f32.mrf.mxu2  ;;  %v2427_v32 = vsub.f32 1.0, %v2426_v59  ;;  %v2454_v24 = vmul.f32 %v7138_v39, %v7052_v35  ;;  %vm2459_vm2 = vweird.f32 %v7138_v39  ;;  %vm2444_vm3 = vweird.f32 %v7054_v58 }
 0x42a   :  { %v2504_v45 = vand.u32 2147483647, %v7130_v33 }
 0x42b   :  { %v7132_v25 = vpop.f32.mrf.mxu1  ;;  %v2455_v54 = vsub.f32 1.0, %v2454_v24 }
 0x42d   :  { %v2456_v59 = vmul.f32 %v7138_v39, %v2455_v54 }
 0x42f   :  { %v4217_v20 = vpop.trf.xlu2  ;;  %v2457_v44 = vadd.f32 %v7138_v39, %v2456_v59 }
 0x430   :  { %5377 = vmatmul.msk.f32.vlgmr.msrb.gmra.mxu2 %vm1848_vm6, %v4217_v20  ;;  %v2408_v20 = vand.u32 2147483648, %v6977_v7 }
 0x432   :  { %v4089_v11 = vpop.trf.xlu0 }
 0x433   :  { %5365 = vmatmul.msk.f32.vlgmr.msra.gmra.mxu1 %vm1848_vm6, %v4089_v11  ;;  %v2367_v11 = vor.u32 1.1754944e-38, %v2366_v18  ;;  %v2399_v18 = vsub.f32 1.0, %v2398_v41  ;;  %v7196_v47 = vpop.f32.mrf.mxu1 }
 0x434   :  { %v4153_v2 = vpop.trf.xlu1 }
 0x435   :  { %5371 = vmatmul.msk.f32.vlgmr.msra.gmra.mxu3 %vm1848_vm6, %v4153_v2  ;;  %v2340_v2 = vsel %vm2337_vm7, %v2339_v30, %v2335_v3  ;;  %v7158_v3 = vpop.eup %5563  ;;  %vm2430_vm7 = vweird.f32 %v7034_v27 }
 0x436   :  { %v2538_v15 = vperm.slane %v2340_v2, 4  ;;  %v2428_v2 = vmul.f32 %v7083_v14, %v2427_v32  ;;  %v2468_v37 = vmul.f32 %v7158_v3, %v7092_v28 }
 0x438   :  { %v7123_v1 = vmul.f32 %v2538_v15, %v6940_v21  ;;  %v2462_v15 = vand.u32 2147483647, %v7052_v35  ;;  %v2429_v50 = vadd.f32 %v7083_v14, %v2428_v2  ;;  %v2469_v41 = vsub.f32 1.0, %v2468_v37 }
 0x43a   :  { %vm7234_vm15 = vcmp.eq.f32.partialorder %v2462_v15, 8.507059e+37  ;;  %v2470_v32 = vmul.f32 %v7158_v3, %v2469_v41 }
 0x43c   :  { %v2471_v62 = vadd.f32 %v7158_v3, %v2470_v32 }
 0x442   :  { %v4185_v17 = vpop.trf.xlu0 }
 0x443   :  { %5374 = vmatmul.msk.f32.vlgmr.msrb.gmra.mxu1 %vm1848_vm6, %v4185_v17  ;;  %v2363_v17 = vsel %vm7064_vm8, %v6968_v9, %v2359_v57  ;;  %v2413_v9 = vsub.f32 1.0, %v2412_v19  ;;  %v2423_v57 = vor.u32 1.1754944e-38, %v2422_v36  ;;  %vm2402_vm8 = vweird.f32 %v6977_v7 }
 0x444   :  { %v2368_v31 = vsel %vm7068_vm9, %v2367_v11, %v2363_v17  ;;  %v2542_v11 = vperm.slane %v2396_v60, 4  ;;  %vm2431_vm9 = vweird.f32 %v7083_v14  ;;  %v2400_v19 = vmul.f32 %v7088_v56, %v2399_v18  ;;  %v7187_v17 = vpop.eup %5565  ;;  %vm7227_vm1 = vmor %vm2402_vm8, %vm2403_vm11 }
 0x445   :  { %v2540_v5 = vperm.slane %v2368_v31, 4  ;;  %v2414_v21 = vmul.f32 %v7046_v63, %v2413_v9  ;;  %v2409_v9 = vor.u32 1.1754944e-38, %v2408_v20  ;;  %v2478_v31 = vand.u32 2147483648, %v7092_v28  ;;  %vm7212_vm14 = vmor %vm2430_vm7, %vm2431_vm9 }
 0x446   :  { %v7221_v26 = vmul.f32 %v2542_v11, %v6965_v40  ;;  %v2465_v40 = vor.u32 1.1754944e-38, %v2464_v55  ;;  %v2433_v36 = vsel %vm7212_vm14, %v7083_v14, %v2429_v50  ;;  %vm7273_vm8 = vcmp.eq.f32.partialorder %v2476_v22, 8.507059e+37 }
 0x447   :  { %v7153_v38 = vmul.f32 %v2540_v5, %v6948_v8  ;;  %v2415_v30 = vadd.f32 %v7046_v63, %v2414_v21  ;;  %v2406_v8 = vand.u32 2147483647, %v6977_v7  ;;  %v2440_v5 = vmul.f32 %v7187_v17, %v7054_v58 }
 0x448   :  { %v7242_v0 = vor.u32 1.1754944e-38, %v2478_v31  ;;  %v7271_v6 = vsel %vm7174_vm10, %v2437_v49, %v2433_v36  ;;  %vm2473_vm9 = vweird.f32 %v7158_v3  ;;  %v2506_v11 = vand.u32 2147483648, %v7130_v33 }
 0x449   :  { %v2419_v46 = vsel %vm7160_vm4, %v7046_v63, %v2415_v30  ;;  %vm7190_vm12 = vcmp.eq.f32.partialorder %v2406_v8, 8.507059e+37  ;;  %v7199_v63 = vmul.f32 %v2541_v16, %v6955_v42  ;;  %v2401_v42 = vadd.f32 %v7088_v56, %v2400_v19  ;;  %vm7261_vm4 = vmor %vm2458_vm13, %vm2459_vm2 }
 0x44a   :  { %v7205_v13 = vsel %vm7164_vm5, %v2423_v57, %v2419_v46  ;;  %v2441_v18 = vsub.f32 1.0, %v2440_v5  ;;  %v2448_v8 = vand.u32 2147483647, %v7054_v58  ;;  %v2450_v16 = vand.u32 2147483648, %v7054_v58 }
 0x44b   :  { %v2544_v23 = vperm.slane %v7205_v13, 4  ;;  %v2405_v4 = vsel %vm7227_vm1, %v7088_v56, %v2401_v42  ;;  %v2461_v53 = vsel %vm7261_vm4, %v7138_v39, %v2457_v44  ;;  %vm2445_vm13 = vweird.f32 %v7187_v17 }
 0x44c   :  { %v7282_v20 = vsel %vm7190_vm12, %v2409_v9, %v2405_v4  ;;  %v2442_v15 = vmul.f32 %v7187_v17, %v2441_v18  ;;  %v2545_v9 = vperm.slane %v7271_v6, 4  ;;  %vm7315_vm12 = vmor %vm2472_vm0, %vm2473_vm9  ;;  %v7320_v43 = vor.u32 1.1754944e-38, %v2450_v16 }
 0x44d   :  { %v2543_v31 = vperm.slane %v7282_v20, 4  ;;  %v7324_v42 = vsel %vm7234_vm15, %v2465_v40, %v2461_v53  ;;  %v7327_v59 = vor.u32 1.1754944e-38, %v2506_v11  ;;  %vm2500_vm14 = vweird.f32 %v7130_v33  ;;  %vm7359_vm2 = vmor %vm2444_vm3, %vm2445_vm13 }
 0x44e   :  { %v2475_v4 = vsel %vm7315_vm12, %v7158_v3, %v2471_v62  ;;  %vm2514_vm15 = vweird.f32 %v7218_v48  ;;  %v2518_v53 = vand.u32 2147483647, %v7218_v48  ;;  %vm2486_vm3 = vweird.f32 %v7132_v25 }
 0x44f   :  { %v7370_v46 = vsel %vm7273_vm8, %v7242_v0, %v2475_v4  ;;  %v2490_v55 = vand.u32 2147483647, %v7132_v25  ;;  %vm7392_vm8 = vcmp.eq.f32.partialorder %v2448_v8, 8.507059e+37  ;;  %vm7397_vm9 = vcmp.eq.f32.partialorder %v2504_v45, 8.507059e+37 }
 0x450   :  { %v2548_v6 = vperm.slane %v7370_v46, 4 }
 0x463   :  { %v7179_v29 = vpop.f32.mrf.mxu2 }
 0x464   :  { %5567 = vrcp.f32 %v7179_v29  ;;  %v4708_v60 = vand.u32 2147483648, %v7179_v29  ;;  %vm4702_vm5 = vweird.f32 %v7179_v29  ;;  %v4706_v24 = vand.u32 2147483647, %v7179_v29 }
 0x465   :  { %5569 = vrcp.f32 %v7130_v33 }
 0x466   :  { %5571 = vrcp.f32 %v7218_v48  ;;  %v4709_v54 = vor.u32 1.1754944e-38, %v4708_v60  ;;  %vm7305_vm11 = vcmp.eq.f32.partialorder %v4706_v24, 8.507059e+37  ;;  %v2520_v60 = vand.u32 2147483648, %v7218_v48 }
 0x467   :  { %5573 = vrcp.f32 %v7132_v25 }
 0x46a   :  { %v5568_v21 = vpop.eup %5567 }
 0x46b   :  { %v4698_v61 = vmul.f32 %v5568_v21, %v7179_v29  ;;  %v7257_v30 = vpop.eup %5569  ;;  %vm4703_vm7 = vweird.f32 %v5568_v21 }
 0x46c   :  { %v7286_v2 = vpop.eup %5571  ;;  %v2496_v19 = vmul.f32 %v7257_v30, %v7130_v33  ;;  %vm7297_vm10 = vmor %vm4702_vm5, %vm4703_vm7  ;;  %vm2501_vm1 = vweird.f32 %v7257_v30 }
 0x46d   :  { %v4699_v56 = vsub.f32 1.0, %v4698_v61  ;;  %v7267_v51 = vpop.f32.mrf.mxu1  ;;  %v7301_v37 = vpop.eup %5573  ;;  %v2510_v36 = vmul.f32 %v7286_v2, %v7218_v48 }
 0x46e   :  { %5575 = vrcp.f32 %v7267_v51  ;;  %v2497_v22 = vsub.f32 1.0, %v2496_v19  ;;  %v2482_v34 = vmul.f32 %v7301_v37, %v7132_v25  ;;  %vm4730_vm0 = vweird.f32 %v7267_v51 }
 0x46f   :  { %v4700_v49 = vmul.f32 %v5568_v21, %v4699_v56  ;;  %5577 = vrcp.f32 %v7196_v47  ;;  %v4736_v14 = vand.u32 2147483648, %v7267_v51  ;;  %v4734_v16 = vand.u32 2147483647, %v7267_v51 }
 0x470   :  { %v2498_v11 = vmul.f32 %v7257_v30, %v2497_v22  ;;  %v2483_v19 = vsub.f32 1.0, %v2482_v34  ;;  %vm2487_vm12 = vweird.f32 %v7301_v37 }
 0x471   :  { %v4701_v39 = vadd.f32 %v5568_v21, %v4700_v49  ;;  %v2511_v49 = vsub.f32 1.0, %v2510_v36  ;;  %v4737_v57 = vor.u32 1.1754944e-38, %v4736_v14  ;;  %vm4735_vm7 = vcmp.eq.f32.partialorder %v4734_v16, 8.507059e+37 }
 0x472   :  { %v2499_v36 = vadd.f32 %v7257_v30, %v2498_v11  ;;  %v2484_v4 = vmul.f32 %v7301_v37, %v2483_v19 }
 0x473   :  { %v4705_v41 = vsel %vm7297_vm10, %v5568_v21, %v4701_v39  ;;  %v7343_v21 = vadd.f32 %v7187_v17, %v2442_v15  ;;  %v7379_v39 = vor.u32 1.1754944e-38, %v2520_v60  ;;  %vm2515_vm10 = vweird.f32 %v7286_v2 }
 0x474   :  { %v5576_v5 = vpop.eup %5575  ;;  %v4710_v40 = vsel %vm7305_vm11, %v4709_v54, %v4705_v41  ;;  %vm7404_vm11 = vcmp.eq.f32.partialorder %v2518_v53, 8.507059e+37  ;;  %v2485_v19 = vadd.f32 %v7301_v37, %v2484_v4 }
 0x475   :  { %v4921_v61 = vperm.slane %v4710_v40, 4  ;;  %v4726_v44 = vmul.f32 %v5576_v5, %v7267_v51  ;;  %v7349_v18 = vpop.eup %5577  ;;  %vm4731_vm4 = vweird.f32 %v5576_v5  ;;  %v2447_v15 = vsel %vm7359_vm2, %v7187_v17, %v7343_v21 }
 0x476   :  { %v7347_v32 = vpop.f32.mrf.mxu2  ;;  %v2524_v54 = vmul.f32 %v7349_v18, %v7196_v47  ;;  %vm7384_vm5 = vmor %vm4730_vm0, %vm4731_vm4  ;;  %v2512_v40 = vmul.f32 %v7286_v2, %v2511_v49 }
 0x477   :  { %5579 = vrcp.f32 %v7347_v32  ;;  %v4937_v56 = vmul.f32 %v4921_v61, %v7179_v29  ;;  %v4727_v24 = vsub.f32 1.0, %v4726_v44  ;;  %vm4744_vm13 = vweird.f32 %v7347_v32  ;;  %vm7420_vm0 = vmor %vm2500_vm14, %vm2501_vm1 }
 0x478   :  { %v2525_v8 = vsub.f32 1.0, %v2524_v54  ;;  %v2513_v49 = vadd.f32 %v7286_v2, %v2512_v40  ;;  %vm7435_vm14 = vcmp.eq.f32.partialorder %v2490_v55, 8.507059e+37  ;;  %vm7441_vm1 = vmor %vm2486_vm3, %vm2487_vm12  ;;  %v2503_v55 = vsel %vm7420_vm0, %v7257_v30, %v2499_v36 }
 0x479   :  { %v4953_v29 = vadd.f32 %v4937_v56, %v7105_v12  ;;  %v4728_v62 = vmul.f32 %v5576_v5, %v4727_v24  ;;  %v2492_v12 = vand.u32 2147483648, %v7132_v25  ;;  %v4750_v56 = vand.u32 2147483648, %v7347_v32 }
 0x47a   :  { %v2526_v0 = vmul.f32 %v7349_v18, %v2525_v8  ;;  %v2489_v36 = vsel %vm7441_vm1, %v7301_v37, %v2485_v19  ;;  %v7485_v37 = vmul.f32 %v2545_v9, %v7034_v27  ;;  %v2452_v27 = vsel %vm7392_vm8, %v7320_v43, %v2447_v15 }
 0x47b   :  { %v4729_v50 = vadd.f32 %v5576_v5, %v4728_v62  ;;  %v7408_v44 = vmul.f32 0.5, %v4953_v29  ;;  %v2493_v29 = vor.u32 1.1754944e-38, %v2492_v12  ;;  %v2532_v12 = vand.u32 2147483647, %v7196_v47 }
 0x47c   :  { %v4751_v8 = vor.u32 1.1754944e-38, %v4750_v56  ;;  %v2527_v56 = vadd.f32 %v7349_v18, %v2526_v0  ;;  %v2508_v13 = vsel %vm7397_vm9, %v7327_v59, %v2503_v55  ;;  %v2546_v3 = vperm.slane %v2452_v27, 4 }
 0x47d   :  { %v5580_v41 = vpop.eup %5579  ;;  %v4733_v60 = vsel %vm7384_vm5, %v5576_v5, %v4729_v50  ;;  %v4748_v5 = vand.u32 2147483647, %v7347_v32  ;;  %vm7430_vm5 = vmor %vm2514_vm15, %vm2515_vm10  ;;  %vm2528_vm15 = vweird.f32 %v7196_v47  ;;  %v2494_v20 = vsel %vm7435_vm14, %v2493_v29, %v2489_v36 }
 0x47e   :  { %v4740_v45 = vmul.f32 %v5580_v41, %v7347_v32  ;;  %v4738_v14 = vsel %vm4735_vm7, %v4737_v57, %v4733_v60  ;;  %vm4745_vm4 = vweird.f32 %v5580_v41  ;;  %v5001_v57 = vmul.f32 1.442695, %v7408_v44 }
 0x47f   :  { %v4923_v16 = vperm.slane %v4738_v14, 4  ;;  %vm7456_vm3 = vmor %vm4744_vm13, %vm4745_vm4  ;;  %vm2529_vm7 = vweird.f32 %v7349_v18  ;;  %vm4749_vm10 = vcmp.eq.f32.partialorder %v4748_v5, 8.507059e+37  ;;  %v2517_v30 = vsel %vm7430_vm5, %v7286_v2, %v2513_v49 }
 0x480   :  { %v4741_v11 = vsub.f32 1.0, %v4740_v45  ;;  %v2534_v14 = vand.u32 2147483648, %v7196_v47  ;;  %v7480_v2 = vmul.f32 %v2544_v23, %v6975_v52  ;;  %vm7492_vm12 = vmor %vm2528_vm15, %vm2529_vm7  ;;  %v7499_v52 = vmul.f32 %v2543_v31, %v6977_v7 }
 0x481   :  { %v4939_v50 = vmul.f32 %v4923_v16, %v7267_v51  ;;  %v2547_v16 = vperm.slane %v7324_v42, 4  ;;  %v2522_v7 = vsel %vm7404_vm11, %v7379_v39, %v2517_v30  ;;  %v2531_v31 = vsel %vm7492_vm12, %v7349_v18, %v2527_v56 }
 0x482   :  { %v4742_v40 = vmul.f32 %v5580_v41, %v4741_v11  ;;  %v2535_v9 = vor.u32 1.1754944e-38, %v2534_v14  ;;  %vm2533_vm2 = vcmp.eq.f32.partialorder %v2532_v12, 8.507059e+37  ;;  %v2550_v46 = vperm.slane %v2508_v13, 4 }
 0x483   :  { %v4955_v51 = vadd.f32 %v4939_v50, %v7108_v10  ;;  %v7462_v45 = vpop.f32.mrf.mxu2  ;;  %v7526_v21 = vmul.f32 %v2547_v16, %v7052_v35  ;;  %v2551_v39 = vperm.slane %v2522_v7, 4  ;;  %v2549_v22 = vperm.slane %v2494_v20, 4 }
 0x484   :  { %v4743_v60 = vadd.f32 %v5580_v41, %v4742_v40  ;;  %5581 = vrcp.f32 %v7462_v45  ;;  %v7532_v61 = vmul.f32 %v2548_v6, %v7092_v28  ;;  %v2536_v5 = vsel %vm2533_vm2, %v2535_v9, %v2531_v31 }
 0x485   :  { %5583 = vpow2.f32 %v5001_v57  ;;  %v7473_v10 = vmul.f32 0.5, %v4955_v51  ;;  %v4792_v35 = vand.u32 2147483648, %v7462_v45  ;;  %vm4786_vm8 = vweird.f32 %v7462_v45 }
 0x486   :  { %v4747_v24 = vsel %vm7456_vm3, %v5580_v41, %v4743_v60  ;;  %v7538_v53 = vmul.f32 %v2546_v3, %v7054_v58  ;;  %v7546_v28 = vmul.f32 %v2551_v39, %v7218_v48  ;;  %v7549_v29 = vmul.f32 %v2549_v22, %v7132_v25 }
 0x487   :  { %v4752_v41 = vsel %vm4749_vm10, %v4751_v8, %v4747_v24  ;;  %v7518_v17 = vpop.f32.mrf.mxu3  ;;  %v5005_v43 = vmul.f32 1.442695, %v7473_v10  ;;  %v2552_v62 = vperm.slane %v2536_v5, 4  ;;  %vm4985_vm11 = vcmp.gt.f32.partialorder %v7408_v44, 0.0 }
 0x488   :  { %v4924_v23 = vperm.slane %v4752_v41, 4  ;;  %5585 = vrcp.f32 %v7518_v17  ;;  %v4793_v48 = vor.u32 1.1754944e-38, %v4792_v35  ;;  %v4720_v12 = vand.u32 2147483647, %v7518_v17 }
 0x489   :  { %5587 = vpow2.f32 %v5005_v43  ;;  %v4722_v4 = vand.u32 2147483648, %v7518_v17  ;;  %vm4716_vm4 = vweird.f32 %v7518_v17  ;;  %v7580_v24 = vmul.f32 %v2552_v62, %v7196_v47 }
 0x48a   :  { %v4940_v42 = vmul.f32 %v4924_v23, %v7347_v32  ;;  %v5582_v59 = vpop.eup %5581  ;;  %v4790_v32 = vand.u32 2147483647, %v7462_v45  ;;  %vm4987_vm14 = vcmp.gt.f32.partialorder %v7473_v10, 0.0  ;;  %vm7587_vm1 = vcmp.eq.f32.partialorder %v4720_v12, 8.507059e+37 }
 0x48b   :  { %v5584_v15 = vpop.eup %5583  ;;  %v4782_v18 = vmul.f32 %v5582_v59, %v7462_v45  ;;  %vm4787_vm9 = vweird.f32 %v5582_v59  ;;  %v4723_v27 = vor.u32 1.1754944e-38, %v4722_v4 }
 0x48c   :  { %v4956_v34 = vadd.f32 %v4940_v42, %v7153_v38  ;;  %v7541_v38 = vmul.f32 %v2550_v46, %v7130_v33  ;;  %v5378_v19 = vadd.f32 -1.0, %v5584_v15  ;;  %vm7554_vm13 = vmor %vm4786_vm8, %vm4787_vm9  ;;  %vm7558_vm0 = vcmp.eq.f32.partialorder %v4790_v32, 8.507059e+37 }
 0x48d   :  { %v4783_v49 = vsub.f32 1.0, %v4782_v18 }
 0x48e   :  { %v7543_v54 = vmul.f32 0.5, %v4956_v34  ;;  %v5586_v50 = vpop.eup %5585  ;;  %v7569_v8 = vsel %vm4985_vm11, %v7408_v44, %v5378_v19 }
 0x48f   :  { %v4784_v0 = vmul.f32 %v5582_v59, %v4783_v49  ;;  %v7563_v25 = vpop.f32.mrf.mxu3  ;;  %v4712_v55 = vmul.f32 %v5586_v50, %v7518_v17  ;;  %v5588_v60 = vpop.eup %5587  ;;  %vm4717_vm5 = vweird.f32 %v5586_v50  ;;  %v5152_v7 = vrot.slane %v7569_v8, 2 }
 0x490   :  { %v7551_v57 = vpop.f32.mrf.mxu1  ;;  %v5007_v51 = vmul.f32 1.442695, %v7543_v54  ;;  %v5380_v23 = vadd.f32 -1.0, %v5588_v60  ;;  %vm7593_vm15 = vmor %vm4716_vm4, %vm4717_vm5  ;;  %vm4758_vm10 = vweird.f32 %v7563_v25  ;;  %v4764_v3 = vand.u32 2147483648, %v7563_v25 }
 0x491   :  { %5589 = vrcp.f32 %v7551_v57  ;;  %v4785_v40 = vadd.f32 %v5582_v59, %v4784_v0  ;;  %v4713_v36 = vsub.f32 1.0, %v4712_v55  ;;  %v4776_v14 = vand.u32 2147483647, %v7551_v57 }
 0x492   :  { %5591 = vrcp.f32 %v7563_v25  ;;  %v4778_v16 = vand.u32 2147483648, %v7551_v57  ;;  %vm4772_vm3 = vweird.f32 %v7551_v57  ;;  %v4765_v55 = vor.u32 1.1754944e-38, %v4764_v3 }
 0x493   :  { %v4789_v30 = vsel %vm7554_vm13, %v5582_v59, %v4785_v40  ;;  %v7577_v56 = vpop.f32.mrf.mxu2  ;;  %v4714_v11 = vmul.f32 %v5586_v50, %v4713_v36  ;;  %vm7600_vm7 = vcmp.eq.f32.partialorder %v4776_v14, 8.507059e+37  ;;  %v4762_v59 = vand.u32 2147483647, %v7563_v25 }
 0x494   :  { %v4794_v44 = vsel %vm7558_vm0, %v4793_v48, %v4789_v30  ;;  %5593 = vrcp.f32 %v7577_v56  ;;  %v4779_v42 = vor.u32 1.1754944e-38, %v4778_v16  ;;  %v4832_v32 = vand.u32 2147483647, %v7577_v56 }
 0x495   :  { %v4927_v6 = vperm.slane %v4794_v44, 4  ;;  %5595 = vpow2.f32 %v5007_v51  ;;  %v4715_v20 = vadd.f32 %v5586_v50, %v4714_v11  ;;  %vm7623_vm9 = vcmp.eq.f32.partialorder %v4762_v59, 8.507059e+37 }
 0x496   :  { %vm4828_vm11 = vweird.f32 %v7577_v56  ;;  %v7641_v60 = vsel %vm4987_vm14, %v7473_v10, %v5380_v23  ;;  %vm7646_vm4 = vcmp.eq.f32.partialorder %v4832_v32, 8.507059e+37  ;;  %vm4988_vm14 = vcmp.gt.f32.partialorder %v7543_v54, 0.0 }
 0x497   :  { %v5590_v13 = vpop.eup %5589  ;;  %v7607_v46 = vpop.f32.mrf.mxu3  ;;  %v4719_v15 = vsel %vm7593_vm15, %v5586_v50, %v4715_v20  ;;  %v4943_v18 = vmul.f32 %v4927_v6, %v7462_v45  ;;  %v4834_v50 = vand.u32 2147483648, %v7577_v56 }
 0x498   :  { %v4768_v9 = vmul.f32 %v5590_v13, %v7551_v57  ;;  %v5592_v43 = vpop.eup %5591  ;;  %vm4773_vm12 = vweird.f32 %v5590_v13  ;;  %v4724_v5 = vsel %vm7587_vm1, %v4723_v27, %v4719_v15  ;;  %5597 = vrcp.f32 %v7607_v46 }
 0x499   :  { %v4754_v22 = vmul.f32 %v5592_v43, %v7563_v25  ;;  %v4922_v35 = vperm.slane %v4724_v5, 4  ;;  %vm4759_vm2 = vweird.f32 %v5592_v43  ;;  %vm7619_vm8 = vmor %vm4772_vm3, %vm4773_vm12  ;;  %v4959_v12 = vadd.f32 %v4943_v18, %v7499_v52 }
 0x49a   :  { %v4769_v39 = vsub.f32 1.0, %v4768_v9  ;;  %v5594_v34 = vpop.eup %5593  ;;  %vm7634_vm13 = vmor %vm4758_vm10, %vm4759_vm2  ;;  %v4835_v41 = vor.u32 1.1754944e-38, %v4834_v50  ;;  %v4806_v9 = vand.u32 2147483648, %v7607_v46  ;;  %vm4800_vm1 = vweird.f32 %v7607_v46 }
 0x49b   :  { %v4755_v19 = vsub.f32 1.0, %v4754_v22  ;;  %v4824_v45 = vmul.f32 %v5594_v34, %v7577_v56  ;;  %v5596_v58 = vpop.eup %5595  ;;  %v4938_v33 = vmul.f32 %v4922_v35, %v7518_v17  ;;  %vm4829_vm0 = vweird.f32 %v5594_v34 }
 0x49c   :  { %v4770_v49 = vmul.f32 %v5590_v13, %v4769_v39  ;;  %vm7662_vm5 = vmor %vm4828_vm11, %vm4829_vm0  ;;  %v7667_v6 = vmul.f32 0.5, %v4959_v12  ;;  %v4804_v15 = vand.u32 2147483647, %v7607_v46  ;;  %v5381_v39 = vadd.f32 -1.0, %v5596_v58 }
 0x49d   :  { %v4756_v40 = vmul.f32 %v5592_v43, %v4755_v19  ;;  %v4825_v51 = vsub.f32 1.0, %v4824_v45  ;;  %v4954_v17 = vadd.f32 %v4938_v33, %v7123_v1 }
 0x49e   :  { %v4771_v48 = vadd.f32 %v5590_v13, %v4770_v49  ;;  %v5598_v44 = vpop.eup %5597  ;;  %v5013_v35 = vmul.f32 1.442695, %v7667_v6 }
 0x49f   :  { %v4757_v36 = vadd.f32 %v5592_v43, %v4756_v40  ;;  %v4826_v11 = vmul.f32 %v5594_v34, %v4825_v51  ;;  %v7655_v10 = vmul.f32 0.5, %v4954_v17  ;;  %v4796_v23 = vmul.f32 %v5598_v44, %v7607_v46 }
 0x4a0   :  { %v4775_v30 = vsel %vm7619_vm8, %v5590_v13, %v4771_v48  ;;  %v7650_v14 = vpop.f32.mrf.mxu1  ;;  %vm4801_vm15 = vweird.f32 %v5598_v44  ;;  %v7715_v17 = vsel %vm4988_vm14, %v7543_v54, %v5381_v39 }
 0x4a1   :  { %v4780_v16 = vsel %vm7600_vm7, %v4779_v42, %v4775_v30  ;;  %5599 = vrcp.f32 %v7650_v14  ;;  %v4761_v27 = vsel %vm7634_vm13, %v5592_v43, %v4757_v36  ;;  %v4827_v20 = vadd.f32 %v5594_v34, %v4826_v11  ;;  %vm7692_vm3 = vmor %vm4800_vm1, %vm4801_vm15 }
 0x4a2   :  { %v4926_v1 = vperm.slane %v4780_v16, 4  ;;  %v4766_v47 = vsel %vm7623_vm9, %v4765_v55, %v4761_v27  ;;  %v5003_v31 = vmul.f32 1.442695, %v7655_v10  ;;  %v4797_v3 = vsub.f32 1.0, %v4796_v23 }
 0x4a3   :  { %v4925_v42 = vperm.slane %v4766_v47, 4  ;;  %v4831_v59 = vsel %vm7662_vm5, %v5594_v34, %v4827_v20  ;;  %v7683_v32 = vpop.f32.mrf.mxu2  ;;  %v4807_v34 = vor.u32 1.1754944e-38, %v4806_v9  ;;  %vm4805_vm7 = vcmp.eq.f32.partialorder %v4804_v15, 8.507059e+37 }
 0x4a4   :  { %v4942_v43 = vmul.f32 %v4926_v1, %v7551_v57  ;;  %v4836_v5 = vsel %vm7646_vm4, %v4835_v41, %v4831_v59  ;;  %v4798_v19 = vmul.f32 %v5598_v44, %v4797_v3  ;;  %5601 = vpow2.f32 %v5003_v31 }
 0x4a5   :  { %v4941_v18 = vmul.f32 %v4925_v42, %v7563_v25  ;;  %v4930_v49 = vperm.slane %v4836_v5, 4  ;;  %5603 = vrcp.f32 %v7683_v32  ;;  %v4818_v48 = vand.u32 2147483647, %v7650_v14 }
 0x4a6   :  { %v4958_v22 = vadd.f32 %v4942_v43, %v7221_v26  ;;  %v4799_v50 = vadd.f32 %v5598_v44, %v4798_v19  ;;  %v4820_v40 = vand.u32 2147483648, %v7650_v14  ;;  %vm4814_vm10 = vweird.f32 %v7650_v14 }
 0x4a7   :  { %v5600_v57 = vpop.eup %5599  ;;  %v4957_v0 = vadd.f32 %v4941_v18, %v7199_v63  ;;  %v4946_v45 = vmul.f32 %v4930_v49, %v7577_v56  ;;  %v7699_v58 = vpop.f32.mrf.mxu3  ;;  %vm7719_vm2 = vcmp.eq.f32.partialorder %v4818_v48, 8.507059e+37  ;;  %vm4870_vm8 = vweird.f32 %v7683_v32 }
 0x4a8   :  { %v7686_v62 = vmul.f32 0.5, %v4958_v22  ;;  %v4810_v25 = vmul.f32 %v5600_v57, %v7650_v14  ;;  %v4803_v56 = vsel %vm7692_vm3, %v5598_v44, %v4799_v50  ;;  %5605 = vrcp.f32 %v7699_v58 }
 0x4a9   :  { %v7701_v33 = vmul.f32 0.5, %v4957_v0  ;;  %v4962_v12 = vadd.f32 %v4946_v45, %v7538_v53  ;;  %v4808_v51 = vsel %vm4805_vm7, %v4807_v34, %v4803_v56  ;;  %vm4815_vm12 = vweird.f32 %v5600_v57 }
 0x4aa   :  { %v4811_v63 = vsub.f32 1.0, %v4810_v25  ;;  %v5011_v55 = vmul.f32 1.442695, %v7686_v62  ;;  %v4928_v36 = vperm.slane %v4808_v51, 4  ;;  %v5602_v52 = vpop.eup %5601  ;;  %5607 = vpow2.f32 %v5013_v35  ;;  %vm7728_vm9 = vmor %vm4814_vm10, %vm4815_vm12 }
 0x4ab   :  { %v5009_v4 = vmul.f32 1.442695, %v7701_v33  ;;  %v7717_v30 = vmul.f32 0.5, %v4962_v12  ;;  %v4821_v16 = vor.u32 1.1754944e-38, %v4820_v40  ;;  %v5604_v11 = vpop.eup %5603  ;;  %v4874_v27 = vand.u32 2147483647, %v7683_v32 }
 0x4ac   :  { %v4812_v53 = vmul.f32 %v5600_v57, %v4811_v63  ;;  %5609 = vpow2.f32 %v5011_v55  ;;  %v4944_v54 = vmul.f32 %v4928_v36, %v7607_v46  ;;  %v4866_v23 = vmul.f32 %v5604_v11, %v7683_v32 }
 0x4ad   :  { %v5019_v41 = vmul.f32 1.442695, %v7717_v30  ;;  %5611 = vpow2.f32 %v5009_v4  ;;  %v4876_v47 = vand.u32 2147483648, %v7683_v32  ;;  %v5379_v9 = vadd.f32 -1.0, %v5602_v52 }
 0x4ae   :  { %v4813_v13 = vadd.f32 %v5600_v57, %v4812_v53  ;;  %v5606_v20 = vpop.eup %5605  ;;  %vm4871_vm11 = vweird.f32 %v5604_v11  ;;  %vm4842_vm13 = vweird.f32 %v7699_v58  ;;  %v4846_v46 = vand.u32 2147483647, %v7699_v58 }
 0x4af   :  { %5613 = vpow2.f32 %v5019_v41  ;;  %v4867_v42 = vsub.f32 1.0, %v4866_v23  ;;  %v4838_v59 = vmul.f32 %v5606_v20, %v7699_v58  ;;  %v4960_v3 = vadd.f32 %v4944_v54, %v7480_v2  ;;  %vm7757_vm5 = vmor %vm4870_vm8, %vm4871_vm11 }
 0x4b0   :  { %v7737_v31 = vpop.f32.mrf.mxu1  ;;  %v4817_v43 = vsel %vm7728_vm9, %v5600_v57, %v4813_v13  ;;  %vm4843_vm0 = vweird.f32 %v5606_v20  ;;  %v4848_v39 = vand.u32 2147483648, %v7699_v58  ;;  %v7746_v22 = vpop.eup %5607  ;;  %vm4986_vm4 = vcmp.gt.f32.partialorder %v7655_v10, 0.0 }
 0x4b1   :  { %v4822_v15 = vsel %vm7719_vm2, %v4821_v16, %v4817_v43  ;;  %v4868_v5 = vmul.f32 %v5604_v11, %v4867_v42  ;;  %v4839_v35 = vsub.f32 1.0, %v4838_v59  ;;  %5615 = vrcp.f32 %v7737_v31  ;;  %vm7776_vm15 = vmor %vm4842_vm13, %vm4843_vm0 }
 0x4b2   :  { %v4929_v18 = vperm.slane %v4822_v15, 4  ;;  %v7751_v57 = vpop.eup %5609  ;;  %vm7761_vm14 = vcmp.eq.f32.partialorder %v4874_v27, 8.507059e+37  ;;  %v4877_v34 = vor.u32 1.1754944e-38, %v4876_v47  ;;  %v7767_v26 = vsel %vm4986_vm4, %v7655_v10, %v5379_v9 }
 0x4b3   :  { %v7749_v49 = vpop.f32.mrf.mxu2  ;;  %v5612_v0 = vpop.eup %5611  ;;  %v4869_v45 = vadd.f32 %v5604_v11, %v4868_v5  ;;  %v4840_v50 = vmul.f32 %v5606_v20, %v4839_v35  ;;  %vm4994_vm1 = vcmp.gt.f32.partialorder %v7717_v30, 0.0  ;;  %v7771_v63 = vmul.f32 0.5, %v4960_v3 }
 0x4b4   :  { %5617 = vrcp.f32 %v7749_v49  ;;  %v4945_v25 = vmul.f32 %v4929_v18, %v7650_v14  ;;  %v4849_v40 = vor.u32 1.1754944e-38, %v4848_v39  ;;  %vm4856_vm3 = vweird.f32 %v7737_v31 }
 0x4b5   :  { %v4860_v10 = vand.u32 2147483647, %v7737_v31  ;;  %v5614_v55 = vpop.eup %5613  ;;  %v4873_v12 = vsel %vm7757_vm5, %v5604_v11, %v4869_v45  ;;  %v4841_v56 = vadd.f32 %v5606_v20, %v4840_v50  ;;  %vm4847_vm7 = vcmp.eq.f32.partialorder %v4846_v46, 8.507059e+37 }
 0x4b6   :  { %v4961_v14 = vadd.f32 %v4945_v25, %v7485_v37  ;;  %v7785_v4 = vadd.f32 -1.0, %v5612_v0  ;;  %v4878_v51 = vsel %vm7761_vm14, %v4877_v34, %v4873_v12  ;;  %v4862_v36 = vand.u32 2147483648, %v7737_v31 }
 0x4b7   :  { %v4916_v53 = vand.u32 2147483647, %v7749_v49  ;;  %v5616_v44 = vpop.eup %5615  ;;  %v4933_v37 = vperm.slane %v4878_v51, 4  ;;  %v4845_v11 = vsel %vm7776_vm15, %v5606_v20, %v4841_v56  ;;  %vm4912_vm10 = vweird.f32 %v7749_v49 }
 0x4b8   :  { %v7791_v52 = vpop.f32.mrf.mxu3  ;;  %v7793_v16 = vmul.f32 0.5, %v4961_v14  ;;  %v4850_v54 = vsel %vm4847_vm7, %v4849_v40, %v4845_v11  ;;  %v4852_v1 = vmul.f32 %v5616_v44, %v7737_v31  ;;  %vm7799_vm12 = vcmp.eq.f32.partialorder %v4860_v10, 8.507059e+37 }
 0x4b9   :  { %v4918_v13 = vand.u32 2147483648, %v7749_v49  ;;  %5619 = vrcp.f32 %v7791_v52  ;;  %v5387_v23 = vadd.f32 -1.0, %v5614_v55  ;;  %v4949_v9 = vmul.f32 %v4933_v37, %v7683_v32 }
 0x4ba   :  { %v5618_v41 = vpop.eup %5617  ;;  %v5017_v47 = vmul.f32 1.442695, %v7793_v16  ;;  %v4931_v20 = vperm.slane %v4850_v54, 4  ;;  %v4853_v46 = vsub.f32 1.0, %v4852_v1  ;;  %v4863_v43 = vor.u32 1.1754944e-38, %v4862_v36 }
 0x4bb   :  { %v4908_v42 = vmul.f32 %v5618_v41, %v7749_v49  ;;  %vm7808_vm2 = vcmp.eq.f32.partialorder %v4916_v53, 8.507059e+37  ;;  %v4965_v3 = vadd.f32 %v4949_v9, %v7549_v29  ;;  %vm4857_vm8 = vweird.f32 %v5616_v44 }
 0x4bc   :  { %5621 = vpow2.f32 %v5017_v47  ;;  %v4947_v15 = vmul.f32 %v4931_v20, %v7699_v58  ;;  %v4854_v39 = vmul.f32 %v5616_v44, %v4853_v46  ;;  %vm4913_vm9 = vweird.f32 %v5618_v41  ;;  %vm7828_vm13 = vmor %vm4856_vm3, %vm4857_vm8 }
 0x4bd   :  { %v4909_v18 = vsub.f32 1.0, %v4908_v42  ;;  %v4888_v32 = vand.u32 2147483647, %v7791_v52  ;;  %v7818_v5 = vsel %vm4994_vm1, %v7717_v30, %v5387_v23  ;;  %v7820_v35 = vmul.f32 0.5, %v4965_v3  ;;  %vm7839_vm0 = vmor %vm4912_vm10, %vm4913_vm9 }
 0x4be   :  { %v4963_v2 = vadd.f32 %v4947_v15, %v7526_v21  ;;  %v4919_v19 = vor.u32 1.1754944e-38, %v4918_v13  ;;  %vm4993_vm11 = vcmp.gt.f32.partialorder %v7793_v16, 0.0  ;;  %v4855_v58 = vadd.f32 %v5616_v44, %v4854_v39 }
 0x4bf   :  { %v5620_v29 = vpop.eup %5619  ;;  %v4910_v25 = vmul.f32 %v5618_v41, %v4909_v18  ;;  %v5025_v30 = vmul.f32 1.442695, %v7820_v35  ;;  %v4890_v48 = vand.u32 2147483648, %v7791_v52  ;;  %vm4989_vm4 = vcmp.gt.f32.partialorder %v7701_v33, 0.0 }
 0x4c0   :  { %v7823_v34 = vpop.f32.mrf.mxu1  ;;  %v7834_v45 = vmul.f32 0.5, %v4963_v2  ;;  %v4880_v50 = vmul.f32 %v5620_v29, %v7791_v52  ;;  %v4859_v40 = vsel %vm7828_vm13, %v5616_v44, %v4855_v58  ;;  %vm4884_vm5 = vweird.f32 %v7791_v52 }
 0x4c1   :  { %5623 = vrcp.f32 %v7823_v34  ;;  %v4911_v10 = vadd.f32 %v5618_v41, %v4910_v25  ;;  %vm7849_vm14 = vcmp.eq.f32.partialorder %v4888_v32, 8.507059e+37  ;;  %v4864_v56 = vsel %vm7799_vm12, %v4863_v43, %v4859_v40 }
 0x4c2   :  { %v5622_v14 = vpop.eup %5621  ;;  %5625 = vpow2.f32 %v5025_v30  ;;  %v5021_v12 = vmul.f32 1.442695, %v7834_v45  ;;  %vm4990_vm1 = vcmp.gt.f32.partialorder %v7686_v62, 0.0  ;;  %v5015_v51 = vmul.f32 1.442695, %v7771_v63 }
 0x4c3   :  { %v5386_v36 = vadd.f32 -1.0, %v5622_v14  ;;  %v4932_v53 = vperm.slane %v4864_v56, 4  ;;  %v4915_v44 = vsel %vm7839_vm0, %v5618_v41, %v4911_v10  ;;  %v4881_v37 = vsub.f32 1.0, %v4880_v50 }
 0x4c4   :  { %vm4991_vm15 = vcmp.gt.f32.partialorder %v7667_v6, 0.0  ;;  %5627 = vpow2.f32 %v5021_v12  ;;  %v4920_v11 = vsel %vm7808_vm2, %v4919_v19, %v4915_v44  ;;  %vm4885_vm3 = vweird.f32 %v5620_v29 }
 0x4c5   :  { %v4891_v54 = vor.u32 1.1754944e-38, %v4890_v48  ;;  %v4948_v27 = vmul.f32 %v4932_v53, %v7737_v31  ;;  %v4936_v13 = vperm.slane %v4920_v11, 4  ;;  %v4882_v23 = vmul.f32 %v5620_v29, %v4881_v37  ;;  %vm4886_vm12 = vmor %vm4884_vm5, %vm4885_vm3 }
 0x4c6   :  { %v4902_v47 = vand.u32 2147483647, %v7823_v34  ;;  %v7868_v41 = vsel %vm4993_vm11, %v7793_v16, %v5386_v36  ;;  %vm4898_vm7 = vweird.f32 %v7823_v34  ;;  %v4904_v20 = vand.u32 2147483648, %v7823_v34 }
 0x4c7   :  { %v5624_v1 = vpop.eup %5623  ;;  %v4964_v46 = vadd.f32 %v4948_v27, %v7532_v61  ;;  %v4952_v43 = vmul.f32 %v4936_v13, %v7749_v49  ;;  %v4883_v31 = vadd.f32 %v5620_v29, %v4882_v23  ;;  %vm4992_vm10 = vcmp.gt.f32.partialorder %v7771_v63, 0.0 }
 0x4c8   :  { %v4894_v9 = vmul.f32 %v5624_v1, %v7823_v34  ;;  %5629 = vpow2.f32 %v5015_v51  ;;  %v5626_v42 = vpop.eup %5625  ;;  %vm4899_vm2 = vweird.f32 %v5624_v1  ;;  %v5383_v59 = vadd.f32 -1.0, %v7751_v57 }
 0x4c9   :  { %v5384_v3 = vadd.f32 -1.0, %v7746_v22  ;;  %v7881_v15 = vmul.f32 0.5, %v4964_v46  ;;  %v4968_v61 = vadd.f32 %v4952_v43, %v7580_v24  ;;  %v4887_v49 = vsel %vm4886_vm12, %v5620_v29, %v4883_v31  ;;  %vm4900_vm9 = vmor %vm4898_vm7, %vm4899_vm2 }
 0x4ca   :  { %v4895_v16 = vsub.f32 1.0, %v4894_v9  ;;  %vm7884_vm8 = vcmp.eq.f32.partialorder %v4902_v47, 8.507059e+37  ;;  %v5628_v18 = vpop.eup %5627  ;;  %v4892_v32 = vsel %vm7849_vm14, %v4891_v54, %v4887_v49  ;;  %v4905_v19 = vor.u32 1.1754944e-38, %v4904_v20 }
 0x4cb   :  { %v7894_v22 = vsel %vm4989_vm4, %v7701_v33, %v7785_v4  ;;  %v7896_v57 = vadd.f32 -1.0, %v5626_v42  ;;  %v5023_v24 = vmul.f32 1.442695, %v7881_v15  ;;  %v7899_v29 = vmul.f32 0.5, %v4968_v61 }
 0x4cc   :  { %v4896_v2 = vmul.f32 %v5624_v1, %v4895_v16  ;;  %v7904_v58 = vsel %vm4990_vm1, %v7686_v62, %v5383_v59  ;;  %v7906_v0 = vadd.f32 -1.0, %v5628_v18  ;;  %v4934_v25 = vperm.slane %v4892_v32, 4 }
 0x4cd   :  { %v7911_v33 = vsel %vm4991_vm15, %v7667_v6, %v5384_v3  ;;  %5631 = vpow2.f32 %v5023_v24  ;;  %v5031_v21 = vmul.f32 1.442695, %v7899_v29  ;;  %vm5082_vm11 = vcmask 1041409  }
 0x4ce   :  { %v4897_v30 = vadd.f32 %v5624_v1, %v4896_v2  ;;  %v5630_v4 = vpop.eup %5629  ;;  %vm5085_vm13 = vcmask 1042434   ;;  %vm4996_vm0 = vcmp.gt.f32.partialorder %v7881_v15, 0.0  ;;  %v4950_v62 = vmul.f32 %v4934_v25, %v7791_v52 }
 0x4cf   :  { %v5385_v48 = vadd.f32 -1.0, %v5630_v4  ;;  %vm5088_vm4 = vcmask 1043459   ;;  %5633 = vpow2.f32 %v5031_v21  ;;  %vm5091_vm5 = vcmask 1044484  }
 0x4d0   :  { %v4901_v50 = vsel %vm4900_vm9, %v5624_v1, %v4897_v30  ;;  %vm5094_vm14 = vcmask 1045509   ;;  %v4966_v40 = vadd.f32 %v4950_v62, %v7541_v38  ;;  %v5153_v14 = vrot.slane %v7767_v26, 1 }
 0x4d1   :  { %v4906_v6 = vsel %vm7884_vm8, %v4905_v19, %v4901_v50  ;;  %v7925_v55 = vsel %vm4992_vm10, %v7771_v63, %v5385_v48  ;;  %vm4997_vm1 = vcmp.gt.f32.partialorder %v7820_v35, 0.0  ;;  %vm4995_vm15 = vcmp.gt.f32.partialorder %v7834_v45, 0.0 }
 0x4d2   :  { %v4935_v10 = vperm.slane %v4906_v6, 4  ;;  %vm5097_vm3 = vcmask 1046534   ;;  %vm5100_vm7 = vcmask 1047559   ;;  %v5156_v52 = vrot.slane %v7715_v17, 7 }
 0x4d3   :  { %v5158_v12 = vrot.slane %v7894_v22, 6  ;;  %v4982_v56 = vmul.f32 0.5, %v4966_v40  ;;  %v5154_v63 = vsel %vm5082_vm11, %v5153_v14, %v5152_v7  ;;  %v5160_v51 = vrot.slane %v7904_v58, 5  ;;  %v5632_v36 = vpop.eup %5631 }
 0x4d4   :  { %v4951_v38 = vmul.f32 %v4935_v10, %v7823_v34  ;;  %v5155_v53 = vsel %vm5085_vm13, %v7641_v60, %v5154_v63  ;;  %v5162_v44 = vrot.slane %v7911_v33, 4  ;;  %v5164_v37 = vrot.slane %v7925_v55, 3 }
 0x4d5   :  { %v5118_v11 = vrot.slane %v7569_v8, 1  ;;  %v5389_v54 = vadd.f32 -1.0, %v5632_v36  ;;  %v5027_v1 = vmul.f32 1.442695, %v4982_v56  ;;  %v5120_v27 = vrot.slane %v7641_v60, 7  ;;  %v5634_v13 = vpop.eup %5633 }
 0x4d6   :  { %v4967_v34 = vadd.f32 %v4951_v38, %v7546_v28  ;;  %v5157_v7 = vsel %vm5088_vm4, %v5156_v52, %v5155_v53  ;;  %v5122_v47 = vrot.slane %v7715_v17, 6  ;;  %v5124_v9 = vrot.slane %v7894_v22, 5 }
 0x4d7   :  { %v5119_v23 = vsel %vm5082_vm11, %v7767_v26, %v5118_v11  ;;  %vm4998_vm10 = vcmp.gt.f32.partialorder %v4982_v56, 0.0  ;;  %5635 = vpow2.f32 %v5027_v1  ;;  %v5159_v46 = vsel %vm5091_vm5, %v5158_v12, %v5157_v7 }
 0x4d8   :  { %v4983_v20 = vmul.f32 0.5, %v4967_v34  ;;  %v5126_v43 = vrot.slane %v7904_v58, 4  ;;  %v7954_v28 = vsel %vm4996_vm0, %v7881_v15, %v5389_v54  ;;  %v5161_v31 = vsel %vm5094_vm14, %v5160_v51, %v5159_v46 }
 0x4d9   :  { %v5121_v42 = vsel %vm5085_vm13, %v5120_v27, %v5119_v23  ;;  %v5128_v16 = vrot.slane %v7911_v33, 3  ;;  %v5163_v3 = vsel %vm5097_vm3, %v5162_v44, %v5161_v31  ;;  %v5130_v49 = vrot.slane %v7925_v55, 2 }
 0x4da   :  { %v5029_v59 = vmul.f32 1.442695, %v4983_v20  ;;  %v5123_v61 = vsel %vm5088_vm4, %v5122_v47, %v5121_v42  ;;  %v5165_v39 = vsel %vm5100_vm7, %v5164_v37, %v5163_v3  ;;  %vm5000_vm12 = vcmp.gt.f32.partialorder %v7899_v29, 0.0 }
 0x4db   :  { %v5125_v18 = vsel %vm5091_vm5, %v5124_v9, %v5123_v61  ;;  %v5393_v15 = vadd.f32 -1.0, %v5634_v13  ;;  %5180 = vrot.lane.b32.xlu0 %v5165_v39, %s5672_s2  ;;  %v7971_v2 = vsel %vm4995_vm15, %v7834_v45, %v7906_v0  ;;  %v7977_v19 = vsel %vm4997_vm1, %v7820_v35, %v7896_v57 }
 0x4dc   :  { %5637 = vpow2.f32 %v5029_v59  ;;  %v5127_v32 = vsel %vm5094_vm14, %v5126_v43, %v5125_v18  ;;  %v5166_v30 = vrot.slane %v7868_v41, 2  ;;  %v5167_v4 = vrot.slane %v7818_v5, 1 }
 0x4dd   :  { %v5129_v24 = vsel %vm5097_vm3, %v5128_v16, %v5127_v32  ;;  %v7981_v25 = vsel %vm5000_vm12, %v7899_v29, %v5393_v15  ;;  %v5636_v21 = vpop.eup %5635  ;;  %vm4999_vm2 = vcmp.gt.f32.partialorder %v4983_v20, 0.0  ;;  %v5170_v0 = vrot.slane %v7954_v28, 7 }
 0x4de   :  { %v5131_v45 = vsel %vm5100_vm7, %v5130_v49, %v5129_v24  ;;  %v5172_v62 = vrot.slane %v7977_v19, 6  ;;  %v5391_v50 = vadd.f32 -1.0, %v5636_v21  ;;  %v5168_v35 = vsel %vm5082_vm11, %v5167_v4, %v5166_v30 }
 0x4df   :  { %5146 = vrot.lane.b32.xlu1 %v5131_v45, %s5673_s4  ;;  %v5132_v57 = vrot.slane %v7868_v41, 1  ;;  %v5134_v29 = vrot.slane %v7971_v2, 7  ;;  %v5169_v48 = vsel %vm5085_vm13, %v7971_v2, %v5168_v35  ;;  %v5178_v6 = vrot.slane %v7981_v25, 3 }
 0x4e0   :  { %v5136_v40 = vrot.slane %v7954_v28, 6  ;;  %v5138_v10 = vrot.slane %v7977_v19, 5  ;;  %v7998_v14 = vsel %vm4998_vm10, %v4982_v56, %v5391_v50  ;;  %v5171_v52 = vsel %vm5088_vm4, %v5170_v0, %v5169_v48 }
 0x4e1   :  { %v5133_v12 = vsel %vm5082_vm11, %v7818_v5, %v5132_v57  ;;  %v5144_v38 = vrot.slane %v7981_v25, 2  ;;  %v5173_v51 = vsel %vm5091_vm5, %v5172_v62, %v5171_v52  ;;  %v5174_v36 = vrot.slane %v7998_v14, 5 }
 0x4e2   :  { %v5638_v63 = vpop.eup %5637  ;;  %v5135_v53 = vsel %vm5085_vm13, %v5134_v29, %v5133_v12  ;;  %v5140_v44 = vrot.slane %v7998_v14, 4  ;;  %v5186_v11 = vrot.slane %v7569_v8, 3  ;;  %v5187_v54 = vrot.slane %v7767_v26, 2 }
 0x4e3   :  { %v5392_v37 = vadd.f32 -1.0, %v5638_v63  ;;  %v5137_v56 = vsel %vm5088_vm4, %v5136_v40, %v5135_v53  ;;  %v5175_v1 = vsel %vm5094_vm14, %v5174_v36, %v5173_v51  ;;  %v5189_v27 = vrot.slane %v7641_v60, 1 }
 0x4e4   :  { %v5139_v34 = vsel %vm5091_vm5, %v5138_v10, %v5137_v56  ;;  %v5192_v13 = vrot.slane %v7894_v22, 7  ;;  %v5188_v47 = vsel %vm5082_vm11, %v5187_v54, %v5186_v11  ;;  %v5194_v9 = vrot.slane %v7904_v58, 6 }
 0x4e5   :  { %v8016_v7 = vsel %vm4999_vm2, %v4983_v20, %v5392_v37  ;;  %v5141_v23 = vsel %vm5094_vm14, %v5140_v44, %v5139_v34  ;;  %v5190_v31 = vsel %vm5085_vm13, %v5189_v27, %v5188_v47  ;;  %v5198_v42 = vrot.slane %v7925_v55, 4 }
 0x4e6   :  { %v5176_v46 = vrot.slane %v8016_v7, 4  ;;  %v5142_v43 = vrot.slane %v8016_v7, 3  ;;  %v5191_v16 = vsel %vm5088_vm4, %v7715_v17, %v5190_v31  ;;  %v5200_v20 = vrot.slane %v7868_v41, 3 }
 0x4e7   :  { %v5201_v59 = vrot.slane %v7818_v5, 2  ;;  %v5203_v3 = vrot.slane %v7971_v2, 1  ;;  %v5193_v39 = vsel %vm5091_vm5, %v5192_v13, %v5191_v16  ;;  %v5196_v18 = vrot.slane %v7911_v33, 5 }
 0x4e8   :  { %v5177_v61 = vsel %vm5097_vm3, %v5176_v46, %v5175_v1  ;;  %v5143_v49 = vsel %vm5097_vm3, %v5142_v43, %v5141_v23  ;;  %v5195_v24 = vsel %vm5094_vm14, %v5194_v9, %v5193_v39  ;;  %v5206_v45 = vrot.slane %v7977_v19, 7 }
 0x4e9   :  { %v5179_v15 = vsel %vm5100_vm7, %v5178_v6, %v5177_v61  ;;  %v5145_v32 = vsel %vm5100_vm7, %v5144_v38, %v5143_v49  ;;  %v5202_v30 = vsel %vm5082_vm11, %v5201_v59, %v5200_v20  ;;  %v5197_v4 = vsel %vm5097_vm3, %v5196_v18, %v5195_v24 }
 0x4ea   :  { %5182 = vrot.lane.b32.xlu1 %v5179_v15, %s5672_s2  ;;  %5148 = vrot.lane.b32.xlu2 %v5145_v32, %s5673_s4  ;;  %v5204_v21 = vsel %vm5085_vm13, %v5203_v3, %v5202_v30  ;;  %v5208_v0 = vrot.slane %v7998_v14, 6  ;;  %v5199_v62 = vsel %vm5100_vm7, %v5198_v42, %v5197_v4  ;;  %v5081_v35 = vrot.slane %v7767_v26, 7 }
 0x4eb   :  { %v5205_v50 = vsel %vm5088_vm4, %v7954_v28, %v5204_v21  ;;  %v5084_v29 = vrot.slane %v7641_v60, 6  ;;  %v5087_v40 = vrot.slane %v7715_v17, 5  ;;  %v5090_v52 = vrot.slane %v7894_v22, 4 }
 0x4ec   :  { %v5207_v57 = vsel %vm5091_vm5, %v5206_v45, %v5205_v50  ;;  %v5083_v6 = vsel %vm5082_vm11, %v5081_v35, %v7569_v8  ;;  %v5093_v38 = vrot.slane %v7904_v58, 3  ;;  %v5096_v63 = vrot.slane %v7911_v33, 2 }
 0x4ed   :  { %v5209_v48 = vsel %vm5094_vm14, %v5208_v0, %v5207_v57  ;;  %v5086_v10 = vsel %vm5085_vm13, %v5084_v29, %v5083_v6  ;;  %v5210_v8 = vrot.slane %v8016_v7, 5  ;;  %v5099_v22 = vrot.slane %v7925_v55, 1 }
 0x4ee   :  { %v5089_v12 = vsel %vm5088_vm4, %v5087_v40, %v5086_v10  ;;  %v5212_v36 = vrot.slane %v7981_v25, 4  ;;  %v5102_v33 = vrot.slane %v7818_v5, 7  ;;  %v5104_v37 = vrot.slane %v7971_v2, 6 }
 0x4ef   :  { %v5092_v26 = vsel %vm5091_vm5, %v5090_v52, %v5089_v12  ;;  %v5211_v51 = vsel %vm5097_vm3, %v5210_v8, %v5209_v48  ;;  %v5106_v11 = vrot.slane %v7954_v28, 5  ;;  %v5108_v55 = vrot.slane %v7977_v19, 4 }
 0x4f0   :  { %v5095_v60 = vsel %vm5094_vm14, %v5093_v38, %v5092_v26  ;;  %v5213_v53 = vsel %vm5100_vm7, %v5212_v36, %v5211_v51  ;;  %v5103_v44 = vsel %vm5082_vm11, %v5102_v33, %v7868_v41  ;;  %v5110_v34 = vrot.slane %v7998_v14, 3 }
 0x4f1   :  { %v5098_v17 = vsel %vm5097_vm3, %v5096_v63, %v5095_v60  ;;  %v5105_v56 = vsel %vm5085_vm13, %v5104_v37, %v5103_v44  ;;  %v5112_v5 = vrot.slane %v8016_v7, 2  ;;  %v5114_v41 = vrot.slane %v7981_v25, 1 }
 0x4f2   :  { %5214 = vrot.lane.b32.xlu1 %v5199_v62, %s5674_s5  ;;  %v5101_v58 = vsel %vm5100_vm7, %v5099_v22, %v5098_v17  ;;  %v5107_v54 = vsel %vm5088_vm4, %v5106_v11, %v5105_v56  ;;  %vm5222_vm8 = vcmask 261120   ;;  %vm5225_vm9 = vcmask 392192  }
 0x4f3   :  { %v5109_v1 = vsel %vm5091_vm5, %v5108_v55, %v5107_v54  ;;  %vm5228_vm11 = vcmask 523264  }
 0x4f4   :  { %v5111_v27 = vsel %vm5094_vm14, %v5110_v34, %v5109_v1 }
 0x4f5   :  { %v5113_v2 = vsel %vm5097_vm3, %v5112_v5, %v5111_v27 }
 0x4f6   :  { %v5115_v13 = vsel %vm5100_vm7, %v5114_v41, %v5113_v2 }
 0x4fa   :  { %5216 = vrot.lane.b32.xlu1 %v5213_v53, %s5674_s5 }
 0x544   :  { %v5149_v43 = vpop.permute.xlu2 %5148 }
 0x545   :  { %v5221_v25 = vsel %vm1848_vm6, %v5115_v13, %v5149_v43 }
 0x54d   :  { %v5181_v47 = vpop.permute.xlu0 %5180 }
 0x551   :  { %v5147_v23 = vpop.permute.xlu1 %5146 }
 0x552   :  { %v5220_v19 = vsel %vm1848_vm6, %v5101_v58, %v5147_v23 }
 0x553   :  { %v5223_v9 = vsel %vm5222_vm8, %v5220_v19, %v5181_v47 }
 0x55c   :  { %v5183_v28 = vpop.permute.xlu1 %5182 }
 0x55d   :  { %v5224_v7 = vsel %vm5222_vm8, %v5221_v25, %v5183_v28 }
 0x564   :  { %v5215_v14 = vpop.permute.xlu1 %5214 }
 0x565   :  { %v5226_v46 = vsel %vm5225_vm9, %v5223_v9, %v5215_v14 }
 0x566   :  { %5229 = vst.msk [vmem:[#allocation2] sm:$0xff] %vm5228_vm11, %v5226_v46 }
 0x56c   :  { %v5217_v31 = vpop.permute.xlu1 %5216 }
 0x56d   :  { %v5227_v42 = vsel %vm5225_vm9, %v5224_v7, %v5217_v31 }
 0x56e   :  { %5230 = vst.msk [vmem:[#allocation2 + $0x8] sm:$0xff] %vm5228_vm11, %v5227_v42 }
 0x56f   :  { %5243 = dma.vmem_to_hbm [thread:$0]  %s5236_s7, 256, %s5238_s10, [#allocation3], %s5676_s11, %s5676_s11, %s5677_s12  }
 0x570   :  { %5665 = dma.done.wait [#allocation3], 256  }
 0x571   :  { %5666 = vsyncadd [#allocation3], 4294967040 }
 0x572   :  { %5248 = vsyncpa [#allocation3], 1 }

</bundles_post_ra>
